<compile_context>
chip_gen: v7x
topology: tpu7x:2x2x1
jax: 0.10.0
libtpu: 0.0.40
codegen_flags: <defaults>
</compile_context>

<pallas_src>
import functools

import jax
import jax.numpy as jnp
import numpy as np
from jax import lax
from jax.experimental import pallas as pl
from jax.experimental.pallas import tpu as pltpu


def _round_up(x, m):
    return ((x + m - 1) // m) * m


def _mcr2_gram_kernel(z_ref, pi_ref, acc_ref, w_ref, *, num_classes, feat_dim,
                      kd1, kd1_pad, total_n, tile_n, ragged):
    n = pl.program_id(0)

    @pl.when(n == 0)
    def _init():
        acc_ref[...] = jnp.zeros_like(acc_ref)
        if kd1_pad > kd1:
            # Zero the lane-padding columns of the operand slab once per call so the
            # (stripped-in-glue) padding lanes of the accumulator stay finite.
            w_ref[:, kd1:] = jnp.zeros((tile_n, kd1_pad - kd1), dtype=w_ref.dtype)

    z = z_ref[...]      # (tile_n, D), compute dtype (f32 or bf16)
    pi = pi_ref[...]    # (tile_n, K), same dtype

    if ragged:
        # Mask rows past the true N on the ragged last tile (block overhangs the
        # array; out-of-bounds VMEM contents are unspecified).  Cheap VPU work.
        row = n * tile_n + lax.broadcasted_iota(jnp.int32, (tile_n, 1), 0)
        valid = row < total_n
        z = jnp.where(valid, z, jnp.zeros_like(z))
        pi = jnp.where(valid, pi, jnp.zeros_like(pi))

    # Fused operand slab  w = [Z | Z*pi_0 | ... | Z*pi_{K-1}]  built in VMEM scratch.
    w_ref[:, 0:feat_dim] = z
    for k in range(num_classes):
        w_ref[:, (k + 1) * feat_dim:(k + 2) * feat_dim] = z * pi[:, k:k + 1]

    # One MXU call per tile, contracting the sample axis of both operands
    # (no materialized transpose).  f32 accumulation into the resident output.
    acc_ref[...] += lax.dot_general(
        z, w_ref[...],
        dimension_numbers=(((0,), (0,)), ((), ())),
        preferred_element_type=jnp.float32,
    )


def _vmem_budget_bytes():
    # Per-generation budget: capacity minus compiler-scratch headroom, capped at
    # 112 MiB (v5e/v6e have 128 MiB); fallback 48 MiB is safe on v7x's 64 MiB.
    try:
        cap = int(pltpu.get_tpu_info().vmem_capacity_bytes)
        budget = min(cap - (16 << 20), 112 << 20)
    except Exception:
        budget = 48 << 20
    return int(max(budget, 32 << 20))


def _mcr2_grams(Z, Pi, *, tile_n=None, compute_dtype=None, force_pallas=None):
    """Returns (gram, cgram): Z^T Z of shape (D, D) and per-class
    Z^T diag(Pi[:, k]) Z of shape (K, D, D), both float32."""
    N, D = Z.shape
    K = Pi.shape[1]
    cdt = jnp.dtype(compute_dtype) if compute_dtype is not None else jnp.dtype(Z.dtype)
    Zc = Z.astype(cdt)
    Pic = Pi.astype(cdt)

    use_pallas = force_pallas if force_pallas is not None else (D >= 128 and N >= 256)
    if not use_pallas:
        # Small-D / small-N fallback: XLA's fused matmul is already near the memory
        # roofline and Pallas per-step overhead + lane padding would dominate.
        gram = lax.dot_general(Zc, Zc, (((0,), (0,)), ((), ())),
                               preferred_element_type=jnp.float32)
        zw = Zc[:, None, :] * Pic[:, :, None]                          # (N, K, D)
        cgram = lax.dot_general(zw, Zc, (((0,), (0,)), ((), ())),
                                preferred_element_type=jnp.float32)    # (K, D, D)
        return gram, cgram

    kd1 = (K + 1) * D
    kd1_pad = _round_up(kd1, 128)          # lane-dense accumulator / writeback
    itemsize = jnp.dtype(cdt).itemsize
    budget = _vmem_budget_bytes()

    granule = 256                          # multiple of both MXU depths (128/256) and sublane 8
    if tile_n is None:
        # Largest N-tile whose working set fits the budget: double-buffered Z and
        # (lane-padded) Pi input blocks + the fused operand slab + the resident
        # f32 accumulator (double-buffered output block) + slack.
        per_row = (2 * _round_up(D, 128) + 2 * _round_up(K, 128) + kd1_pad) * itemsize
        fixed = 2 * _round_up(D, 8) * kd1_pad * 4 + (6 << 20)
        tile = max(granule, (max(budget - fixed, 0) // per_row) // granule * granule)
    else:
        tile = max(granule, _round_up(int(tile_n), granule))
    tile = int(min(tile, 8192))

    # Ragged N is handled with in-kernel masking of the last tile (no full-array
    # HBM pad copy).  Only when N is smaller than one tile do we shrink the tile
    # and zero-pad the (tiny, < 256 row) remainder.
    if N < tile:
        tile = _round_up(N, granule)
        if tile != N:
            Zc = jnp.pad(Zc, ((0, tile - N), (0, 0)))
            Pic = jnp.pad(Pic, ((0, tile - N), (0, 0)))
        n_rows = tile
    else:
        n_rows = N
    n_tiles = pl.cdiv(n_rows, tile)
    ragged = (n_rows % tile) != 0

    kernel = functools.partial(
        _mcr2_gram_kernel, num_classes=K, feat_dim=D, kd1=kd1, kd1_pad=kd1_pad,
        total_n=N, tile_n=tile, ragged=ragged)

    # TODO(synk): on v7x (2 TensorCores) add a leading CORE_PARALLEL chunk axis with one
    # accumulator slab per core; v5e/v6e have a single TC so this plain reduction grid
    # is already the right shape there.
    acc = pl.pallas_call(
        kernel,
        out_shape=jax.ShapeDtypeStruct((D, kd1_pad), jnp.float32),
        grid_spec=pltpu.PrefetchScalarGridSpec(
            num_scalar_prefetch=0,
            grid=(n_tiles,),
            in_specs=[
                pl.BlockSpec((tile, D), lambda n: (n, 0)),
                pl.BlockSpec((tile, K), lambda n: (n, 0)),
            ],
            out_specs=pl.BlockSpec((D, kd1_pad), lambda n: (0, 0)),
            scratch_shapes=[pltpu.VMEM((tile, kd1_pad), cdt)],
        ),
        compiler_params=pltpu.CompilerParams(
            dimension_semantics=("arbitrary",),
            vmem_limit_bytes=int(budget),
        ),
    )(Zc, Pic)

    acc = acc[:, :kd1].reshape(D, K + 1, D)
    gram = acc[:, 0, :]                                  # Z^T Z
    cgram = jnp.transpose(acc[:, 1:, :], (1, 0, 2))      # (K, D, D)
    return gram, cgram


def supervised_mcr2_loss(Z, Pi, eps_sq, *, tile_n=None, compute_dtype=None,
                         force_pallas=None):
    """forward(Z, Pi) = -DeltaR(Z, Pi).  Z: (N, D) float, Pi: (N, K) float."""
    N, D = Z.shape
    gram, cgram = _mcr2_grams(Z, Pi, tile_n=tile_n, compute_dtype=compute_dtype,
                              force_pallas=force_pallas)

    # Per-class counts are a trivial fused XLA reduction (kept out of the kernel).
    counts = jnp.sum(Pi.astype(jnp.float32), axis=0)     # (K,)

    eye = jnp.eye(D, dtype=jnp.float32)

    # R(Z): expansion coding rate.
    R = 0.5 * jnp.linalg.slogdet(eye + (D / (N * eps_sq)) * gram)[1]

    # Rc(Z, Pi): compressed (per-class) coding rate.
    counts_safe = jnp.maximum(counts, 1e-8)
    alpha_k = D / (counts_safe * eps_sq)                         # (K,)
    mats = eye[None, :, :] + alpha_k[:, None, None] * cgram      # (K, D, D)
    logdets = jnp.linalg.slogdet(mats)[1]                        # (K,)
    Rc = jnp.sum((counts / (2.0 * N)) * logdets)

    return -(R - Rc)


def _reference_loss(Z, Pi, eps_sq, compute_dtype=None):
    """Pure-JAX reference mirroring the kernel math (products in compute_dtype,
    f32 accumulation and logdets).  Correctness check only."""
    cdt = jnp.dtype(compute_dtype) if compute_dtype is not None else jnp.dtype(Z.dtype)
    Zc = Z.astype(cdt)
    Pic = Pi.astype(cdt)
    Pif = Pi.astype(jnp.float32)
    N, D = Z.shape
    K = Pi.shape[1]
    eye = jnp.eye(D, dtype=jnp.float32)
    gram = jnp.dot(Zc.T, Zc, preferred_element_type=jnp.float32)
    R = 0.5 * jnp.linalg.slogdet(eye + (D / (N * eps_sq)) * gram)[1]
    Rc = 0.0
    for k in range(K):
        nk = jnp.sum(Pif[:, k])
        zk = Zc * Pic[:, k:k + 1]
        gk = jnp.dot(zk.T, Zc, preferred_element_type=jnp.float32)
        Rc = Rc + (nk / (2.0 * N)) * jnp.linalg.slogdet(
            eye + (D / (jnp.maximum(nk, 1e-8) * eps_sq)) * gk)[1]
    return -(R - Rc)


if __name__ == "__main__":
    key = jax.random.PRNGKey(0)
    k1, k2, k3, k4, k5, k6 = jax.random.split(key, 6)
    eps_sq = 0.5
    K = 4

    # Case 1: Pallas path, auto tile selection (N == tile, single reduction step).
    N1, D1 = 512, 128
    Z1 = jax.random.normal(k1, (N1, D1), dtype=jnp.float32)
    Pi1 = jax.nn.one_hot(jax.random.randint(k2, (N1,), 0, K), K, dtype=jnp.float32)
    out1 = jax.block_until_ready(supervised_mcr2_loss(Z1, Pi1, eps_sq))
    ref1 = jax.block_until_ready(_reference_loss(Z1, Pi1, eps_sq))
    np.testing.assert_allclose(np.asarray(out1), np.asarray(ref1), rtol=2e-2, atol=1e-1)

    # Case 2: Pallas path, ragged N with a multi-step reduction grid
    # (exercises in-kernel masking of the last tile; no HBM pad copy).
    N2, D2 = 700, 128
    Z2 = jax.random.normal(k3, (N2, D2), dtype=jnp.float32)
    Pi2 = jax.nn.one_hot(jax.random.randint(k4, (N2,), 0, K), K, dtype=jnp.float32)
    out2 = jax.block_until_ready(supervised_mcr2_loss(Z2, Pi2, eps_sq, tile_n=256))
    ref2 = jax.block_until_ready(_reference_loss(Z2, Pi2, eps_sq))
    np.testing.assert_allclose(np.asarray(out2), np.asarray(ref2), rtol=2e-2, atol=1e-1)

    # Case 3: bf16 streaming (halves HBM traffic); checked against a reference that
    # also takes bf16 products with f32 accumulation.
    out3 = jax.block_until_ready(
        supervised_mcr2_loss(Z2, Pi2, eps_sq, tile_n=256, compute_dtype=jnp.bfloat16))
    ref3 = jax.block_until_ready(_reference_loss(Z2, Pi2, eps_sq, compute_dtype=jnp.bfloat16))
    np.testing.assert_allclose(np.asarray(out3), np.asarray(ref3), rtol=5e-2, atol=5e-1)

    # Case 4: small-D / small-N problem -> automatic XLA fallback path.
    N4, D4 = 100, 32
    Z4 = jax.random.normal(k5, (N4, D4), dtype=jnp.float32)
    Pi4 = jax.nn.one_hot(jax.random.randint(k6, (N4,), 0, K), K, dtype=jnp.float32)
    out4 = jax.block_until_ready(supervised_mcr2_loss(Z4, Pi4, eps_sq))
    ref4 = jax.block_until_ready(_reference_loss(Z4, Pi4, eps_sq))
    np.testing.assert_allclose(np.asarray(out4), np.asarray(ref4), rtol=1e-2, atol=5e-2)

    print("KERNEL_OK")
</pallas_src>

<mosaic_0001>
module attributes {stable_mosaic.version = 11 : i64} {
  func.func @_mcr2_gram_kernel(%arg0: i32, %arg1: memref<512x128xf32, #tpu.memory_space<vmem>>, %arg2: memref<512x4xf32, #tpu.memory_space<vmem>>, %arg3: memref<128x640xf32, #tpu.memory_space<vmem>>, %arg4: memref<512x640xf32, #tpu.memory_space<vmem>>) attributes {dimension_semantics = [#tpu.dimension_semantics<arbitrary>], iteration_bounds = array<i64: 1>, scalar_prefetch = 0 : i64, scratch_operands = 1 : i64, tpu.core_type = #tpu.core_type<tc>, window_params = [{transform_indices = @transform_0, window_bounds = array<i64: 512, 128>}, {transform_indices = @transform_1, window_bounds = array<i64: 512, 4>}, {pipeline_mode = #tpu.pipeline_mode<synchronous>, transform_indices = @transform_2, window_bounds = array<i64: 128, 640>}]} {
    %c0_i32 = arith.constant 0 : i32
    %0 = arith.cmpi eq, %arg0, %c0_i32 : i32
    %1 = arith.extui %0 : i1 to i32
    %c0_i32_0 = arith.constant 0 : i32
    %2 = arith.cmpi ne, %1, %c0_i32_0 : i32
    scf.if %2 {
      %cst_16 = arith.constant 0.000000e+00 : f32
      %27 = vector.broadcast %cst_16 : f32 to vector<128x640xf32>
      %c0_17 = arith.constant 0 : index
      %c0_18 = arith.constant 0 : index
      %28 = vector.load %arg3[%c0_17, %c0_18] : memref<128x640xf32, #tpu.memory_space<vmem>>, vector<128x640xf32>
      tpu.vector_store %arg3[%c0_17, %c0_18], %27 {strides = array<i32>} : memref<128x640xf32, #tpu.memory_space<vmem>>, vector<128x640xf32>,
    } else {
    }
    %c0 = arith.constant 0 : index
    %c0_1 = arith.constant 0 : index
    %3 = vector.load %arg1[%c0, %c0_1] : memref<512x128xf32, #tpu.memory_space<vmem>>, vector<512x128xf32>
    %c0_2 = arith.constant 0 : index
    %c0_3 = arith.constant 0 : index
    %4 = vector.load %arg2[%c0_2, %c0_3] : memref<512x4xf32, #tpu.memory_space<vmem>>, vector<512x4xf32>
    %c0_4 = arith.constant 0 : index
    %c0_5 = arith.constant 0 : index
    %5 = vector.load %arg4[%c0_4, %c0_5] : memref<512x640xf32, #tpu.memory_space<vmem>>, vector<512x128xf32>
    tpu.vector_store %arg4[%c0_4, %c0_5], %3 {strides = array<i32>} : memref<512x640xf32, #tpu.memory_space<vmem>>, vector<512x128xf32>,
    %6 = vector.extract_strided_slice %4 {offsets = [0, 0], sizes = [512, 1], strides = [1, 1]} : vector<512x4xf32> to vector<512x1xf32>
    %7 = vector.broadcast %6 : vector<512x1xf32> to vector<512x128xf32>
    %8 = arith.mulf %3, %7 : vector<512x128xf32>
    %c0_6 = arith.constant 0 : index
    %c128 = arith.constant 128 : index
    %9 = vector.load %arg4[%c0_6, %c128] : memref<512x640xf32, #tpu.memory_space<vmem>>, vector<512x128xf32>
    tpu.vector_store %arg4[%c0_6, %c128], %8 {strides = array<i32>} : memref<512x640xf32, #tpu.memory_space<vmem>>, vector<512x128xf32>,
    %10 = vector.extract_strided_slice %4 {offsets = [0, 1], sizes = [512, 1], strides = [1, 1]} : vector<512x4xf32> to vector<512x1xf32>
    %11 = vector.broadcast %10 : vector<512x1xf32> to vector<512x128xf32>
    %12 = arith.mulf %3, %11 : vector<512x128xf32>
    %c0_7 = arith.constant 0 : index
    %c256 = arith.constant 256 : index
    %13 = vector.load %arg4[%c0_7, %c256] : memref<512x640xf32, #tpu.memory_space<vmem>>, vector<512x128xf32>
    tpu.vector_store %arg4[%c0_7, %c256], %12 {strides = array<i32>} : memref<512x640xf32, #tpu.memory_space<vmem>>, vector<512x128xf32>,
    %14 = vector.extract_strided_slice %4 {offsets = [0, 2], sizes = [512, 1], strides = [1, 1]} : vector<512x4xf32> to vector<512x1xf32>
    %15 = vector.broadcast %14 : vector<512x1xf32> to vector<512x128xf32>
    %16 = arith.mulf %3, %15 : vector<512x128xf32>
    %c0_8 = arith.constant 0 : index
    %c384 = arith.constant 384 : index
    %17 = vector.load %arg4[%c0_8, %c384] : memref<512x640xf32, #tpu.memory_space<vmem>>, vector<512x128xf32>
    tpu.vector_store %arg4[%c0_8, %c384], %16 {strides = array<i32>} : memref<512x640xf32, #tpu.memory_space<vmem>>, vector<512x128xf32>,
    %18 = vector.extract_strided_slice %4 {offsets = [0, 3], sizes = [512, 1], strides = [1, 1]} : vector<512x4xf32> to vector<512x1xf32>
    %19 = vector.broadcast %18 : vector<512x1xf32> to vector<512x128xf32>
    %20 = arith.mulf %3, %19 : vector<512x128xf32>
    %c0_9 = arith.constant 0 : index
    %c512 = arith.constant 512 : index
    %21 = vector.load %arg4[%c0_9, %c512] : memref<512x640xf32, #tpu.memory_space<vmem>>, vector<512x128xf32>
    tpu.vector_store %arg4[%c0_9, %c512], %20 {strides = array<i32>} : memref<512x640xf32, #tpu.memory_space<vmem>>, vector<512x128xf32>,
    %c0_10 = arith.constant 0 : index
    %c0_11 = arith.constant 0 : index
    %22 = vector.load %arg3[%c0_10, %c0_11] : memref<128x640xf32, #tpu.memory_space<vmem>>, vector<128x640xf32>
    %c0_12 = arith.constant 0 : index
    %c0_13 = arith.constant 0 : index
    %23 = vector.load %arg4[%c0_12, %c0_13] : memref<512x640xf32, #tpu.memory_space<vmem>>, vector<512x640xf32>
    %cst = arith.constant dense<0.000000e+00> : vector<128x640xf32>
    %24 = tpu.matmul %3, %23, %cst {dimension_numbers = #tpu.dot_dimension_numbers<[0], [0], [1], [1], [0, 1, 1, 1], [], []>} : vector<512x128xf32>, vector<512x640xf32>, vector<128x640xf32> -> vector<128x640xf32>
    %25 = arith.addf %22, %24 : vector<128x640xf32>
    %c0_14 = arith.constant 0 : index
    %c0_15 = arith.constant 0 : index
    %26 = vector.load %arg3[%c0_14, %c0_15] : memref<128x640xf32, #tpu.memory_space<vmem>>, vector<128x640xf32>
    tpu.vector_store %arg3[%c0_14, %c0_15], %25 {strides = array<i32>} : memref<128x640xf32, #tpu.memory_space<vmem>>, vector<128x640xf32>,
    return
  }
  func.func @transform_0(%arg0: i32) -> (i32, i32) {
    %c0_i32 = arith.constant 0 : i32
    %c0_i32_0 = arith.constant 0 : i32
    return %arg0, %c0_i32 : i32, i32
  }
  func.func @transform_1(%arg0: i32) -> (i32, i32) {
    %c0_i32 = arith.constant 0 : i32
    %c0_i32_0 = arith.constant 0 : i32
    return %arg0, %c0_i32 : i32, i32
  }
  func.func @transform_2(%arg0: i32) -> (i32, i32) {
    %c0_i32 = arith.constant 0 : i32
    %c0_i32_0 = arith.constant 0 : i32
    %c0_i32_1 = arith.constant 0 : i32
    return %c0_i32, %c0_i32_0 : i32, i32
  }
}

</mosaic_0001>

<bundles_post_ra>
// kernel: tpu_custom_call.1
= control target key start
LH: loop header
LB: loop body
LE: loop exit
PB: predicated region body
PF: predicated region fallthrough
CT: control target
= control target key end

     0   :  { %s7071_s0 = inlined_call_operand.vmem [shape: f32[512,128], index: 0, kind: input, shape index: {}]   ;;  %s7072_s1 = inlined_call_operand.vmem [shape: f32[512,4], index: 1, kind: input, shape index: {}]   ;;  %s7073_s2 = inlined_call_operand.hbm [shape: f32[128,640], index: 2, kind: output, shape index: {}]  }
   0x1   :  { %v128_v0 = vld [vmem:[%s7071_s0 + $0x100] sm:$0xff]  ;;  %v129_v5 = vld [vmem:[%s7071_s0 + $0x108] sm:$0xff]  ;;  %v130_v12 = vld [vmem:[%s7071_s0 + $0x110] sm:$0xff] }
   0x2   :  { %v144_v1 = vld [vmem:[%s7071_s0 + $0x180] sm:$0xff]  ;;  %v145_v6 = vld [vmem:[%s7071_s0 + $0x188] sm:$0xff]  ;;  %v146_v13 = vld [vmem:[%s7071_s0 + $0x190] sm:$0xff] }
   0x3   :  { %v4547_v2 = vld [vmem:[%s7071_s0] sm:$0xff]  ;;  %v4193_v3 = vpack.i.bf16 %v128_v0, %v144_v1  ;;  %v4565_v8 = vld [vmem:[%s7071_s0 + $0x8] sm:$0xff]  ;;  %v4195_v10 = vpack.i.bf16 %v129_v5, %v145_v6  ;;  %v4583_v14 = vld [vmem:[%s7071_s0 + $0x10] sm:$0xff]  ;;  %v4197_v16 = vpack.i.bf16 %v130_v12, %v146_v13 }
   0x4   :  { %v4552_v4 = vld [vmem:[%s7071_s0 + $0x80] sm:$0xff]  ;;  %v4570_v9 = vld [vmem:[%s7071_s0 + $0x88] sm:$0xff]  ;;  %v4588_v15 = vld [vmem:[%s7071_s0 + $0x90] sm:$0xff] }
   0x5   :  { %v4078_v7 = vpack.i.bf16 %v4547_v2, %v4552_v4  ;;  %4194 = vxpose.xlu0.b32.start [1/16] %v4193_v3, 128  ;;  %v4080_v11 = vpack.i.bf16 %v4565_v8, %v4570_v9  ;;  %v4082_v17 = vpack.i.bf16 %v4583_v14, %v4588_v15  ;;  %v131_v18 = vld [vmem:[%s7071_s0 + $0x118] sm:$0xff]  ;;  %v132_v24 = vld [vmem:[%s7071_s0 + $0x120] sm:$0xff]  ;;  %v133_v30 = vld [vmem:[%s7071_s0 + $0x128] sm:$0xff] }
   0x6   :  { %v147_v19 = vld [vmem:[%s7071_s0 + $0x198] sm:$0xff]  ;;  %v148_v25 = vld [vmem:[%s7071_s0 + $0x1a0] sm:$0xff]  ;;  %v149_v31 = vld [vmem:[%s7071_s0 + $0x1a8] sm:$0xff] }
   0x7   :  { %4079 = vxpose.xlu1.b32.start [1/16] %v4078_v7, 128  ;;  %v4601_v20 = vld [vmem:[%s7071_s0 + $0x18] sm:$0xff]  ;;  %v4199_v22 = vpack.i.bf16 %v131_v18, %v147_v19  ;;  %v4619_v26 = vld [vmem:[%s7071_s0 + $0x20] sm:$0xff]  ;;  %v4201_v28 = vpack.i.bf16 %v132_v24, %v148_v25  ;;  %v4637_v32 = vld [vmem:[%s7071_s0 + $0x28] sm:$0xff]  ;;  %v4203_v34 = vpack.i.bf16 %v133_v30, %v149_v31 }
   0x8   :  { %v4606_v21 = vld [vmem:[%s7071_s0 + $0x98] sm:$0xff]  ;;  %v4624_v27 = vld [vmem:[%s7071_s0 + $0xa0] sm:$0xff]  ;;  %v4642_v33 = vld [vmem:[%s7071_s0 + $0xa8] sm:$0xff] }
   0x9   :  { %4196 = vxpose.xlu0.b32.cont [2/16] %v4195_v10, 128  ;;  %v4084_v23 = vpack.i.bf16 %v4601_v20, %v4606_v21  ;;  %v4086_v29 = vpack.i.bf16 %v4619_v26, %v4624_v27  ;;  %v4088_v35 = vpack.i.bf16 %v4637_v32, %v4642_v33  ;;  %v134_v36 = vld [vmem:[%s7071_s0 + $0x130] sm:$0xff]  ;;  %v135_v42 = vld [vmem:[%s7071_s0 + $0x138] sm:$0xff]  ;;  %v136_v48 = vld [vmem:[%s7071_s0 + $0x140] sm:$0xff] }
   0xa   :  { %v150_v37 = vld [vmem:[%s7071_s0 + $0x1b0] sm:$0xff]  ;;  %v151_v43 = vld [vmem:[%s7071_s0 + $0x1b8] sm:$0xff]  ;;  %v152_v49 = vld [vmem:[%s7071_s0 + $0x1c0] sm:$0xff] }
   0xb   :  { %4081 = vxpose.xlu1.b32.cont [2/16] %v4080_v11, 128  ;;  %v4655_v38 = vld [vmem:[%s7071_s0 + $0x30] sm:$0xff]  ;;  %v4205_v40 = vpack.i.bf16 %v134_v36, %v150_v37  ;;  %v4673_v44 = vld [vmem:[%s7071_s0 + $0x38] sm:$0xff]  ;;  %v4207_v46 = vpack.i.bf16 %v135_v42, %v151_v43  ;;  %v4691_v50 = vld [vmem:[%s7071_s0 + $0x40] sm:$0xff]  ;;  %v4209_v52 = vpack.i.bf16 %v136_v48, %v152_v49 }
   0xc   :  { %v4660_v39 = vld [vmem:[%s7071_s0 + $0xb0] sm:$0xff]  ;;  %v4678_v45 = vld [vmem:[%s7071_s0 + $0xb8] sm:$0xff]  ;;  %v4696_v51 = vld [vmem:[%s7071_s0 + $0xc0] sm:$0xff] }
   0xd   :  { %4198 = vxpose.xlu0.b32.cont [3/16] %v4197_v16, 128  ;;  %v4090_v41 = vpack.i.bf16 %v4655_v38, %v4660_v39  ;;  %v4092_v47 = vpack.i.bf16 %v4673_v44, %v4678_v45  ;;  %v4094_v53 = vpack.i.bf16 %v4691_v50, %v4696_v51  ;;  %v137_v54 = vld [vmem:[%s7071_s0 + $0x148] sm:$0xff] }
   0xe   :  { %v153_v55 = vld [vmem:[%s7071_s0 + $0x1c8] sm:$0xff] }
   0xf   :  { %4083 = vxpose.xlu1.b32.cont [3/16] %v4082_v17, 128 }
  0x11   :  { %4200 = vxpose.xlu0.b32.cont [4/16] %v4199_v22, 128 }
  0x13   :  { %4085 = vxpose.xlu1.b32.cont [4/16] %v4084_v23, 128 }
  0x15   :  { %4202 = vxpose.xlu0.b32.cont [5/16] %v4201_v28, 128 }
  0x17   :  { %4087 = vxpose.xlu1.b32.cont [5/16] %v4086_v29, 128 }
  0x19   :  { %4204 = vxpose.xlu0.b32.cont [6/16] %v4203_v34, 128 }
  0x1b   :  { %4089 = vxpose.xlu1.b32.cont [6/16] %v4088_v35, 128 }
  0x1d   :  { %4206 = vxpose.xlu0.b32.cont [7/16] %v4205_v40, 128 }
  0x1f   :  { %4091 = vxpose.xlu1.b32.cont [7/16] %v4090_v41, 128 }
  0x21   :  { %4208 = vxpose.xlu0.b32.cont [8/16] %v4207_v46, 128 }
  0x23   :  { %4093 = vxpose.xlu1.b32.cont [8/16] %v4092_v47, 128 }
  0x24   :  { %7 = vsyncpa [#allocation4], 0  ;;  %v4709_v56 = vld [vmem:[%s7071_s0 + $0x48] sm:$0xff]  ;;  %v4211_v58 = vpack.i.bf16 %v137_v54, %v153_v55  ;;  %v4721_v60 = vld [vmem:[%s7071_s0 + $0x150] sm:$0xff]  ;;  %v4516_v49 = vmov 0  }
  0x25   :  { %v4714_v57 = vld [vmem:[%s7071_s0 + $0xc8] sm:$0xff]  ;;  %4210 = vxpose.xlu0.b32.cont [9/16] %v4209_v52, 128  ;;  %7328 = vst [vmem:[#allocation7_spill] sm:$0xff] %v4721_v60  ;;  %v154_v61 = vld [vmem:[%s7071_s0 + $0x1d0] sm:$0xff]  ;;  %v4742_v3 = vld [vmem:[%s7071_s0 + $0x158] sm:$0xff] }
  0x26   :  { %7327 = vst [vmem:[#allocation6_spill] sm:$0xff] %v4714_v57  ;;  %v4096_v59 = vpack.i.bf16 %v4709_v56, %v4714_v57  ;;  %v4729_v62 = vld [vmem:[%s7071_s0 + $0x50] sm:$0xff]  ;;  %v4213_v0 = vpack.i.bf16 %v4721_v60, %v154_v61  ;;  %7330 = vst [vmem:[#allocation9_spill] sm:$0xff] %v4742_v3  ;;  %v155_v5 = vld [vmem:[%s7071_s0 + $0x1d8] sm:$0xff] }
  0x27   :  { %4095 = vxpose.xlu1.b32.cont [9/16] %v4094_v53, 128  ;;  %v4734_v63 = vld [vmem:[%s7071_s0 + $0xd0] sm:$0xff]  ;;  %v4750_v6 = vld [vmem:[%s7071_s0 + $0x58] sm:$0xff]  ;;  %v4215_v10 = vpack.i.bf16 %v4742_v3, %v155_v5  ;;  %v4763_v12 = vld [vmem:[%s7071_s0 + $0x160] sm:$0xff] }
  0x28   :  { %7329 = vst [vmem:[#allocation8_spill] sm:$0xff] %v4734_v63  ;;  %v4098_v1 = vpack.i.bf16 %v4729_v62, %v4734_v63  ;;  %v4755_v7 = vld [vmem:[%s7071_s0 + $0xd8] sm:$0xff]  ;;  %7332 = vst [vmem:[#allocation11_spill] sm:$0xff] %v4763_v12  ;;  %v156_v13 = vld [vmem:[%s7071_s0 + $0x1e0] sm:$0xff] }
  0x29   :  { %4212 = vxpose.xlu0.b32.cont [10/16] %v4211_v58, 128  ;;  %7331 = vst [vmem:[#allocation10_spill] sm:$0xff] %v4755_v7  ;;  %v4100_v11 = vpack.i.bf16 %v4750_v6, %v4755_v7  ;;  %v4771_v16 = vld [vmem:[%s7071_s0 + $0x60] sm:$0xff]  ;;  %v4217_v18 = vpack.i.bf16 %v4763_v12, %v156_v13  ;;  %v4784_v22 = vld [vmem:[%s7071_s0 + $0x168] sm:$0xff]  ;;  %v4805_v30 = vld [vmem:[%s7071_s0 + $0x170] sm:$0xff] }
  0x2a   :  { %v4776_v17 = vld [vmem:[%s7071_s0 + $0xe0] sm:$0xff]  ;;  %7334 = vst [vmem:[#allocation13_spill] sm:$0xff] %v4784_v22  ;;  %v157_v23 = vld [vmem:[%s7071_s0 + $0x1e8] sm:$0xff]  ;;  %7336 = vst [vmem:[#allocation15_spill] sm:$0xff] %v4805_v30 }
  0x2b   :  { %4097 = vxpose.xlu1.b32.cont [10/16] %v4096_v59, 128  ;;  %7333 = vst [vmem:[#allocation12_spill] sm:$0xff] %v4776_v17  ;;  %v4102_v19 = vpack.i.bf16 %v4771_v16, %v4776_v17  ;;  %v4792_v24 = vld [vmem:[%s7071_s0 + $0x68] sm:$0xff]  ;;  %v4219_v28 = vpack.i.bf16 %v4784_v22, %v157_v23  ;;  %v158_v31 = vld [vmem:[%s7071_s0 + $0x1f0] sm:$0xff]  ;;  %v4826_v40 = vld [vmem:[%s7071_s0 + $0x178] sm:$0xff] }
  0x2c   :  { %v4797_v25 = vld [vmem:[%s7071_s0 + $0xe8] sm:$0xff]  ;;  %v4813_v34 = vld [vmem:[%s7071_s0 + $0x70] sm:$0xff]  ;;  %v4221_v36 = vpack.i.bf16 %v4805_v30, %v158_v31  ;;  %7338 = vst [vmem:[#allocation17_spill] sm:$0xff] %v4826_v40  ;;  %v159_v41 = vld [vmem:[%s7071_s0 + $0x1f8] sm:$0xff] }
  0x2d   :  { %4214 = vxpose.xlu0.b32.cont [11/16] %v4213_v0, 128  ;;  %7335 = vst [vmem:[#allocation14_spill] sm:$0xff] %v4797_v25  ;;  %v4104_v29 = vpack.i.bf16 %v4792_v24, %v4797_v25  ;;  %v4818_v35 = vld [vmem:[%s7071_s0 + $0xf0] sm:$0xff]  ;;  %v4834_v42 = vld [vmem:[%s7071_s0 + $0x78] sm:$0xff]  ;;  %v4223_v46 = vpack.i.bf16 %v4826_v40, %v159_v41  ;;  %v4859_v53 = vld [vmem:[%s7072_s1 + $0x28] sm:$0xff] }
  0x2e   :  { %7337 = vst [vmem:[#allocation16_spill] sm:$0xff] %v4818_v35  ;;  %v4106_v37 = vpack.i.bf16 %v4813_v34, %v4818_v35  ;;  %v4839_v43 = vld [vmem:[%s7071_s0 + $0xf8] sm:$0xff]  ;;  %v4847_v48 = vld [vmem:[%s7072_s1 + $0x10] sm:$0xff]  ;;  %v4864_v54 = vld [vmem:[%s7072_s1] sm:$0xff] }
  0x2f   :  { %4099 = vxpose.xlu1.b32.cont [11/16] %v4098_v1, 128  ;;  %7339 = vst [vmem:[#allocation18_spill] sm:$0xff] %v4839_v43  ;;  %v4108_v47 = vpack.i.bf16 %v4834_v42, %v4839_v43  ;;  %v4853_v52 = vld [vmem:[%s7072_s1 + $0x18] sm:$0xff]  ;;  %v4876_v58 = vld [vmem:[%s7072_s1 + $0x8] sm:$0xff]  ;;  %v4888_v61 = vld [vmem:[%s7072_s1 + $0x20] sm:$0xff] }
  0x30   :  { %v4870_v55 = vld [vmem:[%s7072_s1 + $0x38] sm:$0xff]  ;;  %v4882_v59 = vld [vmem:[%s7072_s1 + $0x48] sm:$0xff]  ;;  %v4900_v1 = vld [vmem:[%s7072_s1 + $0x30] sm:$0xff] }
  0x31   :  { %4216 = vxpose.xlu0.b32.cont [12/16] %v4215_v10, 128  ;;  %v4894_v0 = vld [vmem:[%s7072_s1 + $0x58] sm:$0xff]  ;;  %v4906_v5 = vld [vmem:[%s7072_s1 + $0x68] sm:$0xff]  ;;  %v4912_v10 = vld [vmem:[%s7072_s1 + $0x40] sm:$0xff] }
  0x32   :  { %v4924_v13 = vld [vmem:[%s7072_s1 + $0x50] sm:$0xff]  ;;  %v4942_v23 = vld [vmem:[%s7072_s1 + $0x98] sm:$0xff]  ;;  %v4956_v31 = vld [vmem:[%s7072_s1 + $0xa8] sm:$0xff] }
  0x33   :  { %4101 = vxpose.xlu1.b32.cont [12/16] %v4100_v11, 128  ;;  %v4918_v11 = vld [vmem:[%s7072_s1 + $0x78] sm:$0xff]  ;;  %v4967_v41 = vld [vmem:[%s7072_s1 + $0x80] sm:$0xff]  ;;  %v5017_v3 = vld [vmem:[%s7072_s1 + $0xb0] sm:$0xff] }
  0x35   :  { %4218 = vxpose.xlu0.b32.cont [13/16] %v4217_v18, 128  ;;  %v4930_v18 = vld [vmem:[%s7072_s1 + $0x88] sm:$0xff] }
  0x37   :  { %4103 = vxpose.xlu1.b32.cont [13/16] %v4102_v19, 128  ;;  %v4936_v19 = vld [vmem:[%s7072_s1 + $0x60] sm:$0xff] }
  0x39   :  { %4220 = vxpose.xlu0.b32.cont [14/16] %v4219_v28, 128  ;;  %v4948_v28 = vld [vmem:[%s7072_s1 + $0x70] sm:$0xff] }
  0x3b   :  { %4105 = vxpose.xlu1.b32.cont [14/16] %v4104_v29, 128 }
  0x3d   :  { %4222 = vxpose.xlu0.b32.cont [15/16] %v4221_v36, 128 }
  0x3f   :  { %4107 = vxpose.xlu1.b32.cont [15/16] %v4106_v37, 128 }
  0x41   :  { %4224 = vxpose.xlu0.b32.end [16/16] %v4223_v46, 128 }
  0x43   :  { %4109 = vxpose.xlu1.b32.end [16/16] %v4108_v47, 128  ;;  %v4976_v47 = vld [vmem:[%s7072_s1 + $0xb8] sm:$0xff] }
  0x61   :  { %4190 = vset.pattern.permute.xlu1 %v4516_v49 }
  0x62   :  { %300 = vperm.xlu1 %4190, %v4847_v48  }
  0x66   :  { %305 = vperm.xlu1 %4190, %v4853_v52  }
  0x6a   :  { %315 = vperm.xlu1 %4190, %v4859_v53   ;;  %4305 = vset.pattern.permute.xlu0 %v4516_v49 }
  0x6b   :  { %290 = vperm.xlu0 %4305, %v4864_v54  }
  0x6e   :  { %325 = vperm.xlu1 %4190, %v4870_v55  }
  0x6f   :  { %295 = vperm.xlu0 %4305, %v4876_v58  }
  0x72   :  { %335 = vperm.xlu1 %4190, %v4882_v59  }
  0x73   :  { %310 = vperm.xlu0 %4305, %v4888_v61  }
  0x76   :  { %345 = vperm.xlu1 %4190, %v4894_v0  }
  0x77   :  { %320 = vperm.xlu0 %4305, %v4900_v1  }
  0x7a   :  { %355 = vperm.xlu1 %4190, %v4906_v5  }
  0x7b   :  { %330 = vperm.xlu0 %4305, %v4912_v10  }
  0x7e   :  { %365 = vperm.xlu1 %4190, %v4918_v11  }
  0x7f   :  { %340 = vperm.xlu0 %4305, %v4924_v13  }
  0x82   :  { %375 = vperm.xlu1 %4190, %v4930_v18  }
  0x83   :  { %350 = vperm.xlu0 %4305, %v4936_v19  }
  0x85   :  { %v4951_v29 = vpop.trf.xlu0 }
  0x86   :  { %385 = vperm.xlu1 %4190, %v4942_v23   ;;  %7340 = vst [vmem:[#allocation19_spill] sm:$0xff] %v4951_v29  ;;  %v4985_v29 = vld [vmem:[%s7072_s1 + $0x90] sm:$0xff] }
  0x87   :  { %v4958_v36 = vpop.trf.xlu1  ;;  %360 = vperm.xlu0 %4305, %v4948_v28  }
  0x88   :  { %7341 = vst [vmem:[#allocation20_spill] sm:$0xff] %v4958_v36  ;;  %v4962_v37 = vunpack.i.l.bf16 %v4958_v36 }
  0x89   :  { %v4971_v46 = vpop.trf.xlu0 }
  0x8a   :  { %7342 = vst [vmem:[#allocation21_spill] sm:$0xff] %v4962_v37  ;;  %395 = vperm.xlu1 %4190, %v4956_v31   ;;  %2480 = vmatprep.mubr.f32.mxu0 %v4962_v37  ;;  %7343 = vst [vmem:[#allocation22_spill] sm:$0xff] %v4971_v46  ;;  %v4993_v46 = vld [vmem:[%s7072_s1 + $0xc8] sm:$0xff] }
  0x8b   :  { %v4978_v49 = vpop.trf.xlu1  ;;  %2802 = vmatprep.mubr.f32.mxu1 %v4962_v37  ;;  %370 = vperm.xlu0 %4305, %v4967_v41   ;;  %v5001_v37 = vld [vmem:[%s7072_s1 + $0xa0] sm:$0xff] }
  0x8c   :  { %7344 = vst [vmem:[#allocation23_spill] sm:$0xff] %v4978_v49 }
  0x8d   :  { %v4988_v40 = vpop.trf.xlu0 }
  0x8e   :  { %405 = vperm.xlu1 %4190, %v4976_v47   ;;  %7345 = vst [vmem:[#allocation24_spill] sm:$0xff] %v4988_v40  ;;  %v5009_v40 = vld [vmem:[%s7072_s1 + $0xd8] sm:$0xff] }
  0x8f   :  { %v4995_v30 = vpop.trf.xlu1  ;;  %380 = vperm.xlu0 %4305, %v4985_v29   ;;  %7348 = vst [vmem:[#allocation27_spill] sm:$0xff] %v5009_v40 }
  0x90   :  { %7346 = vst [vmem:[#allocation25_spill] sm:$0xff] %v4995_v30 }
  0x91   :  { %v5004_v22 = vpop.trf.xlu0 }
  0x92   :  { %415 = vperm.xlu1 %4190, %v4993_v46   ;;  %7347 = vst [vmem:[#allocation26_spill] sm:$0xff] %v5004_v22  ;;  %v5025_v22 = vld [vmem:[%s7072_s1 + $0xe8] sm:$0xff] }
  0x93   :  { %v5011_v12 = vpop.trf.xlu1  ;;  %390 = vperm.xlu0 %4305, %v5001_v37   ;;  %7351 = vst [vmem:[#allocation30_spill] sm:$0xff] %v5025_v22 }
  0x94   :  { %7349 = vst [vmem:[#allocation28_spill] sm:$0xff] %v5011_v12  ;;  %v5033_v12 = vld [vmem:[%s7072_s1 + $0xc0] sm:$0xff] }
  0x95   :  { %v5020_v60 = vpop.trf.xlu0 }
  0x96   :  { %425 = vperm.xlu1 %4190, %v5009_v40   ;;  %7350 = vst [vmem:[#allocation29_spill] sm:$0xff] %v5020_v60  ;;  %v5041_v60 = vld [vmem:[%s7072_s1 + $0xf8] sm:$0xff] }
  0x97   :  { %v5027_v30 = vpop.trf.xlu1  ;;  %400 = vperm.xlu0 %4305, %v5017_v3   ;;  %7354 = vst [vmem:[#allocation33_spill] sm:$0xff] %v5041_v60 }
  0x98   :  { %7352 = vst [vmem:[#allocation31_spill] sm:$0xff] %v5027_v30  ;;  %v5049_v30 = vld [vmem:[%s7072_s1 + $0xd0] sm:$0xff] }
  0x99   :  { %v5036_v49 = vpop.trf.xlu0 }
  0x9a   :  { %435 = vperm.xlu1 %4190, %v5025_v22   ;;  %7353 = vst [vmem:[#allocation32_spill] sm:$0xff] %v5036_v49  ;;  %v5057_v49 = vld [vmem:[%s7072_s1 + $0x108] sm:$0xff] }
  0x9b   :  { %v5043_v36 = vpop.trf.xlu1  ;;  %410 = vperm.xlu0 %4305, %v5033_v12   ;;  %7357 = vst [vmem:[#allocation36_spill] sm:$0xff] %v5057_v49 }
  0x9c   :  { %7355 = vst [vmem:[#allocation34_spill] sm:$0xff] %v5043_v36  ;;  %v5065_v36 = vld [vmem:[%s7072_s1 + $0xe0] sm:$0xff] }
  0x9d   :  { %v5052_v43 = vpop.trf.xlu0 }
  0x9e   :  { %445 = vperm.xlu1 %4190, %v5041_v60   ;;  %7356 = vst [vmem:[#allocation35_spill] sm:$0xff] %v5052_v43  ;;  %v5073_v43 = vld [vmem:[%s7072_s1 + $0x118] sm:$0xff] }
  0x9f   :  { %v5059_v35 = vpop.trf.xlu1  ;;  %420 = vperm.xlu0 %4305, %v5049_v30   ;;  %7360 = vst [vmem:[#allocation39_spill] sm:$0xff] %v5073_v43 }
  0xa0   :  { %7358 = vst [vmem:[#allocation37_spill] sm:$0xff] %v5059_v35  ;;  %v5081_v35 = vld [vmem:[%s7072_s1 + $0xf0] sm:$0xff] }
  0xa1   :  { %v5068_v25 = vpop.trf.xlu0  ;;  %7362 = vst [vmem:[#allocation41_spill] sm:$0xff] %v5081_v35 }
  0xa2   :  { %455 = vperm.xlu1 %4190, %v5057_v49   ;;  %7359 = vst [vmem:[#allocation38_spill] sm:$0xff] %v5068_v25  ;;  %v5089_v25 = vld [vmem:[%s7072_s1 + $0x128] sm:$0xff] }
  0xa3   :  { %v5075_v60 = vpop.trf.xlu1  ;;  %430 = vperm.xlu0 %4305, %v5065_v36   ;;  %7364 = vst [vmem:[#allocation43_spill] sm:$0xff] %v5089_v25 }
  0xa4   :  { %7361 = vst [vmem:[#allocation40_spill] sm:$0xff] %v5075_v60  ;;  %v5097_v60 = vld [vmem:[%s7072_s1 + $0x100] sm:$0xff] }
  0xa5   :  { %v5084_v22 = vpop.trf.xlu0  ;;  %7366 = vst [vmem:[#allocation45_spill] sm:$0xff] %v5097_v60 }
  0xa6   :  { %465 = vperm.xlu1 %4190, %v5073_v43   ;;  %7363 = vst [vmem:[#allocation42_spill] sm:$0xff] %v5084_v22  ;;  %v5105_v22 = vld [vmem:[%s7072_s1 + $0x138] sm:$0xff] }
  0xa7   :  { %v5091_v49 = vpop.trf.xlu1  ;;  %440 = vperm.xlu0 %4305, %v5081_v35   ;;  %7368 = vst [vmem:[#allocation47_spill] sm:$0xff] %v5105_v22 }
  0xa8   :  { %7365 = vst [vmem:[#allocation44_spill] sm:$0xff] %v5091_v49  ;;  %v5113_v49 = vld [vmem:[%s7072_s1 + $0x110] sm:$0xff] }
  0xa9   :  { %v5100_v17 = vpop.trf.xlu0  ;;  %7370 = vst [vmem:[#allocation49_spill] sm:$0xff] %v5113_v49 }
  0xaa   :  { %475 = vperm.xlu1 %4190, %v5089_v25   ;;  %7367 = vst [vmem:[#allocation46_spill] sm:$0xff] %v5100_v17  ;;  %v5121_v17 = vld [vmem:[%s7072_s1 + $0x148] sm:$0xff] }
  0xab   :  { %v5107_v43 = vpop.trf.xlu1  ;;  %450 = vperm.xlu0 %4305, %v5097_v60   ;;  %7372 = vst [vmem:[#allocation51_spill] sm:$0xff] %v5121_v17 }
  0xac   :  { %7369 = vst [vmem:[#allocation48_spill] sm:$0xff] %v5107_v43  ;;  %v5129_v43 = vld [vmem:[%s7072_s1 + $0x120] sm:$0xff] }
  0xad   :  { %v5116_v7 = vpop.trf.xlu0  ;;  %7374 = vst [vmem:[#allocation53_spill] sm:$0xff] %v5129_v43 }
  0xae   :  { %485 = vperm.xlu1 %4190, %v5105_v22   ;;  %7371 = vst [vmem:[#allocation50_spill] sm:$0xff] %v5116_v7  ;;  %v5137_v7 = vld [vmem:[%s7072_s1 + $0x158] sm:$0xff] }
  0xaf   :  { %v5123_v25 = vpop.trf.xlu1  ;;  %460 = vperm.xlu0 %4305, %v5113_v49   ;;  %7376 = vst [vmem:[#allocation55_spill] sm:$0xff] %v5137_v7 }
  0xb0   :  { %7373 = vst [vmem:[#allocation52_spill] sm:$0xff] %v5123_v25  ;;  %v5145_v25 = vld [vmem:[%s7072_s1 + $0x130] sm:$0xff] }
  0xb1   :  { %v5132_v60 = vpop.trf.xlu0  ;;  %7378 = vst [vmem:[#allocation57_spill] sm:$0xff] %v5145_v25 }
  0xb2   :  { %495 = vperm.xlu1 %4190, %v5121_v17   ;;  %7375 = vst [vmem:[#allocation54_spill] sm:$0xff] %v5132_v60  ;;  %v5153_v60 = vld [vmem:[%s7072_s1 + $0x168] sm:$0xff] }
  0xb3   :  { %v5139_v22 = vpop.trf.xlu1  ;;  %470 = vperm.xlu0 %4305, %v5129_v43   ;;  %7380 = vst [vmem:[#allocation59_spill] sm:$0xff] %v5153_v60 }
  0xb4   :  { %7377 = vst [vmem:[#allocation56_spill] sm:$0xff] %v5139_v22  ;;  %v5161_v22 = vld [vmem:[%s7072_s1 + $0x140] sm:$0xff] }
  0xb5   :  { %v5148_v49 = vpop.trf.xlu0  ;;  %7382 = vst [vmem:[#allocation61_spill] sm:$0xff] %v5161_v22 }
  0xb6   :  { %505 = vperm.xlu1 %4190, %v5137_v7   ;;  %7379 = vst [vmem:[#allocation58_spill] sm:$0xff] %v5148_v49  ;;  %v5169_v49 = vld [vmem:[%s7072_s1 + $0x178] sm:$0xff] }
  0xb7   :  { %v5155_v17 = vpop.trf.xlu1  ;;  %480 = vperm.xlu0 %4305, %v5145_v25   ;;  %7384 = vst [vmem:[#allocation63_spill] sm:$0xff] %v5169_v49 }
  0xb8   :  { %7381 = vst [vmem:[#allocation60_spill] sm:$0xff] %v5155_v17  ;;  %v5177_v17 = vld [vmem:[%s7072_s1 + $0x150] sm:$0xff] }
  0xb9   :  { %v5164_v43 = vpop.trf.xlu0  ;;  %7386 = vst [vmem:[#allocation65_spill] sm:$0xff] %v5177_v17 }
  0xba   :  { %515 = vperm.xlu1 %4190, %v5153_v60   ;;  %7383 = vst [vmem:[#allocation62_spill] sm:$0xff] %v5164_v43  ;;  %v5185_v43 = vld [vmem:[%s7072_s1 + $0x188] sm:$0xff] }
  0xbb   :  { %v5171_v7 = vpop.trf.xlu1  ;;  %490 = vperm.xlu0 %4305, %v5161_v22   ;;  %7388 = vst [vmem:[#allocation67_spill] sm:$0xff] %v5185_v43 }
  0xbc   :  { %7385 = vst [vmem:[#allocation64_spill] sm:$0xff] %v5171_v7  ;;  %v5193_v7 = vld [vmem:[%s7072_s1 + $0x160] sm:$0xff] }
  0xbd   :  { %v5180_v25 = vpop.trf.xlu0  ;;  %7390 = vst [vmem:[#allocation69_spill] sm:$0xff] %v5193_v7 }
  0xbe   :  { %525 = vperm.xlu1 %4190, %v5169_v49   ;;  %7387 = vst [vmem:[#allocation66_spill] sm:$0xff] %v5180_v25  ;;  %v5201_v25 = vld [vmem:[%s7072_s1 + $0x198] sm:$0xff] }
  0xbf   :  { %v5187_v60 = vpop.trf.xlu1  ;;  %500 = vperm.xlu0 %4305, %v5177_v17   ;;  %7392 = vst [vmem:[#allocation71_spill] sm:$0xff] %v5201_v25  ;;  %v5295_v17 = vld [vmem:[%s7072_s1 + $0x1f0] sm:$0xff] }
  0xc0   :  { %7389 = vst [vmem:[#allocation68_spill] sm:$0xff] %v5187_v60  ;;  %v5209_v60 = vld [vmem:[%s7072_s1 + $0x170] sm:$0xff]  ;;  %7408 = vst [vmem:[#allocation87_spill] sm:$0xff] %v5295_v17 }
  0xc1   :  { %v5196_v22 = vpop.trf.xlu0  ;;  %7394 = vst [vmem:[#allocation73_spill] sm:$0xff] %v5209_v60 }
  0xc2   :  { %535 = vperm.xlu1 %4190, %v5185_v43   ;;  %7391 = vst [vmem:[#allocation70_spill] sm:$0xff] %v5196_v22  ;;  %v5215_v22 = vld [vmem:[%s7072_s1 + $0x1a8] sm:$0xff]  ;;  %v5227_v43 = vld [vmem:[%s7072_s1 + $0x1b8] sm:$0xff] }
  0xc3   :  { %v5203_v49 = vpop.trf.xlu1  ;;  %510 = vperm.xlu0 %4305, %v5193_v7   ;;  %7395 = vst [vmem:[#allocation74_spill] sm:$0xff] %v5215_v22  ;;  %7397 = vst [vmem:[#allocation76_spill] sm:$0xff] %v5227_v43  ;;  %v4517_v7 = vmov 1  }
  0xc4   :  { %7393 = vst [vmem:[#allocation72_spill] sm:$0xff] %v5203_v49  ;;  %v5221_v49 = vld [vmem:[%s7072_s1 + $0x180] sm:$0xff] }
  0xc5   :  { %7396 = vst [vmem:[#allocation75_spill] sm:$0xff] %v5221_v49 }
  0xc6   :  { %545 = vperm.xlu1 %4190, %v5201_v25   ;;  %v5233_v25 = vld [vmem:[%s7072_s1 + $0x190] sm:$0xff] }
  0xc7   :  { %520 = vperm.xlu0 %4305, %v5209_v60   ;;  %7398 = vst [vmem:[#allocation77_spill] sm:$0xff] %v5233_v25  ;;  %v5239_v60 = vld [vmem:[%s7072_s1 + $0x1c8] sm:$0xff] }
  0xc8   :  { %7399 = vst [vmem:[#allocation78_spill] sm:$0xff] %v5239_v60 }
  0xca   :  { %555 = vperm.xlu1 %4190, %v5215_v22   ;;  %v5245_v22 = vld [vmem:[%s7072_s1 + $0x1a0] sm:$0xff] }
  0xcb   :  { %530 = vperm.xlu0 %4305, %v5221_v49   ;;  %7400 = vst [vmem:[#allocation79_spill] sm:$0xff] %v5245_v22  ;;  %v5251_v49 = vld [vmem:[%s7072_s1 + $0x1d8] sm:$0xff] }
  0xcc   :  { %7401 = vst [vmem:[#allocation80_spill] sm:$0xff] %v5251_v49 }
  0xce   :  { %565 = vperm.xlu1 %4190, %v5227_v43   ;;  %v5257_v43 = vld [vmem:[%s7072_s1 + $0x1b0] sm:$0xff] }
  0xcf   :  { %540 = vperm.xlu0 %4305, %v5233_v25   ;;  %7402 = vst [vmem:[#allocation81_spill] sm:$0xff] %v5257_v43  ;;  %v5263_v25 = vld [vmem:[%s7072_s1 + $0x1e8] sm:$0xff] }
  0xd0   :  { %7403 = vst [vmem:[#allocation82_spill] sm:$0xff] %v5263_v25 }
  0xd2   :  { %575 = vperm.xlu1 %4190, %v5239_v60   ;;  %v5269_v60 = vld [vmem:[%s7072_s1 + $0x1c0] sm:$0xff] }
  0xd3   :  { %550 = vperm.xlu0 %4305, %v5245_v22   ;;  %7404 = vst [vmem:[#allocation83_spill] sm:$0xff] %v5269_v60  ;;  %v5275_v22 = vld [vmem:[%s7072_s1 + $0x1f8] sm:$0xff] }
  0xd4   :  { %7405 = vst [vmem:[#allocation84_spill] sm:$0xff] %v5275_v22 }
  0xd6   :  { %585 = vperm.xlu1 %4190, %v5251_v49   ;;  %v5281_v49 = vld [vmem:[%s7072_s1 + $0x1d0] sm:$0xff] }
  0xd7   :  { %560 = vperm.xlu0 %4305, %v5257_v43   ;;  %7406 = vst [vmem:[#allocation85_spill] sm:$0xff] %v5281_v49 }
  0xda   :  { %595 = vperm.xlu1 %4190, %v5263_v25   ;;  %v5288_v25 = vld [vmem:[%s7072_s1 + $0x1e0] sm:$0xff] }
  0xdb   :  { %570 = vperm.xlu0 %4305, %v5269_v60   ;;  %7407 = vst [vmem:[#allocation86_spill] sm:$0xff] %v5288_v25 }
  0xde   :  { %605 = vperm.xlu1 %4190, %v5275_v22  }
  0xdf   :  { %580 = vperm.xlu0 %4305, %v5281_v49  }
  0xe1   :  { %v301_v43 = vpop.permute.xlu1 %300 }
  0xe2   :  { %4191 = vset.pattern.permute.xlu1 %v4517_v7 }
  0xe3   :  { %741 = vperm.xlu1 %4191, %v4876_v58   ;;  %590 = vperm.xlu0 %4305, %v5288_v25   ;;  %v610_v25 = vmul.f32 %v301_v43, %v4583_v14 }
  0xe5   :  { %v306_v60 = vpop.permute.xlu1 %305 }
  0xe6   :  { %v611_v63 = vmul.f32 %v306_v60, %v4601_v20  ;;  %v3692_v60 = vpack.c.bf16 %v4601_v20, %v4583_v14 }
  0xe7   :  { %745 = vperm.xlu1 %4191, %v4847_v48   ;;  %600 = vperm.xlu0 %4305, %v5295_v17  }
  0xe9   :  { %v316_v22 = vpop.permute.xlu1 %315 }
  0xea   :  { %v291_v49 = vpop.permute.xlu0 %290 }
  0xeb   :  { %753 = vperm.xlu1 %4191, %v4888_v61   ;;  %4306 = vset.pattern.permute.xlu0 %v4517_v7  ;;  %v608_v35 = vmul.f32 %v291_v49, %v4547_v2  ;;  %v3688_v7 = vpack.c.bf16 %v4565_v8, %v4547_v2 }
  0xec   :  { %737 = vperm.xlu0 %4306, %v4864_v54  }
  0xed   :  { %v326_v40 = vpop.permute.xlu1 %325 }
  0xee   :  { %v296_v58 = vpop.permute.xlu0 %295 }
  0xef   :  { %761 = vperm.xlu1 %4191, %v4900_v1   ;;  %v609_v48 = vmul.f32 %v296_v58, %v4565_v8  ;;  %v3690_v1 = vpack.c.bf16 %v611_v63, %v610_v25  ;;  %v3696_v25 = vpack.c.bf16 %v4637_v32, %v4619_v26 }
  0xf0   :  { %749 = vperm.xlu0 %4306, %v4853_v52   ;;  %v613_v52 = vmul.f32 %v316_v22, %v4637_v32 }
  0xf1   :  { %v336_v17 = vpop.permute.xlu1 %335  ;;  %v3686_v61 = vpack.c.bf16 %v609_v48, %v608_v35 }
  0xf2   :  { %v311_v54 = vpop.permute.xlu0 %310 }
  0xf3   :  { %769 = vperm.xlu1 %4191, %v4912_v10   ;;  %v612_v57 = vmul.f32 %v311_v54, %v4619_v26  ;;  %3687 = vmatprep.subr.bf16.mxu0 %v3686_v61 }
  0xf4   :  { %757 = vperm.xlu0 %4306, %v4859_v53   ;;  %3689 = vmatpush1.bf16.msra.mxu0 %v3688_v7  ;;  %v615_v53 = vmul.f32 %v326_v40, %v4673_v44 }
  0xf5   :  { %v346_v43 = vpop.permute.xlu1 %345  ;;  %3691 = vmatprep.subr.bf16.mxu0 %v3690_v1  ;;  %v3694_v8 = vpack.c.bf16 %v613_v52, %v612_v57  ;;  %v3700_v57 = vpack.c.bf16 %v4673_v44, %v4655_v38 }
  0xf6   :  { %v321_v2 = vpop.permute.xlu0 %320 }
  0xf7   :  { %777 = vperm.xlu1 %4191, %v4924_v13   ;;  %v614_v35 = vmul.f32 %v321_v2, %v4655_v38 }
  0xf8   :  { %765 = vperm.xlu0 %4306, %v4870_v55   ;;  %3693 = vmatpush1.bf16.msra.mxu0 %v3692_v60  ;;  %v617_v55 = vmul.f32 %v336_v17, %v4709_v56 }
  0xf9   :  { %v356_v63 = vpop.permute.xlu1 %355  ;;  %3695 = vmatprep.subr.bf16.mxu0 %v3694_v8  ;;  %v3698_v20 = vpack.c.bf16 %v615_v53, %v614_v35  ;;  %v7409_v35 = vld [vmem:[#allocation6_spill] sm:$0xff]  ;;  %v7411_v53 = vld [vmem:[#allocation8_spill] sm:$0xff] }
  0xfa   :  { %v331_v14 = vpop.permute.xlu0 %330  ;;  %v621_v49 = vmul.f32 %v356_v63, %v4792_v24 }
  0xfb   :  { %785 = vperm.xlu1 %4191, %v4936_v19   ;;  %v616_v22 = vmul.f32 %v331_v14, %v4691_v50  ;;  %v619_v19 = vmul.f32 %v346_v43, %v4750_v6 }
  0xfc   :  { %773 = vperm.xlu0 %4306, %v4882_v59   ;;  %3697 = vmatpush1.bf16.msra.mxu0 %v3696_v25  ;;  %v3704_v59 = vpack.c.bf16 %v4709_v56, %v4691_v50 }
  0xfd   :  { %v366_v10 = vpop.permute.xlu1 %365  ;;  %3699 = vmatprep.subr.bf16.mxu0 %v3698_v20  ;;  %v3702_v32 = vpack.c.bf16 %v617_v55, %v616_v22  ;;  %v7412_v20 = vld [vmem:[#allocation27_spill] sm:$0xff]  ;;  %v7413_v22 = vld [vmem:[#allocation10_spill] sm:$0xff]  ;;  %v7415_v55 = vld [vmem:[#allocation12_spill] sm:$0xff] }
  0xfe   :  { %v341_v26 = vpop.permute.xlu0 %340  ;;  %v623_v48 = vmul.f32 %v366_v10, %v4834_v42 }
  0xff   :  { %793 = vperm.xlu1 %4191, %v4948_v28   ;;  %v618_v40 = vmul.f32 %v341_v26, %v4729_v62 }
 0x100   :  { %781 = vperm.xlu0 %4306, %v4894_v0   ;;  %3701 = vmatpush1.bf16.msra.mxu0 %v3700_v57  ;;  %v3708_v0 = vpack.c.bf16 %v4750_v6, %v4729_v62 }
 0x101   :  { %v376_v13 = vpop.permute.xlu1 %375  ;;  %3703 = vmatprep.subr.bf16.mxu0 %v3702_v32  ;;  %v3706_v44 = vpack.c.bf16 %v619_v19, %v618_v40  ;;  %v7416_v40 = vld [vmem:[#allocation30_spill] sm:$0xff] }
 0x102   :  { %v351_v38 = vpop.permute.xlu0 %350  ;;  %v625_v61 = vmul.f32 %v376_v13, %v4570_v9  ;;  %v3740_v13 = vpack.c.bf16 %v7413_v22, %v7411_v53 }
 0x103   :  { %801 = vperm.xlu1 %4191, %v4967_v41   ;;  %v620_v17 = vmul.f32 %v351_v38, %v4771_v16 }
 0x104   :  { %789 = vperm.xlu0 %4306, %v4906_v5   ;;  %3705 = vmatpush1.bf16.msra.mxu0 %v3704_v59  ;;  %v3712_v5 = vpack.c.bf16 %v4792_v24, %v4771_v16  ;;  %v7417_v59 = vld [vmem:[#allocation14_spill] sm:$0xff] }
 0x105   :  { %v386_v28 = vpop.permute.xlu1 %385  ;;  %3707 = vmatprep.subr.bf16.mxu0 %v3706_v44  ;;  %v3710_v56 = vpack.c.bf16 %v621_v49, %v620_v17  ;;  %v7419_v17 = vld [vmem:[#allocation16_spill] sm:$0xff]  ;;  %v7420_v49 = vld [vmem:[#allocation33_spill] sm:$0xff] }
 0x106   :  { %v361_v50 = vpop.permute.xlu0 %360  ;;  %v627_v1 = vmul.f32 %v386_v28, %v4606_v21 }
 0x107   :  { %809 = vperm.xlu1 %4191, %v4985_v29   ;;  %v622_v41 = vmul.f32 %v361_v50, %v4813_v34  ;;  %v3744_v50 = vpack.c.bf16 %v7417_v59, %v7415_v55 }
 0x108   :  { %797 = vperm.xlu0 %4306, %v4918_v11   ;;  %3709 = vmatpush1.bf16.msra.mxu0 %v3708_v0  ;;  %v3716_v11 = vpack.c.bf16 %v4834_v42, %v4813_v34 }
 0x109   :  { %v396_v58 = vpop.permute.xlu1 %395  ;;  %3711 = vmatprep.subr.bf16.mxu0 %v3710_v56  ;;  %v3714_v6 = vpack.c.bf16 %v623_v48, %v622_v41  ;;  %v7421_v56 = vld [vmem:[#allocation18_spill] sm:$0xff] }
 0x10a   :  { %v371_v62 = vpop.permute.xlu0 %370  ;;  %v629_v60 = vmul.f32 %v396_v58, %v4642_v33  ;;  %v7422_v58 = vld [vmem:[#allocation53_spill] sm:$0xff] }
 0x10b   :  { %817 = vperm.xlu1 %4191, %v5001_v37   ;;  %v624_v29 = vmul.f32 %v371_v62, %v4552_v4  ;;  %v4310_v62 = vld [vmem:[%s7071_s0 + $0x100] sm:$0xff] }
 0x10c   :  { %805 = vperm.xlu0 %4306, %v4930_v18   ;;  %3713 = vmatpush1.bf16.msra.mxu0 %v3712_v5  ;;  %v3720_v18 = vpack.c.bf16 %v4570_v9, %v4552_v4 }
 0x10d   :  { %v406_v7 = vpop.permute.xlu1 %405  ;;  %3715 = vmatprep.subr.bf16.mxu0 %v3714_v6  ;;  %v3718_v24 = vpack.c.bf16 %v625_v61, %v624_v29  ;;  %v4311_v61 = vld [vmem:[%s7071_s0 + $0x108] sm:$0xff] }
 0x10e   :  { %v381_v16 = vpop.permute.xlu0 %380  ;;  %v631_v2 = vmul.f32 %v406_v7, %v4678_v45  ;;  %v7423_v7 = vld [vmem:[#allocation36_spill] sm:$0xff] }
 0x10f   :  { %825 = vperm.xlu1 %4191, %v5017_v3   ;;  %v626_v37 = vmul.f32 %v381_v16, %v4588_v15 }
 0x110   :  { %813 = vperm.xlu0 %4306, %v4942_v23   ;;  %3717 = vmatpush1.bf16.msra.mxu0 %v3716_v11  ;;  %v3724_v23 = vpack.c.bf16 %v4606_v21, %v4588_v15  ;;  %v3748_v11 = vpack.c.bf16 %v7421_v56, %v7419_v17 }
 0x111   :  { %v416_v54 = vpop.permute.xlu1 %415  ;;  %3719 = vmatprep.subr.bf16.mxu0 %v3718_v24  ;;  %v3722_v42 = vpack.c.bf16 %v627_v1, %v626_v37  ;;  %v7424_v24 = vld [vmem:[#allocation57_spill] sm:$0xff] }
 0x112   :  { %v391_v34 = vpop.permute.xlu0 %390  ;;  %v633_v63 = vmul.f32 %v416_v54, %v7409_v35 }
 0x113   :  { %833 = vperm.xlu1 %4191, %v5033_v12   ;;  %v628_v3 = vmul.f32 %v391_v34, %v4624_v27 }
 0x114   :  { %821 = vperm.xlu0 %4306, %v4956_v31   ;;  %3721 = vmatpush1.bf16.msra.mxu0 %v3720_v18  ;;  %v3728_v31 = vpack.c.bf16 %v4642_v33, %v4624_v27  ;;  %v7410_v27 = vld [vmem:[#allocation41_spill] sm:$0xff]  ;;  %v4312_v18 = vld [vmem:[%s7071_s0 + $0x110] sm:$0xff] }
 0x115   :  { %v426_v43 = vpop.permute.xlu1 %425  ;;  %3723 = vmatprep.subr.bf16.mxu0 %v3722_v42  ;;  %v3726_v9 = vpack.c.bf16 %v629_v60, %v628_v3  ;;  %v7425_v42 = vld [vmem:[#allocation39_spill] sm:$0xff]  ;;  %v7426_v3 = vld [vmem:[#allocation20_spill] sm:$0xff]  ;;  %v4313_v60 = vld [vmem:[%s7071_s0 + $0x118] sm:$0xff] }
 0x116   :  { %v401_v4 = vpop.permute.xlu0 %400  ;;  %v635_v10 = vmul.f32 %v426_v43, %v7413_v22  ;;  %v5409_v43 = vunpack.i.h.bf16 %v7426_v3 }
 0x117   :  { %841 = vperm.xlu1 %4191, %v5049_v30   ;;  %v630_v12 = vmul.f32 %v401_v4, %v4660_v39 }
 0x118   :  { %829 = vperm.xlu0 %4306, %v4976_v47   ;;  %3725 = vmatpush1.bf16.msra.mxu0 %v3724_v23  ;;  %v3732_v47 = vpack.c.bf16 %v4678_v45, %v4660_v39  ;;  %v7414_v39 = vld [vmem:[#allocation45_spill] sm:$0xff]  ;;  %7427 = vst [vmem:[#allocation6_spill] sm:$0xff] %v5409_v43  ;;  %v3752_v23 = vpack.c.bf16 %v4311_v61, %v4310_v62 }
 0x119   :  { %v436_v52 = vpop.permute.xlu1 %435  ;;  %3727 = vmatprep.subr.bf16.mxu0 %v3726_v9  ;;  %v3730_v21 = vpack.c.bf16 %v631_v2, %v630_v12  ;;  %v7428_v9 = vld [vmem:[#allocation61_spill] sm:$0xff] }
 0x11a   :  { %v411_v15 = vpop.permute.xlu0 %410  ;;  %v637_v19 = vmul.f32 %v436_v52, %v7417_v59  ;;  %v7429_v52 = vld [vmem:[#allocation23_spill] sm:$0xff] }
 0x11b   :  { %849 = vperm.xlu1 %4191, %v5065_v36   ;;  %v632_v30 = vmul.f32 %v411_v15, %v4696_v51  ;;  %v4314_v15 = vld [vmem:[%s7071_s0 + $0x120] sm:$0xff] }
 0x11c   :  { %837 = vperm.xlu0 %4306, %v4993_v46   ;;  %3729 = vmatpush1.bf16.msra.mxu0 %v3728_v31  ;;  %v3736_v46 = vpack.c.bf16 %v7409_v35, %v4696_v51  ;;  %v7418_v51 = vld [vmem:[#allocation49_spill] sm:$0xff]  ;;  %v5416_v31 = vunpack.i.l.bf16 %v7429_v52  ;;  %v3756_v35 = vpack.c.bf16 %v4313_v60, %v4312_v18 }
 0x11d   :  { %v446_v8 = vpop.permute.xlu1 %445  ;;  %3731 = vmatprep.subr.bf16.mxu0 %v3730_v21  ;;  %v3734_v25 = vpack.c.bf16 %v633_v63, %v632_v30  ;;  %v4315_v63 = vld [vmem:[%s7071_s0 + $0x128] sm:$0xff] }
 0x11e   :  { %v421_v33 = vpop.permute.xlu0 %420  ;;  %v639_v41 = vmul.f32 %v446_v8, %v7421_v56  ;;  %7430 = vst [vmem:[#allocation41_spill] sm:$0xff] %v5416_v31  ;;  %v7431_v8 = vld [vmem:[#allocation43_spill] sm:$0xff] }
 0x11f   :  { %857 = vperm.xlu1 %4191, %v7410_v27   ;;  %v634_v36 = vmul.f32 %v421_v33, %v7411_v53  ;;  %v7433_v33 = vld [vmem:[#allocation65_spill] sm:$0xff] }
 0x120   :  { %845 = vperm.xlu0 %4306, %v7412_v20   ;;  %3733 = vmatpush1.bf16.msra.mxu0 %v3732_v47  ;;  %v5425_v47 = vunpack.i.h.bf16 %v7429_v52  ;;  %v7434_v53 = vld [vmem:[#allocation25_spill] sm:$0xff]  ;;  %v4316_v20 = vld [vmem:[%s7071_s0 + $0x130] sm:$0xff] }
 0x121   :  { %v456_v14 = vpop.permute.xlu1 %455  ;;  %3735 = vmatprep.subr.bf16.mxu0 %v3734_v25  ;;  %v3738_v57 = vpack.c.bf16 %v635_v10, %v634_v36  ;;  %v5432_v36 = vunpack.i.l.bf16 %v7434_v53  ;;  %v7436_v10 = vld [vmem:[#allocation47_spill] sm:$0xff]  ;;  %v7456_v52 = vld [vmem:[#allocation13_spill] sm:$0xff] }
 0x122   :  { %v431_v45 = vpop.permute.xlu0 %430  ;;  %v641_v16 = vmul.f32 %v4311_v61, %v456_v14  ;;  %7432 = vst [vmem:[#allocation8_spill] sm:$0xff] %v5425_v47  ;;  %v7449_v61 = vld [vmem:[#allocation9_spill] sm:$0xff] }
 0x123   :  { %865 = vperm.xlu1 %4191, %v7414_v39   ;;  %v636_v26 = vmul.f32 %v431_v45, %v7415_v55  ;;  %7435 = vst [vmem:[#allocation27_spill] sm:$0xff] %v5432_v36  ;;  %v5441_v39 = vunpack.i.h.bf16 %v7434_v53  ;;  %v3760_v45 = vpack.c.bf16 %v4315_v63, %v4314_v15 }
 0x124   :  { %853 = vperm.xlu0 %4306, %v7416_v40   ;;  %3737 = vmatpush1.bf16.msra.mxu0 %v3736_v46  ;;  %v7439_v40 = vld [vmem:[#allocation28_spill] sm:$0xff] }
 0x125   :  { %v466_v32 = vpop.permute.xlu1 %465  ;;  %3739 = vmatprep.subr.bf16.mxu0 %v3738_v57  ;;  %v3742_v44 = vpack.c.bf16 %v637_v19, %v636_v26  ;;  %7437 = vst [vmem:[#allocation10_spill] sm:$0xff] %v5441_v39  ;;  %v4317_v57 = vld [vmem:[%s7071_s0 + $0x138] sm:$0xff]  ;;  %v4318_v19 = vld [vmem:[%s7071_s0 + $0x140] sm:$0xff] }
 0x126   :  { %v441_v38 = vpop.permute.xlu0 %440  ;;  %v643_v4 = vmul.f32 %v4313_v60, %v466_v32  ;;  %v7438_v26 = vld [vmem:[#allocation69_spill] sm:$0xff] }
 0x127   :  { %873 = vperm.xlu1 %4191, %v7418_v51   ;;  %v638_v28 = vmul.f32 %v441_v38, %v7419_v17  ;;  %v5457_v17 = vunpack.i.h.bf16 %v7439_v40 }
 0x128   :  { %861 = vperm.xlu0 %4306, %v7420_v49   ;;  %3741 = vmatpush1.bf16.msra.mxu0 %v3740_v13  ;;  %v5448_v13 = vunpack.i.l.bf16 %v7439_v40  ;;  %v4324_v40 = vld [vmem:[%s7071_s0 + $0x180] sm:$0xff] }
 0x129   :  { %v476_v0 = vpop.permute.xlu1 %475  ;;  %3743 = vmatprep.subr.bf16.mxu0 %v3742_v44  ;;  %v3746_v48 = vpack.c.bf16 %v639_v41, %v638_v28  ;;  %v7441_v44 = vld [vmem:[#allocation51_spill] sm:$0xff]  ;;  %7442 = vst [vmem:[#allocation12_spill] sm:$0xff] %v5457_v17  ;;  %v3764_v28 = vpack.c.bf16 %v4317_v57, %v4316_v20 }
 0x12a   :  { %v451_v5 = vpop.permute.xlu0 %450  ;;  %v645_v27 = vmul.f32 %v4315_v63, %v476_v0  ;;  %7440 = vst [vmem:[#allocation45_spill] sm:$0xff] %v5448_v13  ;;  %v4319_v0 = vld [vmem:[%s7071_s0 + $0x148] sm:$0xff] }
 0x12b   :  { %881 = vperm.xlu1 %4191, %v7422_v58   ;;  %v640_v6 = vmul.f32 %v4310_v62, %v451_v5  ;;  %v7444_v41 = vld [vmem:[#allocation31_spill] sm:$0xff] }
 0x12c   :  { %869 = vperm.xlu0 %4306, %v7423_v7   ;;  %3745 = vmatpush1.bf16.msra.mxu0 %v3744_v50  ;;  %v7443_v50 = vld [vmem:[#allocation73_spill] sm:$0xff]  ;;  %v5464_v58 = vunpack.i.l.bf16 %v7444_v41  ;;  %v5471_v7 = vunpack.i.h.bf16 %v7444_v41  ;;  %v7460_v63 = vld [vmem:[#allocation15_spill] sm:$0xff] }
 0x12d   :  { %v486_v29 = vpop.permute.xlu1 %485  ;;  %3747 = vmatprep.subr.bf16.mxu0 %v3746_v48  ;;  %v3750_v54 = vpack.c.bf16 %v641_v16, %v640_v6  ;;  %v7446_v48 = vld [vmem:[#allocation7_spill] sm:$0xff] }
 0x12e   :  { %v461_v37 = vpop.permute.xlu0 %460  ;;  %v647_v55 = vmul.f32 %v4317_v57, %v486_v29  ;;  %7445 = vst [vmem:[#allocation30_spill] sm:$0xff] %v5464_v58  ;;  %v7447_v29 = vld [vmem:[#allocation55_spill] sm:$0xff]  ;;  %7448 = vst [vmem:[#allocation14_spill] sm:$0xff] %v5471_v7 }
 0x12f   :  { %889 = vperm.xlu1 %4191, %v7424_v24   ;;  %v642_v1 = vmul.f32 %v4312_v18, %v461_v37  ;;  %v7450_v24 = vld [vmem:[#allocation75_spill] sm:$0xff] }
 0x130   :  { %877 = vperm.xlu0 %4306, %v7425_v42   ;;  %3749 = vmatpush1.bf16.msra.mxu0 %v3748_v11  ;;  %v3768_v11 = vpack.c.bf16 %v4319_v0, %v4318_v19 }
 0x131   :  { %v496_v34 = vpop.permute.xlu1 %495  ;;  %3751 = vmatprep.subr.bf16.mxu0 %v3750_v54  ;;  %v3754_v2 = vpack.c.bf16 %v643_v4, %v642_v1  ;;  %v7451_v54 = vld [vmem:[#allocation34_spill] sm:$0xff]  ;;  %v4320_v4 = vld [vmem:[%s7071_s0 + $0x150] sm:$0xff] }
 0x132   :  { %v471_v12 = vpop.permute.xlu0 %470  ;;  %v649_v49 = vmul.f32 %v4319_v0, %v496_v34  ;;  %v5476_v18 = vunpack.i.l.bf16 %v7451_v54  ;;  %v7453_v34 = vld [vmem:[#allocation11_spill] sm:$0xff]  ;;  %v5483_v60 = vunpack.i.h.bf16 %v7451_v54 }
 0x133   :  { %897 = vperm.xlu1 %4191, %v7428_v9   ;;  %2481 = vmatmul.mubr.f32.vlgmr.msra.gmra.mrb[0].mxu0 %v5409_v43  ;;  %v644_v21 = vmul.f32 %v4314_v15, %v471_v12  ;;  %v4321_v9 = vld [vmem:[%s7071_s0 + $0x158] sm:$0xff] }
 0x134   :  { %885 = vperm.xlu0 %4306, %v7431_v8   ;;  %2486 = vmatprep.mubr.f32.mxu0 %v5416_v31  ;;  %7452 = vst [vmem:[#allocation49_spill] sm:$0xff] %v5476_v18  ;;  %7455 = vst [vmem:[#allocation16_spill] sm:$0xff] %v5483_v60  ;;  %v3772_v12 = vpack.c.bf16 %v4321_v9, %v4320_v4  ;;  %v7457_v15 = vld [vmem:[#allocation77_spill] sm:$0xff]  ;;  %v4330_v9 = vld [vmem:[%s7071_s0 + $0x1a0] sm:$0xff] }
 0x135   :  { %v506_v30 = vpop.permute.xlu1 %505  ;;  %3753 = vmatpush1.bf16.msra.mxu0 %v3752_v23  ;;  %v3758_v14 = vpack.c.bf16 %v645_v27, %v644_v21  ;;  %v7454_v23 = vld [vmem:[#allocation59_spill] sm:$0xff]  ;;  %v6083_v43 = vld [vmem:[%s7072_s1 + $0x138] sm:$0xff] }
 0x136   :  { %3755 = vmatprep.subr.bf16.mxu0 %v3754_v2  ;;  %v481_v25 = vpop.permute.xlu0 %480  ;;  %v651_v16 = vmul.f32 %v506_v30, %v7449_v61  ;;  %v7458_v30 = vld [vmem:[#allocation37_spill] sm:$0xff] }
 0x137   :  { %905 = vperm.xlu1 %4191, %v7433_v33   ;;  %2487 = vmatmul.mubr.f32.gmra.mrb[2].mxu0 %v5425_v47  ;;  %v646_v46 = vmul.f32 %v4316_v20, %v481_v25  ;;  %v5494_v8 = vunpack.i.l.bf16 %v7458_v30  ;;  %v7461_v25 = vld [vmem:[#allocation63_spill] sm:$0xff]  ;;  %v5501_v53 = vunpack.i.h.bf16 %v7458_v30  ;;  %v6041_v47 = vld [vmem:[%s7072_s1 + $0x118] sm:$0xff] }
 0x138   :  { %893 = vperm.xlu0 %4306, %v7436_v10   ;;  %2492 = vmatprep.mubr.f32.mxu0 %v5432_v36  ;;  %v4323_v20 = vld [vmem:[%s7071_s0 + $0x168] sm:$0xff] }
 0x139   :  { %v516_v22 = vpop.permute.xlu1 %515  ;;  %3757 = vmatpush1.bf16.msra.mxu0 %v3756_v35  ;;  %v3762_v59 = vpack.c.bf16 %v647_v55, %v646_v46  ;;  %7459 = vst [vmem:[#allocation33_spill] sm:$0xff] %v5494_v8  ;;  %7462 = vst [vmem:[#allocation18_spill] sm:$0xff] %v5501_v53  ;;  %v7465_v55 = vld [vmem:[#allocation40_spill] sm:$0xff] }
 0x13a   :  { %3759 = vmatprep.subr.bf16.mxu0 %v3758_v14  ;;  %v491_v32 = vpop.permute.xlu0 %490  ;;  %v653_v2 = vmul.f32 %v516_v22, %v7456_v52  ;;  %v4322_v14 = vld [vmem:[%s7071_s0 + $0x160] sm:$0xff]  ;;  %v7463_v22 = vld [vmem:[#allocation17_spill] sm:$0xff] }
 0x13b   :  { %913 = vperm.xlu1 %4191, %v7438_v26   ;;  %2493 = vmatmul.mubr.f32.gmra.mrb[4].mxu0 %v5441_v39  ;;  %v648_v51 = vmul.f32 %v4318_v19, %v491_v32  ;;  %v3776_v46 = vpack.c.bf16 %v4323_v20, %v4322_v14  ;;  %v5512_v26 = vunpack.i.l.bf16 %v7465_v55  ;;  %v4332_v20 = vld [vmem:[%s7071_s0 + $0x1b0] sm:$0xff] }
 0x13c   :  { %901 = vperm.xlu0 %4306, %v7441_v44   ;;  %2498 = vmatprep.mubr.f32.mxu0 %v5448_v13  ;;  %v4325_v44 = vld [vmem:[%s7071_s0 + $0x170] sm:$0xff]  ;;  %v5993_v13 = vld [vmem:[%s7072_s1 + $0xf8] sm:$0xff] }
 0x13d   :  { %v526_v38 = vpop.permute.xlu1 %525  ;;  %3761 = vmatpush1.bf16.msra.mxu0 %v3760_v45  ;;  %v3766_v5 = vpack.c.bf16 %v649_v49, %v648_v51  ;;  %v7464_v45 = vld [vmem:[#allocation79_spill] sm:$0xff]  ;;  %7466 = vst [vmem:[#allocation53_spill] sm:$0xff] %v5512_v26 }
 0x13e   :  { %3763 = vmatprep.subr.bf16.mxu0 %v3762_v59  ;;  %v501_v56 = vpop.permute.xlu0 %500  ;;  %v655_v10 = vmul.f32 %v526_v38, %v7463_v22  ;;  %v7467_v51 = vld [vmem:[#allocation67_spill] sm:$0xff]  ;;  %v5521_v38 = vunpack.i.h.bf16 %v7465_v55 }
 0x13f   :  { %921 = vperm.xlu1 %4191, %v7443_v50   ;;  %2499 = vmatmul.mubr.f32.gmra.mrb[6].mxu0 %v5457_v17  ;;  %v650_v62 = vmul.f32 %v501_v56, %v7446_v48  ;;  %v4327_v49 = vld [vmem:[%s7071_s0 + $0x188] sm:$0xff]  ;;  %v7469_v56 = vld [vmem:[#allocation81_spill] sm:$0xff] }
 0x140   :  { %909 = vperm.xlu0 %4306, %v7447_v29   ;;  %2504 = vmatprep.mubr.f32.mxu0 %v5464_v58  ;;  %7468 = vst [vmem:[#allocation36_spill] sm:$0xff] %v5521_v38  ;;  %v4328_v29 = vld [vmem:[%s7071_s0 + $0x190] sm:$0xff] }
 0x141   :  { %v536_v6 = vpop.permute.xlu1 %535  ;;  %3765 = vmatpush1.bf16.msra.mxu0 %v3764_v28  ;;  %v3770_v1 = vpack.c.bf16 %v651_v16, %v650_v62  ;;  %v4326_v28 = vld [vmem:[%s7071_s0 + $0x178] sm:$0xff]  ;;  %v7472_v16 = vld [vmem:[#allocation71_spill] sm:$0xff] }
 0x142   :  { %3767 = vmatprep.subr.bf16.mxu0 %v3766_v5  ;;  %v511_v37 = vpop.permute.xlu0 %510  ;;  %v3780_v0 = vpack.c.bf16 %v4326_v28, %v4325_v44  ;;  %v657_v50 = vmul.f32 %v4327_v49, %v536_v6  ;;  %v7470_v5 = vld [vmem:[#allocation44_spill] sm:$0xff]  ;;  %v4334_v28 = vld [vmem:[%s7071_s0 + $0x1c0] sm:$0xff] }
 0x143   :  { %929 = vperm.xlu1 %4191, %v7450_v24   ;;  %2505 = vmatmul.mubr.f32.gmra.mrb[8].mxu0 %v5471_v7  ;;  %v652_v42 = vmul.f32 %v511_v37, %v7453_v34  ;;  %v5534_v48 = vunpack.i.l.bf16 %v7470_v5  ;;  %v5543_v6 = vunpack.i.h.bf16 %v7470_v5  ;;  %v3784_v24 = vpack.c.bf16 %v4327_v49, %v4324_v40  ;;  %v4329_v37 = vld [vmem:[%s7071_s0 + $0x198] sm:$0xff] }
 0x144   :  { %917 = vperm.xlu0 %4306, %v7454_v23   ;;  %2510 = vmatprep.mubr.f32.mxu0 %v5476_v18 }
 0x145   :  { %v546_v3 = vpop.permute.xlu1 %545  ;;  %3769 = vmatpush1.bf16.msra.mxu0 %v3768_v11  ;;  %v3774_v35 = vpack.c.bf16 %v653_v2, %v652_v42  ;;  %7471 = vst [vmem:[#allocation57_spill] sm:$0xff] %v5534_v48  ;;  %7473 = vst [vmem:[#allocation39_spill] sm:$0xff] %v5543_v6  ;;  %v7475_v42 = vld [vmem:[#allocation48_spill] sm:$0xff]  ;;  %v7477_v2 = vld [vmem:[#allocation74_spill] sm:$0xff] }
 0x146   :  { %3771 = vmatprep.subr.bf16.mxu0 %v3770_v1  ;;  %v521_v21 = vpop.permute.xlu0 %520  ;;  %v659_v54 = vmul.f32 %v4329_v37, %v546_v3  ;;  %v7474_v1 = vld [vmem:[#allocation83_spill] sm:$0xff]  ;;  %v5550_v23 = vunpack.i.l.bf16 %v7475_v42  ;;  %v5559_v3 = vunpack.i.h.bf16 %v7475_v42 }
 0x147   :  { %937 = vperm.xlu1 %4191, %v7457_v15   ;;  %2511 = vmatmul.mubr.f32.gmra.mrb[10].mxu0 %v5483_v60  ;;  %v654_v27 = vmul.f32 %v521_v21, %v7460_v63  ;;  %v3788_v15 = vpack.c.bf16 %v4329_v37, %v4328_v29  ;;  %v4331_v21 = vld [vmem:[%s7071_s0 + $0x1a8] sm:$0xff]  ;;  %v4336_v37 = vld [vmem:[%s7071_s0 + $0x1d0] sm:$0xff]  ;;  %v5945_v60 = vld [vmem:[%s7072_s1 + $0xd8] sm:$0xff] }
 0x148   :  { %925 = vperm.xlu0 %4306, %v7461_v25   ;;  %2516 = vmatprep.mubr.f32.mxu0 %v5494_v8  ;;  %7476 = vst [vmem:[#allocation20_spill] sm:$0xff] %v5550_v23  ;;  %7478 = vst [vmem:[#allocation61_spill] sm:$0xff] %v5559_v3 }
 0x149   :  { %v556_v33 = vpop.permute.xlu1 %555  ;;  %3773 = vmatpush1.bf16.msra.mxu0 %v3772_v12  ;;  %v3778_v32 = vpack.c.bf16 %v655_v10, %v654_v27  ;;  %v7480_v27 = vld [vmem:[#allocation52_spill] sm:$0xff] }
 0x14a   :  { %3775 = vmatprep.subr.bf16.mxu0 %v3774_v35  ;;  %v531_v57 = vpop.permute.xlu0 %530  ;;  %v661_v30 = vmul.f32 %v4331_v21, %v556_v33  ;;  %v7479_v35 = vld [vmem:[#allocation85_spill] sm:$0xff]  ;;  %v5566_v25 = vunpack.i.l.bf16 %v7480_v27  ;;  %v7482_v10 = vld [vmem:[#allocation76_spill] sm:$0xff]  ;;  %v5575_v33 = vunpack.i.h.bf16 %v7480_v27  ;;  %v7496_v27 = vld [vmem:[#allocation82_spill] sm:$0xff] }
 0x14b   :  { %945 = vperm.xlu1 %4191, %v7464_v45   ;;  %2517 = vmatmul.mubr.f32.gmra.mrb[12].mxu0 %v5501_v53  ;;  %v656_v59 = vmul.f32 %v4324_v40, %v531_v57  ;;  %v3792_v45 = vpack.c.bf16 %v4331_v21, %v4330_v9  ;;  %v4333_v57 = vld [vmem:[%s7071_s0 + $0x1b8] sm:$0xff] }
 0x14c   :  { %933 = vperm.xlu0 %4306, %v7467_v51   ;;  %2522 = vmatprep.mubr.f32.mxu0 %v5512_v26  ;;  %7481 = vst [vmem:[#allocation23_spill] sm:$0xff] %v5566_v25  ;;  %7483 = vst [vmem:[#allocation43_spill] sm:$0xff] %v5575_v33 }
 0x14d   :  { %v566_v19 = vpop.permute.xlu1 %565  ;;  %3777 = vmatpush1.bf16.msra.mxu0 %v3776_v46  ;;  %v3782_v62 = vpack.c.bf16 %v657_v50, %v656_v59  ;;  %v7485_v59 = vld [vmem:[#allocation56_spill] sm:$0xff]  ;;  %v7487_v50 = vld [vmem:[#allocation78_spill] sm:$0xff] }
 0x14e   :  { %3779 = vmatprep.subr.bf16.mxu0 %v3778_v32  ;;  %v541_v41 = vpop.permute.xlu0 %540  ;;  %v663_v55 = vmul.f32 %v4333_v57, %v566_v19  ;;  %v7484_v32 = vld [vmem:[#allocation86_spill] sm:$0xff]  ;;  %v5582_v51 = vunpack.i.l.bf16 %v7485_v59  ;;  %v5591_v19 = vunpack.i.h.bf16 %v7485_v59 }
 0x14f   :  { %953 = vperm.xlu1 %4191, %v7469_v56   ;;  %2523 = vmatmul.mubr.f32.gmra.mrb[14].mxu0 %v5521_v38  ;;  %v658_v11 = vmul.f32 %v4328_v29, %v541_v41  ;;  %v3796_v56 = vpack.c.bf16 %v4333_v57, %v4332_v20  ;;  %v4335_v41 = vld [vmem:[%s7071_s0 + $0x1c8] sm:$0xff] }
 0x150   :  { %941 = vperm.xlu0 %4306, %v7472_v16   ;;  %2528 = vmatprep.mubr.f32.mxu0 %v5534_v48  ;;  %7486 = vst [vmem:[#allocation65_spill] sm:$0xff] %v5582_v51  ;;  %7488 = vst [vmem:[#allocation25_spill] sm:$0xff] %v5591_v19  ;;  %v3800_v42 = vpack.c.bf16 %v4335_v41, %v4334_v28  ;;  %v5921_v38 = vld [vmem:[%s7072_s1 + $0xc8] sm:$0xff] }
 0x151   :  { %v576_v61 = vpop.permute.xlu1 %575  ;;  %3781 = vmatpush1.bf16.msra.mxu0 %v3780_v0  ;;  %v3786_v4 = vpack.c.bf16 %v659_v54, %v658_v11  ;;  %v7490_v11 = vld [vmem:[#allocation60_spill] sm:$0xff] }
 0x152   :  { %3783 = vmatprep.subr.bf16.mxu0 %v3782_v62  ;;  %v551_v34 = vpop.permute.xlu0 %550  ;;  %v665_v5 = vmul.f32 %v4335_v41, %v576_v61  ;;  %v7489_v62 = vld [vmem:[#allocation87_spill] sm:$0xff]  ;;  %v5598_v16 = vunpack.i.l.bf16 %v7490_v11  ;;  %v4343_v41 = vld [vmem:[%s7071_s0 + $0x1f8] sm:$0xff] }
 0x153   :  { %961 = vperm.xlu1 %4191, %v7474_v1   ;;  %2529 = vmatmul.mubr.f32.gmra.mrb[16].mxu0 %v5543_v6  ;;  %v660_v12 = vmul.f32 %v4330_v9, %v551_v34  ;;  %v7492_v1 = vld [vmem:[#allocation80_spill] sm:$0xff]  ;;  %v5609_v34 = vunpack.i.h.bf16 %v7490_v11  ;;  %v5666_v11 = vld [vmem:[%s7072_s1 + $0x18] sm:$0xff] }
 0x154   :  { %949 = vperm.xlu0 %4306, %v7477_v2   ;;  %2534 = vmatprep.mubr.f32.mxu0 %v5550_v23  ;;  %7491 = vst [vmem:[#allocation47_spill] sm:$0xff] %v5598_v16 }
 0x155   :  { %v586_v52 = vpop.permute.xlu1 %585  ;;  %3785 = vmatpush1.bf16.msra.mxu0 %v3784_v24  ;;  %v3790_v14 = vpack.c.bf16 %v661_v30, %v660_v12  ;;  %7493 = vst [vmem:[#allocation69_spill] sm:$0xff] %v5609_v34  ;;  %v4518_v12 = vmov 2   ;;  %v5620_v30 = vld [vmem:[%s7072_s1] sm:$0xff] }
 0x156   :  { %3787 = vmatprep.subr.bf16.mxu0 %v3786_v4  ;;  %v561_v63 = vpop.permute.xlu0 %560  ;;  %v4337_v4 = vld [vmem:[%s7071_s0 + $0x1d8] sm:$0xff] }
 0x157   :  { %969 = vperm.xlu1 %4191, %v7479_v35   ;;  %2535 = vmatmul.mubr.f32.gmra.mrb[18].mxu0 %v5559_v3  ;;  %v662_v46 = vmul.f32 %v4332_v20, %v561_v63  ;;  %v667_v9 = vmul.f32 %v4337_v4, %v586_v52  ;;  %v4339_v52 = vld [vmem:[%s7071_s0 + $0x1e0] sm:$0xff] }
 0x158   :  { %957 = vperm.xlu0 %4306, %v7482_v10   ;;  %2540 = vmatprep.mubr.f32.mxu0 %v5566_v25  ;;  %v4340_v10 = vld [vmem:[%s7071_s0 + $0x1e8] sm:$0xff] }
 0x159   :  { %v596_v22 = vpop.permute.xlu1 %595  ;;  %3789 = vmatpush1.bf16.msra.mxu0 %v3788_v15  ;;  %v3794_v44 = vpack.c.bf16 %v663_v55, %v662_v46  ;;  %v7494_v15 = vld [vmem:[#allocation64_spill] sm:$0xff]  ;;  %v3804_v46 = vpack.c.bf16 %v4337_v4, %v4336_v37  ;;  %v7505_v4 = vld [vmem:[#allocation19_spill] sm:$0xff] }
 0x15a   :  { %3791 = vmatprep.subr.bf16.mxu0 %v3790_v14  ;;  %v571_v40 = vpop.permute.xlu0 %570  ;;  %v5615_v21 = vunpack.i.l.bf16 %v7494_v15  ;;  %v5632_v20 = vunpack.i.h.bf16 %v7494_v15  ;;  %v7498_v55 = vld [vmem:[#allocation68_spill] sm:$0xff]  ;;  %7544 = vst [vmem:[#allocation64_spill] sm:$0xff] %v5921_v38  ;;  %7550 = vst [vmem:[#allocation19_spill] sm:$0xff] %v5945_v60 }
 0x15b   :  { %977 = vperm.xlu1 %4191, %v7484_v32   ;;  %2541 = vmatmul.mubr.f32.gmra.mrb[20].mxu0 %v5575_v33  ;;  %v664_v0 = vmul.f32 %v4334_v28, %v571_v40  ;;  %v5638_v32 = vunpack.i.l.bf16 %v7498_v55  ;;  %v5643_v40 = vld [vmem:[%s7072_s1 + $0x10] sm:$0xff]  ;;  %v5873_v33 = vld [vmem:[%s7072_s1 + $0xa8] sm:$0xff] }
 0x15c   :  { %965 = vperm.xlu0 %4306, %v7487_v50   ;;  %2546 = vmatprep.mubr.f32.mxu0 %v5582_v51  ;;  %7495 = vst [vmem:[#allocation28_spill] sm:$0xff] %v5615_v21  ;;  %7497 = vst [vmem:[#allocation51_spill] sm:$0xff] %v5632_v20  ;;  %v7500_v28 = vld [vmem:[#allocation84_spill] sm:$0xff]  ;;  %v5655_v50 = vunpack.i.h.bf16 %v7498_v55 }
 0x15d   :  { %v606_v49 = vpop.permute.xlu1 %605  ;;  %3793 = vmatpush1.bf16.msra.mxu0 %v3792_v45  ;;  %v3798_v24 = vpack.c.bf16 %v665_v5, %v664_v0  ;;  %v669_v45 = vmul.f32 %v4340_v10, %v596_v22  ;;  %7499 = vst [vmem:[#allocation73_spill] sm:$0xff] %v5638_v32 }
 0x15e   :  { %3795 = vmatprep.subr.bf16.mxu0 %v3794_v44  ;;  %v581_v29 = vpop.permute.xlu0 %580  ;;  %v4342_v44 = vld [vmem:[%s7071_s0 + $0x1f0] sm:$0xff]  ;;  %7501 = vst [vmem:[#allocation31_spill] sm:$0xff] %v5655_v50  ;;  %v671_v5 = vmul.f32 %v4343_v41, %v606_v49 }
 0x15f   :  { %985 = vperm.xlu1 %4191, %v7489_v62   ;;  %2547 = vmatmul.mubr.f32.gmra.mrb[22].mxu0 %v5591_v19  ;;  %v666_v54 = vmul.f32 %v4336_v37, %v581_v29  ;;  %v7502_v62 = vld [vmem:[#allocation72_spill] sm:$0xff] }
 0x160   :  { %973 = vperm.xlu0 %4306, %v7492_v1   ;;  %2552 = vmatprep.mubr.f32.mxu0 %v5598_v16  ;;  %v5661_v29 = vunpack.i.l.bf16 %v7502_v62  ;;  %v5682_v1 = vunpack.i.h.bf16 %v7502_v62  ;;  %v5759_v62 = vld [vmem:[%s7072_s1 + $0x58] sm:$0xff] }
 0x161   :  { %3797 = vmatpush1.bf16.msra.mxu0 %v3796_v56  ;;  %v3802_v35 = vpack.c.bf16 %v667_v9, %v666_v54  ;;  %v3808_v56 = vpack.c.bf16 %v4340_v10, %v4339_v52  ;;  %v5678_v54 = vld [vmem:[%s7072_s1 + $0x8] sm:$0xff]  ;;  %v5685_v9 = vunpack.i.l.bf16 %v7505_v4  ;;  %7518 = vst [vmem:[#allocation17_spill] sm:$0xff] %v5759_v62 }
 0x162   :  { %v5606_v61 = vpop.permute.xlu1 %741  ;;  %3799 = vmatprep.subr.bf16.mxu0 %v3798_v24  ;;  %v591_v2 = vpop.permute.xlu0 %590  ;;  %7503 = vst [vmem:[#allocation7_spill] sm:$0xff] %v5661_v29  ;;  %7504 = vst [vmem:[#allocation55_spill] sm:$0xff] %v5682_v1 }
 0x163   :  { %4192 = vset.pattern.permute.xlu1 %v4518_v12  ;;  %2553 = vmatmul.mubr.f32.gmra.mrb[24].mxu0 %v5609_v34  ;;  %v668_v63 = vmul.f32 %v4339_v52, %v591_v2  ;;  %7506 = vst [vmem:[#allocation9_spill] sm:$0xff] %v5685_v9  ;;  %v5706_v52 = vunpack.i.h.bf16 %v7505_v4  ;;  %v5849_v34 = vld [vmem:[%s7072_s1 + $0x98] sm:$0xff] }
 0x164   :  { %1121 = vperm.xlu1 %4192, %v5620_v30   ;;  %981 = vperm.xlu0 %4306, %v7496_v27  }
 0x165   :  { %2558 = vmatprep.mubr.f32.mxu0 %v5615_v21  ;;  %3801 = vmatpush1.bf16.msra.mxu0 %v3800_v42  ;;  %v3806_v59 = vpack.c.bf16 %v669_v45, %v668_v63  ;;  %v3812_v42 = vpack.c.bf16 %v4343_v41, %v4342_v44  ;;  %7508 = vst [vmem:[#allocation34_spill] sm:$0xff] %v5706_v52  ;;  %v5711_v63 = vld [vmem:[%s7072_s1 + $0x38] sm:$0xff]  ;;  %v5750_v41 = vld [vmem:[%s7072_s1 + $0x40] sm:$0xff] }
 0x166   :  { %v5629_v14 = vpop.permute.xlu1 %745  ;;  %3803 = vmatprep.subr.bf16.mxu0 %v3802_v35  ;;  %v601_v57 = vpop.permute.xlu0 %600  ;;  %v5702_v35 = vld [vmem:[%s7072_s1 + $0x20] sm:$0xff]  ;;  %7509 = vst [vmem:[#allocation11_spill] sm:$0xff] %v5711_v63  ;;  %7516 = vst [vmem:[#allocation15_spill] sm:$0xff] %v5750_v41 }
 0x167   :  { %2559 = vmatmul.mubr.f32.gmra.mrb[26].mxu0 %v5632_v20  ;;  %v670_v22 = vmul.f32 %v4342_v44, %v601_v57  ;;  %7507 = vst [vmem:[#allocation75_spill] sm:$0xff] %v5702_v35  ;;  %v5726_v57 = vld [vmem:[%s7072_s1 + $0x30] sm:$0xff]  ;;  %v7531_v20 = vld [vmem:[#allocation35_spill] sm:$0xff] }
 0x168   :  { %1129 = vperm.xlu1 %4192, %v5643_v40   ;;  %989 = vperm.xlu0 %4306, %v7500_v28   ;;  %v5831_v21 = vunpack.i.l.bf16 %v7531_v20 }
 0x169   :  { %2564 = vmatprep.mubr.f32.mxu0 %v5638_v32  ;;  %3805 = vmatpush1.bf16.msra.mxu0 %v3804_v46  ;;  %v3810_v37 = vpack.c.bf16 %v671_v5, %v670_v22  ;;  %v7510_v46 = vld [vmem:[#allocation22_spill] sm:$0xff]  ;;  %v7514_v22 = vld [vmem:[#allocation24_spill] sm:$0xff] }
 0x16a   :  { %v5652_v0 = vpop.permute.xlu1 %753  ;;  %3807 = vmatprep.subr.bf16.mxu0 %v3806_v59  ;;  %v5717_v10 = vunpack.i.l.bf16 %v7510_v46  ;;  %v5730_v55 = vunpack.i.h.bf16 %v7510_v46  ;;  %v5735_v59 = vld [vmem:[%s7072_s1 + $0x48] sm:$0xff]  ;;  %v5741_v28 = vunpack.i.l.bf16 %v7514_v22  ;;  %v5754_v5 = vunpack.i.h.bf16 %v7514_v22  ;;  %v5774_v22 = vld [vmem:[%s7072_s1 + $0x50] sm:$0xff]  ;;  %7532 = vst [vmem:[#allocation85_spill] sm:$0xff] %v5831_v21 }
 0x16b   :  { %v5669_v24 = vpop.permute.xlu0 %737  ;;  %2565 = vmatmul.mubr.f32.gmra.mrb[28].mxu0 %v5655_v50  ;;  %7513 = vst [vmem:[#allocation77_spill] sm:$0xff] %v5735_v59  ;;  %7521 = vst [vmem:[#allocation40_spill] sm:$0xff] %v5774_v22 }
 0x16c   :  { %1133 = vperm.xlu1 %4192, %v5666_v11   ;;  %4307 = vset.pattern.permute.xlu0 %v4518_v12  ;;  %v5690_v12 = vld [vmem:[%s7072_s1 + $0x28] sm:$0xff]  ;;  %7511 = vst [vmem:[#allocation59_spill] sm:$0xff] %v5717_v10  ;;  %7512 = vst [vmem:[#allocation13_spill] sm:$0xff] %v5730_v55 }
 0x16d   :  { %2570 = vmatprep.mubr.f32.mxu0 %v5661_v29  ;;  %3809 = vmatpush1.bf16.msra.mxu0 %v3808_v56  ;;  %7515 = vst [vmem:[#allocation37_spill] sm:$0xff] %v5741_v28  ;;  %7517 = vst [vmem:[#allocation63_spill] sm:$0xff] %v5754_v5  ;;  %v7528_v29 = vld [vmem:[#allocation32_spill] sm:$0xff] }
 0x16e   :  { %v5673_v49 = vpop.permute.xlu1 %761  ;;  %1125 = vperm.xlu0 %4307, %v5678_v54   ;;  %3811 = vmatprep.subr.bf16.mxu0 %v3810_v37  ;;  %v5810_v50 = vunpack.i.l.bf16 %v7528_v29  ;;  %v5820_v32 = vunpack.i.h.bf16 %v7528_v29  ;;  %v5840_v29 = vld [vmem:[%s7072_s1 + $0x80] sm:$0xff] }
 0x16f   :  { %v5693_v2 = vpop.permute.xlu0 %749  ;;  %2571 = vmatmul.mubr.f32.gmra.mrb[30].mxu0 %v5682_v1  ;;  %v4356_v1 = vld [vmem:[%s7072_s1 + $0x78] sm:$0xff] }
 0x170   :  { %1141 = vperm.xlu1 %4192, %v5690_v12   ;;  %2641 = vmatprep.mubr.f32.mxu0 %v5685_v9  ;;  %7529 = vst [vmem:[#allocation48_spill] sm:$0xff] %v5810_v50  ;;  %7530 = vst [vmem:[#allocation74_spill] sm:$0xff] %v5820_v32 }
 0x171   :  { %3813 = vmatpush1.bf16.msra.mxu0 %v3812_v42  ;;  %v7519_v42 = vld [vmem:[#allocation26_spill] sm:$0xff] }
 0x172   :  { %v5697_v15 = vpop.permute.xlu1 %769  ;;  %1137 = vperm.xlu0 %4307, %v5702_v35   ;;  %v5765_v4 = vunpack.i.l.bf16 %v7519_v42 }
 0x173   :  { %v5714_v27 = vpop.permute.xlu0 %757 }
 0x174   :  { %1149 = vperm.xlu1 %4192, %v5711_v63   ;;  %2642 = vmatmul.mubr.f32.vlgmr.msra.gmra.mrb[0].mxu0 %v5706_v52  ;;  %7520 = vst [vmem:[#allocation79_spill] sm:$0xff] %v5765_v4 }
 0x175   :  { %2647 = vmatprep.mubr.f32.mxu0 %v5717_v10 }
 0x176   :  { %v5720_v45 = vpop.permute.xlu1 %777  ;;  %1145 = vperm.xlu0 %4307, %v5726_v57  }
 0x177   :  { %v5738_v44 = vpop.permute.xlu0 %765 }
 0x178   :  { %1157 = vperm.xlu1 %4192, %v5735_v59   ;;  %2648 = vmatmul.mubr.f32.gmra.mrb[2].mxu0 %v5730_v55  ;;  %v5783_v55 = vld [vmem:[%s7072_s1 + $0x68] sm:$0xff] }
 0x179   :  { %2653 = vmatprep.mubr.f32.mxu0 %v5741_v28  ;;  %v5778_v28 = vunpack.i.h.bf16 %v7519_v42  ;;  %7523 = vst [vmem:[#allocation81_spill] sm:$0xff] %v5783_v55  ;;  %v5798_v42 = vld [vmem:[%s7072_s1 + $0x60] sm:$0xff]  ;;  %v6065_v59 = vld [vmem:[%s7072_s1 + $0x128] sm:$0xff] }
 0x17a   :  { %v5744_v56 = vpop.permute.xlu1 %785  ;;  %1153 = vperm.xlu0 %4307, %v5750_v41   ;;  %7526 = vst [vmem:[#allocation71_spill] sm:$0xff] %v5798_v42 }
 0x17b   :  { %v5762_v37 = vpop.permute.xlu0 %773  ;;  %7522 = vst [vmem:[#allocation67_spill] sm:$0xff] %v5778_v28 }
 0x17c   :  { %1165 = vperm.xlu1 %4192, %v5759_v62   ;;  %2654 = vmatmul.mubr.f32.gmra.mrb[4].mxu0 %v5754_v5 }
 0x17d   :  { %2659 = vmatprep.mubr.f32.mxu0 %v5765_v4  ;;  %v7524_v4 = vld [vmem:[#allocation29_spill] sm:$0xff] }
 0x17e   :  { %v5768_v46 = vpop.permute.xlu1 %793  ;;  %1161 = vperm.xlu0 %4307, %v5774_v22   ;;  %v5789_v10 = vunpack.i.l.bf16 %v7524_v4  ;;  %v5802_v9 = vunpack.i.h.bf16 %v7524_v4  ;;  %v4357_v4 = vld [vmem:[%s7072_s1 + $0x70] sm:$0xff]  ;;  %v5969_v22 = vld [vmem:[%s7072_s1 + $0xe8] sm:$0xff] }
 0x17f   :  { %v5786_v5 = vpop.permute.xlu0 %781  ;;  %7556 = vst [vmem:[#allocation32_spill] sm:$0xff] %v5969_v22 }
 0x180   :  { %1173 = vperm.xlu1 %4192, %v5783_v55   ;;  %7525 = vst [vmem:[#allocation44_spill] sm:$0xff] %v5789_v10  ;;  %2660 = vmatmul.mubr.f32.gmra.mrb[6].mxu0 %v5778_v28  ;;  %7527 = vst [vmem:[#allocation83_spill] sm:$0xff] %v5802_v9  ;;  %v5897_v55 = vld [vmem:[%s7072_s1 + $0xb8] sm:$0xff] }
 0x181   :  { %2665 = vmatprep.mubr.f32.mxu0 %v5789_v10 }
 0x182   :  { %v5792_v52 = vpop.permute.xlu1 %801  ;;  %1169 = vperm.xlu0 %4307, %v5798_v42  }
 0x183   :  { %v5807_v28 = vpop.permute.xlu0 %789 }
 0x184   :  { %1181 = vperm.xlu1 %4192, %v4356_v1   ;;  %2666 = vmatmul.mubr.f32.gmra.mrb[8].mxu0 %v5802_v9  ;;  %v5825_v1 = vld [vmem:[%s7072_s1 + $0x88] sm:$0xff] }
 0x185   :  { %2671 = vmatprep.mubr.f32.mxu0 %v5810_v50 }
 0x186   :  { %v5813_v10 = vpop.permute.xlu1 %809  ;;  %1177 = vperm.xlu0 %4307, %v4357_v4   ;;  %v5844_v4 = vunpack.i.h.bf16 %v7531_v20  ;;  %v5864_v20 = vld [vmem:[%s7072_s1 + $0x90] sm:$0xff] }
 0x187   :  { %v5828_v9 = vpop.permute.xlu0 %797 }
 0x188   :  { %1189 = vperm.xlu1 %4192, %v5825_v1   ;;  %2672 = vmatmul.mubr.f32.gmra.mrb[10].mxu0 %v5820_v32  ;;  %7533 = vst [vmem:[#allocation52_spill] sm:$0xff] %v5844_v4 }
 0x189   :  { %2677 = vmatprep.mubr.f32.mxu0 %v5831_v21  ;;  %v7534_v21 = vld [vmem:[#allocation38_spill] sm:$0xff] }
 0x18a   :  { %v5834_v50 = vpop.permute.xlu1 %817  ;;  %1185 = vperm.xlu0 %4307, %v5840_v29   ;;  %v5855_v16 = vunpack.i.l.bf16 %v7534_v21  ;;  %v5868_v51 = vunpack.i.h.bf16 %v7534_v21  ;;  %v5888_v21 = vld [vmem:[%s7072_s1 + $0xa0] sm:$0xff] }
 0x18b   :  { %v5852_v32 = vpop.permute.xlu0 %805 }
 0x18c   :  { %1197 = vperm.xlu1 %4192, %v5849_v34   ;;  %7535 = vst [vmem:[#allocation76_spill] sm:$0xff] %v5855_v16  ;;  %2678 = vmatmul.mubr.f32.gmra.mrb[12].mxu0 %v5844_v4  ;;  %7536 = vst [vmem:[#allocation86_spill] sm:$0xff] %v5868_v51 }
 0x18d   :  { %2683 = vmatprep.mubr.f32.mxu0 %v5855_v16  ;;  %v7537_v16 = vld [vmem:[#allocation42_spill] sm:$0xff] }
 0x18e   :  { %v5858_v19 = vpop.permute.xlu1 %825  ;;  %1193 = vperm.xlu0 %4307, %v5864_v20   ;;  %v5879_v25 = vunpack.i.l.bf16 %v7537_v16  ;;  %v5892_v23 = vunpack.i.h.bf16 %v7537_v16  ;;  %v5912_v16 = vld [vmem:[%s7072_s1 + $0xb0] sm:$0xff] }
 0x18f   :  { %v5876_v4 = vpop.permute.xlu0 %813 }
 0x190   :  { %1205 = vperm.xlu1 %4192, %v5873_v33   ;;  %7538 = vst [vmem:[#allocation56_spill] sm:$0xff] %v5879_v25  ;;  %2684 = vmatmul.mubr.f32.gmra.mrb[14].mxu0 %v5868_v51  ;;  %7539 = vst [vmem:[#allocation78_spill] sm:$0xff] %v5892_v23 }
 0x191   :  { %2689 = vmatprep.mubr.f32.mxu0 %v5879_v25  ;;  %v7540_v25 = vld [vmem:[#allocation46_spill] sm:$0xff] }
 0x192   :  { %v5882_v3 = vpop.permute.xlu1 %833  ;;  %1201 = vperm.xlu0 %4307, %v5888_v21   ;;  %v5903_v6 = vunpack.i.l.bf16 %v7540_v25  ;;  %v5916_v48 = vunpack.i.h.bf16 %v7540_v25  ;;  %v5936_v25 = vld [vmem:[%s7072_s1 + $0xc0] sm:$0xff] }
 0x193   :  { %v5900_v51 = vpop.permute.xlu0 %821  ;;  %7548 = vst [vmem:[#allocation84_spill] sm:$0xff] %v5936_v25 }
 0x194   :  { %1213 = vperm.xlu1 %4192, %v5897_v55   ;;  %7541 = vst [vmem:[#allocation87_spill] sm:$0xff] %v5903_v6  ;;  %2690 = vmatmul.mubr.f32.gmra.mrb[16].mxu0 %v5892_v23  ;;  %7543 = vst [vmem:[#allocation80_spill] sm:$0xff] %v5916_v48 }
 0x195   :  { %2695 = vmatprep.mubr.f32.mxu0 %v5903_v6  ;;  %v7545_v6 = vld [vmem:[#allocation50_spill] sm:$0xff] }
 0x196   :  { %v5906_v42 = vpop.permute.xlu1 %841  ;;  %1209 = vperm.xlu0 %4307, %v5912_v16   ;;  %v5927_v26 = vunpack.i.l.bf16 %v7545_v6  ;;  %v5940_v8 = vunpack.i.h.bf16 %v7545_v6  ;;  %v5960_v6 = vld [vmem:[%s7072_s1 + $0xd0] sm:$0xff]  ;;  %7562 = vst [vmem:[#allocation50_spill] sm:$0xff] %v5993_v13 }
 0x197   :  { %7542 = vst [vmem:[#allocation60_spill] sm:$0xff] %v5906_v42  ;;  %v5924_v23 = vpop.permute.xlu0 %829  ;;  %7554 = vst [vmem:[#allocation26_spill] sm:$0xff] %v5960_v6 }
 0x198   :  { %1221 = vperm.xlu1 %4192, %v5921_v38   ;;  %7546 = vst [vmem:[#allocation82_spill] sm:$0xff] %v5927_v26  ;;  %2696 = vmatmul.mubr.f32.gmra.mrb[18].mxu0 %v5916_v48  ;;  %7549 = vst [vmem:[#allocation72_spill] sm:$0xff] %v5940_v8 }
 0x199   :  { %2701 = vmatprep.mubr.f32.mxu0 %v5927_v26  ;;  %v7551_v26 = vld [vmem:[#allocation54_spill] sm:$0xff] }
 0x19a   :  { %v5930_v53 = vpop.permute.xlu1 %849  ;;  %1217 = vperm.xlu0 %4307, %v5936_v25   ;;  %v5951_v18 = vunpack.i.l.bf16 %v7551_v26  ;;  %v5964_v7 = vunpack.i.h.bf16 %v7551_v26  ;;  %v5984_v26 = vld [vmem:[%s7072_s1 + $0xe0] sm:$0xff] }
 0x19b   :  { %7547 = vst [vmem:[#allocation68_spill] sm:$0xff] %v5930_v53  ;;  %v5948_v48 = vpop.permute.xlu0 %837  ;;  %7560 = vst [vmem:[#allocation42_spill] sm:$0xff] %v5984_v26 }
 0x19c   :  { %1229 = vperm.xlu1 %4192, %v5945_v60   ;;  %7552 = vst [vmem:[#allocation22_spill] sm:$0xff] %v5951_v18  ;;  %2702 = vmatmul.mubr.f32.gmra.mrb[20].mxu0 %v5940_v8  ;;  %7555 = vst [vmem:[#allocation29_spill] sm:$0xff] %v5964_v7 }
 0x19d   :  { %2707 = vmatprep.mubr.f32.mxu0 %v5951_v18  ;;  %v7557_v18 = vld [vmem:[#allocation58_spill] sm:$0xff] }
 0x19e   :  { %v5954_v62 = vpop.permute.xlu1 %857  ;;  %1225 = vperm.xlu0 %4307, %v5960_v6   ;;  %v5975_v58 = vunpack.i.l.bf16 %v7557_v18 }
 0x19f   :  { %7553 = vst [vmem:[#allocation24_spill] sm:$0xff] %v5954_v62  ;;  %v5972_v8 = vpop.permute.xlu0 %845 }
 0x1a0   :  { %1237 = vperm.xlu1 %4192, %v5969_v22   ;;  %7558 = vst [vmem:[#allocation35_spill] sm:$0xff] %v5975_v58  ;;  %2708 = vmatmul.mubr.f32.gmra.mrb[22].mxu0 %v5964_v7  ;;  %v5988_v22 = vunpack.i.h.bf16 %v7557_v18  ;;  %v6008_v18 = vld [vmem:[%s7072_s1 + $0xf0] sm:$0xff] }
 0x1a1   :  { %2713 = vmatprep.mubr.f32.mxu0 %v5975_v58  ;;  %v7564_v58 = vld [vmem:[#allocation62_spill] sm:$0xff]  ;;  %7567 = vst [vmem:[#allocation88_spill] sm:$0xff] %v6008_v18 }
 0x1a2   :  { %v5978_v17 = vpop.permute.xlu1 %865  ;;  %1233 = vperm.xlu0 %4307, %v5984_v26   ;;  %7561 = vst [vmem:[#allocation46_spill] sm:$0xff] %v5988_v22  ;;  %v5999_v60 = vunpack.i.l.bf16 %v7564_v58  ;;  %v6017_v26 = vld [vmem:[%s7072_s1 + $0x108] sm:$0xff] }
 0x1a3   :  { %7559 = vst [vmem:[#allocation38_spill] sm:$0xff] %v5978_v17  ;;  %v5996_v7 = vpop.permute.xlu0 %853 }
 0x1a4   :  { %1245 = vperm.xlu1 %4192, %v5993_v13   ;;  %7563 = vst [vmem:[#allocation54_spill] sm:$0xff] %v5996_v7  ;;  %7565 = vst [vmem:[#allocation58_spill] sm:$0xff] %v5999_v60  ;;  %2714 = vmatmul.mubr.f32.gmra.mrb[24].mxu0 %v5988_v22  ;;  %v6012_v13 = vunpack.i.h.bf16 %v7564_v58  ;;  %v6032_v58 = vld [vmem:[%s7072_s1 + $0x100] sm:$0xff] }
 0x1a5   :  { %2719 = vmatprep.mubr.f32.mxu0 %v5999_v60  ;;  %v7570_v60 = vld [vmem:[#allocation66_spill] sm:$0xff] }
 0x1a6   :  { %v6002_v39 = vpop.permute.xlu1 %873  ;;  %1241 = vperm.xlu0 %4307, %v6008_v18   ;;  %7568 = vst [vmem:[#allocation89_spill] sm:$0xff] %v6012_v13  ;;  %v6023_v6 = vunpack.i.l.bf16 %v7570_v60  ;;  %v6036_v18 = vunpack.i.h.bf16 %v7570_v60  ;;  %v6056_v60 = vld [vmem:[%s7072_s1 + $0x110] sm:$0xff] }
 0x1a7   :  { %7566 = vst [vmem:[#allocation62_spill] sm:$0xff] %v6002_v39  ;;  %v6020_v22 = vpop.permute.xlu0 %861 }
 0x1a8   :  { %1253 = vperm.xlu1 %4192, %v6017_v26   ;;  %7569 = vst [vmem:[#allocation90_spill] sm:$0xff] %v6020_v22  ;;  %7571 = vst [vmem:[#allocation66_spill] sm:$0xff] %v6023_v6  ;;  %2720 = vmatmul.mubr.f32.gmra.mrb[26].mxu0 %v6012_v13 }
 0x1a9   :  { %2725 = vmatprep.mubr.f32.mxu0 %v6023_v6  ;;  %7573 = vst [vmem:[#allocation92_spill] sm:$0xff] %v6036_v18  ;;  %v7575_v6 = vld [vmem:[#allocation70_spill] sm:$0xff] }
 0x1aa   :  { %v6026_v36 = vpop.permute.xlu1 %881  ;;  %1249 = vperm.xlu0 %4307, %v6032_v58   ;;  %v6060_v31 = vunpack.i.h.bf16 %v7575_v6 }
 0x1ab   :  { %7572 = vst [vmem:[#allocation91_spill] sm:$0xff] %v6026_v36  ;;  %v6044_v13 = vpop.permute.xlu0 %869  ;;  %v6047_v36 = vunpack.i.l.bf16 %v7575_v6  ;;  %v6077_v6 = vld [vmem:[%s7072_s1 + $0x120] sm:$0xff] }
 0x1ac   :  { %1261 = vperm.xlu1 %4192, %v6041_v47   ;;  %7574 = vst [vmem:[#allocation93_spill] sm:$0xff] %v6044_v13  ;;  %2726 = vmatmul.mubr.f32.gmra.mrb[28].mxu0 %v6036_v18  ;;  %7578 = vst [vmem:[#allocation95_spill] sm:$0xff] %v6060_v31 }
 0x1ad   :  { %7576 = vst [vmem:[#allocation70_spill] sm:$0xff] %v6047_v36  ;;  %2731 = vmatprep.mubr.f32.mxu0 %v6047_v36 }
 0x1ae   :  { %v6050_v39 = vpop.permute.xlu1 %889  ;;  %1257 = vperm.xlu0 %4307, %v6056_v60  }
 0x1af   :  { %7577 = vst [vmem:[#allocation94_spill] sm:$0xff] %v6050_v39  ;;  %v6068_v18 = vpop.permute.xlu0 %877  ;;  %v7581_v39 = vld [vmem:[#allocation21_spill] sm:$0xff] }
 0x1b0   :  { %1269 = vperm.xlu1 %4192, %v6065_v59   ;;  %7579 = vst [vmem:[#allocation96_spill] sm:$0xff] %v6068_v18  ;;  %2732 = vmatmul.mubr.f32.gmra.mrb[30].mxu0 %v6060_v31  ;;  %7582 = vst [vmem:[#allocation21_spill] sm:$0xff] %v6083_v43 }
 0x1b1   :  { %3124 = vmatprep.mubr.f32.mxu0 %v7581_v39  ;;  %v6093_v39 = vld [vmem:[%s7072_s1 + $0x130] sm:$0xff] }
 0x1b2   :  { %v6071_v36 = vpop.permute.xlu1 %897  ;;  %1265 = vperm.xlu0 %4307, %v6077_v6   ;;  %7585 = vst [vmem:[#allocation100_spill] sm:$0xff] %v6093_v39 }
 0x1b3   :  { %7580 = vst [vmem:[#allocation97_spill] sm:$0xff] %v6071_v36  ;;  %v6086_v18 = vpop.permute.xlu0 %885  ;;  %v6099_v36 = vld [vmem:[%s7072_s1 + $0x148] sm:$0xff] }
 0x1b4   :  { %1277 = vperm.xlu1 %4192, %v6083_v43   ;;  %7583 = vst [vmem:[#allocation98_spill] sm:$0xff] %v6086_v18  ;;  %7586 = vst [vmem:[#allocation101_spill] sm:$0xff] %v6099_v36  ;;  %v6115_v18 = vld [vmem:[%s7072_s1 + $0x158] sm:$0xff] }
 0x1b5   :  { %7590 = vst [vmem:[#allocation105_spill] sm:$0xff] %v6115_v18 }
 0x1b6   :  { %v6088_v31 = vpop.permute.xlu1 %905  ;;  %1273 = vperm.xlu0 %4307, %v6093_v39   ;;  %v6270_v39 = vld [vmem:[%s7072_s1 + $0x1d8] sm:$0xff] }
 0x1b7   :  { %7584 = vst [vmem:[#allocation99_spill] sm:$0xff] %v6088_v31  ;;  %v6102_v41 = vpop.permute.xlu0 %893  ;;  %v6109_v31 = vld [vmem:[%s7072_s1 + $0x140] sm:$0xff]  ;;  %7620 = vst [vmem:[#allocation135_spill] sm:$0xff] %v6270_v39 }
 0x1b8   :  { %1285 = vperm.xlu1 %4192, %v6099_v36   ;;  %7587 = vst [vmem:[#allocation102_spill] sm:$0xff] %v6102_v41  ;;  %7589 = vst [vmem:[#allocation104_spill] sm:$0xff] %v6109_v31  ;;  %v6131_v41 = vld [vmem:[%s7072_s1 + $0x168] sm:$0xff] }
 0x1b9   :  { %7594 = vst [vmem:[#allocation109_spill] sm:$0xff] %v6131_v41 }
 0x1ba   :  { %v6104_v17 = vpop.permute.xlu1 %913  ;;  %1281 = vperm.xlu0 %4307, %v6109_v31  }
 0x1bb   :  { %7588 = vst [vmem:[#allocation103_spill] sm:$0xff] %v6104_v17  ;;  %v6118_v13 = vpop.permute.xlu0 %901  ;;  %v6125_v17 = vld [vmem:[%s7072_s1 + $0x150] sm:$0xff] }
 0x1bc   :  { %1293 = vperm.xlu1 %4192, %v6115_v18   ;;  %7591 = vst [vmem:[#allocation106_spill] sm:$0xff] %v6118_v13  ;;  %7593 = vst [vmem:[#allocation108_spill] sm:$0xff] %v6125_v17 }
 0x1be   :  { %v6120_v36 = vpop.permute.xlu1 %921  ;;  %1289 = vperm.xlu0 %4307, %v6125_v17   ;;  %v6147_v17 = vld [vmem:[%s7072_s1 + $0x178] sm:$0xff] }
 0x1bf   :  { %7592 = vst [vmem:[#allocation107_spill] sm:$0xff] %v6120_v36  ;;  %v6134_v31 = vpop.permute.xlu0 %909  ;;  %v6141_v36 = vld [vmem:[%s7072_s1 + $0x160] sm:$0xff]  ;;  %7598 = vst [vmem:[#allocation113_spill] sm:$0xff] %v6147_v17 }
 0x1c0   :  { %1301 = vperm.xlu1 %4192, %v6131_v41   ;;  %7595 = vst [vmem:[#allocation110_spill] sm:$0xff] %v6134_v31  ;;  %7597 = vst [vmem:[#allocation112_spill] sm:$0xff] %v6141_v36 }
 0x1c2   :  { %v6136_v18 = vpop.permute.xlu1 %929  ;;  %1297 = vperm.xlu0 %4307, %v6141_v36   ;;  %v6163_v36 = vld [vmem:[%s7072_s1 + $0x188] sm:$0xff] }
 0x1c3   :  { %7596 = vst [vmem:[#allocation111_spill] sm:$0xff] %v6136_v18  ;;  %v6150_v13 = vpop.permute.xlu0 %917  ;;  %v6157_v18 = vld [vmem:[%s7072_s1 + $0x170] sm:$0xff] }
 0x1c4   :  { %1309 = vperm.xlu1 %4192, %v6147_v17   ;;  %7599 = vst [vmem:[#allocation114_spill] sm:$0xff] %v6150_v13  ;;  %7601 = vst [vmem:[#allocation116_spill] sm:$0xff] %v6157_v18 }
 0x1c6   :  { %v6152_v41 = vpop.permute.xlu1 %937  ;;  %1305 = vperm.xlu0 %4307, %v6157_v18   ;;  %v4392_v18 = vld [vmem:[%s7072_s1 + $0x198] sm:$0xff] }
 0x1c7   :  { %7600 = vst [vmem:[#allocation115_spill] sm:$0xff] %v6152_v41  ;;  %v6166_v31 = vpop.permute.xlu0 %925  ;;  %v6173_v41 = vld [vmem:[%s7072_s1 + $0x180] sm:$0xff] }
 0x1c8   :  { %1317 = vperm.xlu1 %4192, %v6163_v36   ;;  %7602 = vst [vmem:[#allocation117_spill] sm:$0xff] %v6166_v31  ;;  %v7311_v31 = vmov 3  }
 0x1ca   :  { %v6168_v17 = vpop.permute.xlu1 %945  ;;  %1313 = vperm.xlu0 %4307, %v6173_v41  }
 0x1cb   :  { %7603 = vst [vmem:[#allocation118_spill] sm:$0xff] %v6168_v17  ;;  %v6179_v13 = vpop.permute.xlu0 %933  ;;  %v4393_v17 = vld [vmem:[%s7072_s1 + $0x190] sm:$0xff] }
 0x1cc   :  { %1325 = vperm.xlu1 %4192, %v4392_v18   ;;  %7604 = vst [vmem:[#allocation119_spill] sm:$0xff] %v6179_v13  ;;  %v6195_v13 = vld [vmem:[%s7072_s1 + $0x1a0] sm:$0xff] }
 0x1ce   :  { %v6181_v38 = vpop.permute.xlu1 %953  ;;  %1321 = vperm.xlu0 %4307, %v4393_v17  }
 0x1cf   :  { %7605 = vst [vmem:[#allocation120_spill] sm:$0xff] %v6181_v38  ;;  %v6187_v62 = vpop.permute.xlu0 %941 }
 0x1d0   :  { %4309 = vset.pattern.permute.xlu1 %v7311_v31  ;;  %7606 = vst [vmem:[#allocation121_spill] sm:$0xff] %v6187_v62  ;;  %v6206_v31 = vld [vmem:[%s7072_s1 + $0x1a8] sm:$0xff]  ;;  %v6226_v62 = vld [vmem:[%s7072_s1 + $0x1b8] sm:$0xff] }
 0x1d1   :  { %1577 = vperm.xlu1 %4309, %v5864_v20  }
 0x1d2   :  { %v6190_v25 = vpop.permute.xlu1 %961  ;;  %1329 = vperm.xlu0 %4307, %v6195_v13  }
 0x1d3   :  { %7607 = vst [vmem:[#allocation122_spill] sm:$0xff] %v6190_v25  ;;  %v6198_v38 = vpop.permute.xlu0 %949 }
 0x1d4   :  { %7608 = vst [vmem:[#allocation123_spill] sm:$0xff] %v6198_v38  ;;  %v6216_v38 = vld [vmem:[%s7072_s1 + $0x1b0] sm:$0xff] }
 0x1d5   :  { %1581 = vperm.xlu1 %4309, %v5849_v34  }
 0x1d6   :  { %v6201_v22 = vpop.permute.xlu1 %969  ;;  %1333 = vperm.xlu0 %4307, %v6206_v31  }
 0x1d7   :  { %7609 = vst [vmem:[#allocation124_spill] sm:$0xff] %v6201_v22  ;;  %v6209_v20 = vpop.permute.xlu0 %957 }
 0x1d8   :  { %7610 = vst [vmem:[#allocation125_spill] sm:$0xff] %v6209_v20  ;;  %v6253_v20 = vld [vmem:[%s7072_s1 + $0x1d0] sm:$0xff] }
 0x1d9   :  { %1705 = vperm.xlu1 %4309, %v4393_v17   ;;  %7619 = vst [vmem:[#allocation134_spill] sm:$0xff] %v6253_v20 }
 0x1da   :  { %v6211_v25 = vpop.permute.xlu1 %977  ;;  %1337 = vperm.xlu0 %4307, %v6216_v38  }
 0x1db   :  { %7611 = vst [vmem:[#allocation126_spill] sm:$0xff] %v6211_v25  ;;  %v6219_v34 = vpop.permute.xlu0 %965  ;;  %v6235_v25 = vld [vmem:[%s7072_s1 + $0x1c0] sm:$0xff] }
 0x1dc   :  { %7612 = vst [vmem:[#allocation127_spill] sm:$0xff] %v6219_v34  ;;  %7615 = vst [vmem:[#allocation130_spill] sm:$0xff] %v6235_v25  ;;  %v6244_v34 = vld [vmem:[%s7072_s1 + $0x1c8] sm:$0xff] }
 0x1dd   :  { %1709 = vperm.xlu1 %4309, %v4392_v18   ;;  %7617 = vst [vmem:[#allocation132_spill] sm:$0xff] %v6244_v34 }
 0x1de   :  { %v6221_v22 = vpop.permute.xlu1 %985  ;;  %1341 = vperm.xlu0 %4307, %v6226_v62  }
 0x1df   :  { %7613 = vst [vmem:[#allocation128_spill] sm:$0xff] %v6221_v22  ;;  %v6229_v17 = vpop.permute.xlu0 %973 }
 0x1e0   :  { %7614 = vst [vmem:[#allocation129_spill] sm:$0xff] %v6229_v17 }
 0x1e1   :  { %1513 = vperm.xlu1 %4309, %v5643_v40  }
 0x1e2   :  { %1345 = vperm.xlu0 %4307, %v6235_v25  }
 0x1e3   :  { %v1122_v18 = vpop.permute.xlu1 %1121  ;;  %v6238_v22 = vpop.permute.xlu0 %981 }
 0x1e4   :  { %7616 = vst [vmem:[#allocation131_spill] sm:$0xff] %v6238_v22  ;;  %v4401_v22 = vld [vmem:[%s7071_s0] sm:$0xff] }
 0x1e5   :  { %1517 = vperm.xlu1 %4309, %v5666_v11   ;;  %v992_v25 = vmul.f32 %v4401_v22, %v5669_v24 }
 0x1e6   :  { %1349 = vperm.xlu0 %4307, %v6244_v34  }
 0x1e7   :  { %v1130_v40 = vpop.permute.xlu1 %1129  ;;  %v6247_v17 = vpop.permute.xlu0 %989 }
 0x1e8   :  { %7618 = vst [vmem:[#allocation133_spill] sm:$0xff] %v6247_v17  ;;  %v1376_v17 = vmul.f32 %v4401_v22, %v1122_v18  ;;  %v4405_v22 = vld [vmem:[%s7071_s0 + $0x10] sm:$0xff] }
 0x1e9   :  { %1641 = vperm.xlu1 %4309, %v6056_v60   ;;  %v4402_v60 = vld [vmem:[%s7071_s0 + $0x18] sm:$0xff]  ;;  %v1378_v18 = vmul.f32 %v4405_v22, %v1130_v40 }
 0x1ea   :  { %1353 = vperm.xlu0 %4307, %v6253_v20   ;;  %v4403_v20 = vld [vmem:[%s7071_s0 + $0x8] sm:$0xff]  ;;  %v995_v7 = vmul.f32 %v4402_v60, %v5693_v2 }
 0x1eb   :  { %v1134_v11 = vpop.permute.xlu1 %1133 }
 0x1ec   :  { %v1379_v43 = vmul.f32 %v4402_v60, %v1134_v11  ;;  %v4409_v60 = vld [vmem:[%s7071_s0 + $0x30] sm:$0xff] }
 0x1ed   :  { %1645 = vperm.xlu1 %4309, %v6041_v47   ;;  %v1126_v34 = vpop.permute.xlu0 %1125  ;;  %v993_v47 = vmul.f32 %v4403_v20, %v5606_v61  ;;  %v6285_v61 = vld [vmem:[%s7072_s1 + $0x1e0] sm:$0xff] }
 0x1ee   :  { %v1377_v53 = vmul.f32 %v4403_v20, %v1126_v34  ;;  %1357 = vperm.xlu0 %4307, %v6270_v39   ;;  %v3818_v42 = vpack.c.bf16 %v1379_v43, %v1378_v18  ;;  %v4406_v39 = vld [vmem:[%s7071_s0 + $0x20] sm:$0xff]  ;;  %v4408_v43 = vld [vmem:[%s7071_s0 + $0x28] sm:$0xff] }
 0x1ef   :  { %v1142_v24 = vpop.permute.xlu1 %1141  ;;  %v3816_v35 = vpack.c.bf16 %v993_v47, %v992_v25  ;;  %v997_v20 = vmul.f32 %v4408_v43, %v5714_v27  ;;  %v4412_v18 = vld [vmem:[%s7071_s0 + $0x40] sm:$0xff] }
 0x1f0   :  { %v3814_v11 = vpack.c.bf16 %v1377_v53, %v1376_v17  ;;  %v994_v53 = vmul.f32 %v4405_v22, %v5629_v14 }
 0x1f1   :  { %1585 = vperm.xlu1 %4309, %v5888_v21   ;;  %v1138_v34 = vpop.permute.xlu0 %1137  ;;  %v1381_v21 = vmul.f32 %v4408_v43, %v1142_v24 }
 0x1f2   :  { %v1380_v63 = vmul.f32 %v4406_v39, %v1138_v34  ;;  %1361 = vperm.xlu0 %4307, %v6285_v61   ;;  %3815 = vmatprep.subr.bf16.mxu1 %v3814_v11  ;;  %v3820_v25 = vpack.c.bf16 %v995_v7, %v994_v53  ;;  %v996_v7 = vmul.f32 %v4406_v39, %v5652_v0  ;;  %v6315_v39 = vld [vmem:[%s7072_s1 + $0x1f0] sm:$0xff] }
 0x1f3   :  { %v1150_v2 = vpop.permute.xlu1 %1149  ;;  %3817 = vmatpush1.bf16.msra.mxu1 %v3816_v35  ;;  %v6300_v35 = vld [vmem:[%s7072_s1 + $0x1e8] sm:$0xff]  ;;  %v998_v11 = vmul.f32 %v4409_v60, %v5673_v49 }
 0x1f4   :  { %3819 = vmatprep.subr.bf16.mxu1 %v3818_v42  ;;  %v3822_v40 = vpack.c.bf16 %v1381_v21, %v1380_v63  ;;  %v3824_v27 = vpack.c.bf16 %v997_v20, %v996_v7  ;;  %v6330_v20 = vld [vmem:[%s7072_s1 + $0x1f8] sm:$0xff] }
 0x1f5   :  { %1589 = vperm.xlu1 %4309, %v5873_v33   ;;  %v1146_v17 = vpop.permute.xlu0 %1145  ;;  %v4411_v33 = vld [vmem:[%s7071_s0 + $0x38] sm:$0xff] }
 0x1f6   :  { %v1382_v14 = vmul.f32 %v4409_v60, %v1146_v17  ;;  %1365 = vperm.xlu0 %4307, %v6300_v35   ;;  %v1383_v63 = vmul.f32 %v4411_v33, %v1150_v2  ;;  %v999_v47 = vmul.f32 %v4411_v33, %v5738_v44  ;;  %v1000_v17 = vmul.f32 %v4412_v18, %v5697_v15  ;;  %v4418_v33 = vld [vmem:[%s7071_s0 + $0x60] sm:$0xff] }
 0x1f7   :  { %v1158_v42 = vpop.permute.xlu1 %1157  ;;  %3821 = vmatpush1.bf16.msra.mxu1 %v3820_v25  ;;  %v4415_v25 = vld [vmem:[%s7071_s0 + $0x50] sm:$0xff] }
 0x1f8   :  { %3823 = vmatprep.subr.bf16.mxu1 %v3822_v40  ;;  %v3826_v22 = vpack.c.bf16 %v1383_v63, %v1382_v14  ;;  %v3828_v53 = vpack.c.bf16 %v999_v47, %v998_v11  ;;  %v7621_v63 = vmov 3  }
 0x1f9   :  { %1713 = vperm.xlu1 %4309, %v6195_v13   ;;  %v1154_v24 = vpop.permute.xlu0 %1153  ;;  %v4414_v13 = vld [vmem:[%s7071_s0 + $0x48] sm:$0xff] }
 0x1fa   :  { %v1384_v0 = vmul.f32 %v4412_v18, %v1154_v24  ;;  %1369 = vperm.xlu0 %4307, %v6315_v39   ;;  %v1385_v44 = vmul.f32 %v4414_v13, %v1158_v42  ;;  %v1001_v2 = vmul.f32 %v4414_v13, %v5762_v37  ;;  %v4421_v13 = vld [vmem:[%s7071_s0 + $0x78] sm:$0xff] }
 0x1fb   :  { %v1166_v34 = vpop.permute.xlu1 %1165  ;;  %3825 = vmatpush1.bf16.msra.mxu1 %v3824_v27  ;;  %v1002_v27 = vmul.f32 %v4415_v25, %v5720_v45  ;;  %v4420_v45 = vld [vmem:[%s7071_s0 + $0x70] sm:$0xff] }
 0x1fc   :  { %3827 = vmatprep.subr.bf16.mxu1 %v3826_v22  ;;  %v3830_v21 = vpack.c.bf16 %v1385_v44, %v1384_v0  ;;  %v3832_v60 = vpack.c.bf16 %v1001_v2, %v1000_v17  ;;  %v1007_v44 = vmul.f32 %v4421_v13, %v5828_v9  ;;  %v6371_v9 = vld [vmem:[%s7071_s0 + $0x88] sm:$0xff] }
 0x1fd   :  { %1717 = vperm.xlu1 %4309, %v6206_v31   ;;  %v1162_v43 = vpop.permute.xlu0 %1161  ;;  %v4417_v31 = vld [vmem:[%s7071_s0 + $0x58] sm:$0xff] }
 0x1fe   :  { %v1386_v49 = vmul.f32 %v4415_v25, %v1162_v43  ;;  %1373 = vperm.xlu0 %4307, %v6330_v20   ;;  %v1387_v37 = vmul.f32 %v4417_v31, %v1166_v34  ;;  %v1003_v14 = vmul.f32 %v4417_v31, %v5786_v5  ;;  %v4419_v5 = vld [vmem:[%s7071_s0 + $0x68] sm:$0xff]  ;;  %v1006_v43 = vmul.f32 %v4420_v45, %v5768_v46 }
 0x1ff   :  { %v1174_v40 = vpop.permute.xlu1 %1173  ;;  %3829 = vmatpush1.bf16.msra.mxu1 %v3828_v53  ;;  %v1005_v22 = vmul.f32 %v4419_v5, %v5807_v28 }
 0x200   :  { %3831 = vmatprep.subr.bf16.mxu1 %v3830_v21  ;;  %v3834_v42 = vpack.c.bf16 %v1387_v37, %v1386_v49  ;;  %v3836_v24 = vpack.c.bf16 %v1003_v14, %v1002_v27  ;;  %v3844_v25 = vpack.c.bf16 %v1007_v44, %v1006_v43  ;;  %v1009_v49 = vmul.f32 %v6371_v9, %v5852_v32  ;;  %v6389_v32 = vld [vmem:[%s7071_s0 + $0x98] sm:$0xff]  ;;  %v7622_v43 = vld [vmem:[#allocation11_spill] sm:$0xff] }
 0x201   :  { %1525 = vperm.xlu1 %4309, %v5690_v12   ;;  %v1170_v7 = vpop.permute.xlu0 %1169  ;;  %v1389_v12 = vmul.f32 %v4419_v5, %v1174_v40  ;;  %v1011_v14 = vmul.f32 %v6389_v32, %v5876_v4 }
 0x202   :  { %v1388_v15 = vmul.f32 %v4418_v33, %v1170_v7  ;;  %4308 = vset.pattern.permute.xlu0 %v7621_v63 }
 0x203   :  { %v1182_v47 = vpop.permute.xlu1 %1181  ;;  %1569 = vperm.xlu0 %4308, %v5840_v29   ;;  %3833 = vmatpush1.bf16.msra.mxu1 %v3832_v60  ;;  %v1004_v29 = vmul.f32 %v4418_v33, %v5744_v56  ;;  %v6363_v56 = vld [vmem:[%s7071_s0 + $0x80] sm:$0xff] }
 0x204   :  { %3835 = vmatprep.subr.bf16.mxu1 %v3834_v42  ;;  %v3838_v0 = vpack.c.bf16 %v1389_v12, %v1388_v15  ;;  %v1391_v28 = vmul.f32 %v4421_v13, %v1182_v47  ;;  %v1008_v31 = vmul.f32 %v6363_v56, %v5792_v52 }
 0x205   :  { %1649 = vperm.xlu1 %4309, %v6077_v6   ;;  %v1178_v18 = vpop.permute.xlu0 %1177  ;;  %v3840_v6 = vpack.c.bf16 %v1005_v22, %v1004_v29 }
 0x206   :  { %v1390_v11 = vmul.f32 %v4420_v45, %v1178_v18  ;;  %v3848_v60 = vpack.c.bf16 %v1009_v49, %v1008_v31 }
 0x207   :  { %v1190_v34 = vpop.permute.xlu1 %1189  ;;  %1573 = vperm.xlu0 %4308, %v5825_v1   ;;  %3837 = vmatpush1.bf16.msra.mxu1 %v3836_v24 }
 0x208   :  { %3839 = vmatprep.subr.bf16.mxu1 %v3838_v0  ;;  %v3842_v2 = vpack.c.bf16 %v1391_v28, %v1390_v11 }
 0x209   :  { %1653 = vperm.xlu1 %4309, %v6065_v59   ;;  %v1186_v53 = vpop.permute.xlu0 %1185  ;;  %v1393_v59 = vmul.f32 %v6371_v9, %v1190_v34 }
 0x20a   :  { %v1392_v1 = vmul.f32 %v6363_v56, %v1186_v53 }
 0x20b   :  { %v1198_v21 = vpop.permute.xlu1 %1197  ;;  %1697 = vperm.xlu0 %4308, %v6173_v41   ;;  %3841 = vmatpush1.bf16.msra.mxu1 %v3840_v6  ;;  %v6380_v41 = vld [vmem:[%s7071_s0 + $0x90] sm:$0xff] }
 0x20c   :  { %3843 = vmatprep.subr.bf16.mxu1 %v3842_v2  ;;  %v3846_v46 = vpack.c.bf16 %v1393_v59, %v1392_v1  ;;  %v1010_v33 = vmul.f32 %v6380_v41, %v5813_v10 }
 0x20d   :  { %1593 = vperm.xlu1 %4309, %v5912_v16   ;;  %v1194_v17 = vpop.permute.xlu0 %1193  ;;  %v1395_v16 = vmul.f32 %v6389_v32, %v1198_v21 }
 0x20e   :  { %v1394_v40 = vmul.f32 %v6380_v41, %v1194_v17  ;;  %v3852_v63 = vpack.c.bf16 %v1011_v14, %v1010_v33  ;;  %v7627_v33 = vld [vmem:[#allocation68_spill] sm:$0xff] }
 0x20f   :  { %v1206_v37 = vpop.permute.xlu1 %1205  ;;  %1701 = vperm.xlu0 %4308, %v6163_v36   ;;  %3845 = vmatpush1.bf16.msra.mxu1 %v3844_v25  ;;  %v6398_v36 = vld [vmem:[%s7071_s0 + $0xa0] sm:$0xff]  ;;  %v7623_v25 = vld [vmem:[#allocation60_spill] sm:$0xff] }
 0x210   :  { %3847 = vmatprep.subr.bf16.mxu1 %v3846_v46  ;;  %v3850_v52 = vpack.c.bf16 %v1395_v16, %v1394_v40  ;;  %v1012_v12 = vmul.f32 %v6398_v36, %v5834_v50  ;;  %v7624_v46 = vld [vmem:[#allocation75_spill] sm:$0xff] }
 0x211   :  { %1597 = vperm.xlu1 %4309, %v5897_v55   ;;  %v1202_v7 = vpop.permute.xlu0 %1201  ;;  %v6407_v55 = vld [vmem:[%s7071_s0 + $0xa8] sm:$0xff] }
 0x212   :  { %v1396_v42 = vmul.f32 %v6398_v36, %v1202_v7  ;;  %v1397_v4 = vmul.f32 %v6407_v55, %v1206_v37  ;;  %v1013_v27 = vmul.f32 %v6407_v55, %v5900_v51  ;;  %v7625_v37 = vld [vmem:[#allocation54_spill] sm:$0xff] }
 0x213   :  { %v1214_v15 = vpop.permute.xlu1 %1213  ;;  %1505 = vperm.xlu0 %4308, %v5620_v30   ;;  %3849 = vmatpush1.bf16.msra.mxu1 %v3848_v60  ;;  %v6416_v30 = vld [vmem:[%s7071_s0 + $0xb0] sm:$0xff] }
 0x214   :  { %3851 = vmatprep.subr.bf16.mxu1 %v3850_v52  ;;  %v3854_v10 = vpack.c.bf16 %v1397_v4, %v1396_v42  ;;  %v3856_v22 = vpack.c.bf16 %v1013_v27, %v1012_v12  ;;  %v1014_v11 = vmul.f32 %v6416_v30, %v5858_v19  ;;  %v7626_v60 = vld [vmem:[#allocation100_spill] sm:$0xff]  ;;  %v4437_v27 = vld [vmem:[%s7071_s0 + $0xf8] sm:$0xff] }
 0x215   :  { %1721 = vperm.xlu1 %4309, %v6216_v38   ;;  %v1210_v47 = vpop.permute.xlu0 %1209  ;;  %v6425_v38 = vld [vmem:[%s7071_s0 + $0xb8] sm:$0xff]  ;;  %v4436_v52 = vld [vmem:[%s7071_s0 + $0xf0] sm:$0xff] }
 0x216   :  { %v1398_v5 = vmul.f32 %v6416_v30, %v1210_v47  ;;  %v1399_v51 = vmul.f32 %v6425_v38, %v1214_v15  ;;  %v1015_v18 = vmul.f32 %v6425_v38, %v5924_v23  ;;  %v6443_v23 = vld [vmem:[%s7071_s0 + $0xc8] sm:$0xff] }
 0x217   :  { %v1222_v24 = vpop.permute.xlu1 %1221  ;;  %1509 = vperm.xlu0 %4308, %v5678_v54   ;;  %3853 = vmatpush1.bf16.msra.mxu1 %v3852_v63  ;;  %v6434_v54 = vld [vmem:[%s7071_s0 + $0xc0] sm:$0xff]  ;;  %v1017_v13 = vmul.f32 %v6443_v23, %v5948_v48  ;;  %v6461_v48 = vld [vmem:[%s7071_s0 + $0xd8] sm:$0xff] }
 0x218   :  { %3855 = vmatprep.subr.bf16.mxu1 %v3854_v10  ;;  %v3858_v50 = vpack.c.bf16 %v1399_v51, %v1398_v5  ;;  %v3860_v34 = vpack.c.bf16 %v1015_v18, %v1014_v11  ;;  %v1016_v44 = vmul.f32 %v6434_v54, %v5882_v3  ;;  %v1019_v1 = vmul.f32 %v6461_v48, %v5972_v8  ;;  %v4435_v8 = vld [vmem:[%s7071_s0 + $0xe8] sm:$0xff]  ;;  %v7628_v63 = vld [vmem:[#allocation21_spill] sm:$0xff]  ;;  %v7629_v5 = vld [vmem:[#allocation90_spill] sm:$0xff] }
 0x219   :  { %1725 = vperm.xlu1 %4309, %v6226_v62   ;;  %v1218_v0 = vpop.permute.xlu0 %1217  ;;  %v1401_v62 = vmul.f32 %v6443_v23, %v1222_v24  ;;  %v1021_v16 = vmul.f32 %v4435_v8, %v7625_v37  ;;  %v1023_v12 = vmul.f32 %v4437_v27, %v7629_v5  ;;  %v7630_v24 = vld [vmem:[#allocation84_spill] sm:$0xff]  ;;  %v6491_v18 = vld [vmem:[%s7071_s0 + $0x100] sm:$0xff] }
 0x21a   :  { %v1400_v45 = vmul.f32 %v6434_v54, %v1218_v0  ;;  %v3864_v2 = vpack.c.bf16 %v1017_v13, %v1016_v44  ;;  %v6527_v37 = vld [vmem:[%s7071_s0 + $0x120] sm:$0xff]  ;;  %v7645_v5 = vld [vmem:[#allocation8_spill] sm:$0xff] }
 0x21b   :  { %v1230_v29 = vpop.permute.xlu1 %1229  ;;  %1633 = vperm.xlu0 %4308, %v6032_v58   ;;  %3857 = vmatpush1.bf16.msra.mxu1 %v3856_v22  ;;  %v6452_v58 = vld [vmem:[%s7071_s0 + $0xd0] sm:$0xff] }
 0x21c   :  { %3859 = vmatprep.subr.bf16.mxu1 %v3858_v50  ;;  %v3862_v19 = vpack.c.bf16 %v1401_v62, %v1400_v45  ;;  %v1018_v49 = vmul.f32 %v6452_v58, %v7623_v25  ;;  %v7631_v50 = vld [vmem:[#allocation24_spill] sm:$0xff]  ;;  %v6499_v62 = vld [vmem:[%s7071_s0 + $0x108] sm:$0xff] }
 0x21d   :  { %1529 = vperm.xlu1 %4309, %v5726_v57   ;;  %v1226_v28 = vpop.permute.xlu0 %1225  ;;  %v1403_v57 = vmul.f32 %v6461_v48, %v1230_v29  ;;  %v1022_v45 = vmul.f32 %v4436_v52, %v7631_v50  ;;  %v7632_v29 = vld [vmem:[#allocation64_spill] sm:$0xff]  ;;  %v7637_v25 = vld [vmem:[#allocation15_spill] sm:$0xff] }
 0x21e   :  { %v1402_v6 = vmul.f32 %v6452_v58, %v1226_v28  ;;  %v3868_v31 = vpack.c.bf16 %v1019_v1, %v1018_v49  ;;  %v7633_v28 = vld [vmem:[#allocation130_spill] sm:$0xff]  ;;  %v7647_v50 = vld [vmem:[#allocation27_spill] sm:$0xff] }
 0x21f   :  { %v1238_v53 = vpop.permute.xlu1 %1237  ;;  %1637 = vperm.xlu0 %4308, %v6017_v26   ;;  %3861 = vmatpush1.bf16.msra.mxu1 %v3860_v34  ;;  %v4434_v26 = vld [vmem:[%s7071_s0 + $0xe0] sm:$0xff]  ;;  %v3876_v13 = vpack.c.bf16 %v1023_v12, %v1022_v45  ;;  %v7648_v45 = vld [vmem:[#allocation91_spill] sm:$0xff] }
 0x220   :  { %3863 = vmatprep.subr.bf16.mxu1 %v3862_v19  ;;  %v3866_v3 = vpack.c.bf16 %v1403_v57, %v1402_v6  ;;  %v1405_v40 = vmul.f32 %v4435_v8, %v1238_v53  ;;  %v1020_v15 = vmul.f32 %v4434_v26, %v7627_v33  ;;  %v7634_v6 = vld [vmem:[#allocation93_spill] sm:$0xff]  ;;  %v6508_v57 = vld [vmem:[%s7071_s0 + $0x110] sm:$0xff]  ;;  %v6537_v33 = vld [vmem:[%s7071_s0 + $0x128] sm:$0xff] }
 0x221   :  { %1533 = vperm.xlu1 %4309, %v7622_v43   ;;  %v1234_v21 = vpop.permute.xlu0 %1233  ;;  %v1025_v44 = vmul.f32 %v6499_v62, %v7634_v6  ;;  %v7635_v43 = vld [vmem:[#allocation132_spill] sm:$0xff]  ;;  %v7650_v6 = vld [vmem:[#allocation102_spill] sm:$0xff] }
 0x222   :  { %v1404_v59 = vmul.f32 %v4434_v26, %v1234_v21  ;;  %v3872_v10 = vpack.c.bf16 %v1021_v16, %v1020_v15  ;;  %v7636_v21 = vld [vmem:[#allocation38_spill] sm:$0xff]  ;;  %v6517_v26 = vld [vmem:[%s7071_s0 + $0x118] sm:$0xff] }
 0x223   :  { %v1246_v17 = vpop.permute.xlu1 %1245  ;;  %1521 = vperm.xlu0 %4308, %v7624_v46   ;;  %3865 = vmatpush1.bf16.msra.mxu1 %v3864_v2  ;;  %v7638_v46 = vld [vmem:[#allocation96_spill] sm:$0xff] }
 0x224   :  { %3867 = vmatprep.subr.bf16.mxu1 %v3866_v3  ;;  %v3870_v7 = vpack.c.bf16 %v1405_v40, %v1404_v59  ;;  %v1407_v47 = vmul.f32 %v4437_v27, %v1246_v17  ;;  %v1024_v3 = vmul.f32 %v6491_v18, %v7636_v21  ;;  %v1027_v8 = vmul.f32 %v6517_v26, %v7638_v46  ;;  %v7639_v40 = vld [vmem:[#allocation6_spill] sm:$0xff] }
 0x225   :  { %1657 = vperm.xlu1 %4309, %v7626_v60   ;;  %v1242_v14 = vpop.permute.xlu0 %1241 }
 0x226   :  { %v1406_v42 = vmul.f32 %v4436_v52, %v1242_v14  ;;  %v3880_v17 = vpack.c.bf16 %v1025_v44, %v1024_v3  ;;  %v7640_v14 = vld [vmem:[#allocation77_spill] sm:$0xff]  ;;  %v7642_v52 = vld [vmem:[#allocation62_spill] sm:$0xff]  ;;  %v7652_v3 = vld [vmem:[#allocation19_spill] sm:$0xff] }
 0x227   :  { %v1254_v4 = vpop.permute.xlu1 %1253  ;;  %1661 = vperm.xlu0 %4308, %v7628_v63   ;;  %3869 = vmatpush1.bf16.msra.mxu1 %v3868_v31 }
 0x228   :  { %3871 = vmatprep.subr.bf16.mxu1 %v3870_v7  ;;  %v3874_v22 = vpack.c.bf16 %v1407_v47, %v1406_v42  ;;  %v1409_v34 = vmul.f32 %v6499_v62, %v1254_v4  ;;  %v7641_v7 = vld [vmem:[#allocation41_spill] sm:$0xff]  ;;  %v1026_v42 = vmul.f32 %v6508_v57, %v7642_v52  ;;  %v7643_v4 = vld [vmem:[#allocation104_spill] sm:$0xff]  ;;  %v7644_v47 = vld [vmem:[#allocation98_spill] sm:$0xff] }
 0x229   :  { %1601 = vperm.xlu1 %4309, %v7630_v24   ;;  %v1250_v51 = vpop.permute.xlu0 %1249  ;;  %v6547_v24 = vld [vmem:[%s7071_s0 + $0x130] sm:$0xff] }
 0x22a   :  { %v1408_v0 = vmul.f32 %v6491_v18, %v1250_v51  ;;  %v3884_v27 = vpack.c.bf16 %v1027_v8, %v1026_v42  ;;  %v7655_v8 = vld [vmem:[#allocation134_spill] sm:$0xff]  ;;  %v7657_v52 = vld [vmem:[#allocation12_spill] sm:$0xff] }
 0x22b   :  { %v1262_v11 = vpop.permute.xlu1 %1261  ;;  %1605 = vperm.xlu0 %4308, %v7632_v29   ;;  %3873 = vmatpush1.bf16.msra.mxu1 %v3872_v10  ;;  %v1029_v10 = vmul.f32 %v6537_v33, %v7644_v47  ;;  %v6557_v29 = vld [vmem:[%s7071_s0 + $0x138] sm:$0xff]  ;;  %v7659_v47 = vld [vmem:[#allocation30_spill] sm:$0xff] }
 0x22c   :  { %3875 = vmatprep.subr.bf16.mxu1 %v3874_v22  ;;  %v3878_v53 = vpack.c.bf16 %v1409_v34, %v1408_v0  ;;  %v1411_v59 = vmul.f32 %v6517_v26, %v1262_v11  ;;  %v7646_v0 = vld [vmem:[#allocation101_spill] sm:$0xff]  ;;  %v1028_v11 = vmul.f32 %v6527_v37, %v7648_v45  ;;  %v1031_v44 = vmul.f32 %v6557_v29, %v7650_v6  ;;  %v6607_v6 = vld [vmem:[%s7071_s0 + $0x160] sm:$0xff] }
 0x22d   :  { %1729 = vperm.xlu1 %4309, %v7633_v28   ;;  %v1258_v19 = vpop.permute.xlu0 %1257  ;;  %7664 = vst [vmem:[#allocation11_spill] sm:$0xff] %v6607_v6 }
 0x22e   :  { %v1410_v2 = vmul.f32 %v6508_v57, %v1258_v19  ;;  %v3888_v19 = vpack.c.bf16 %v1029_v10, %v1028_v11  ;;  %v7660_v10 = vld [vmem:[#allocation97_spill] sm:$0xff] }
 0x22f   :  { %v1270_v1 = vpop.permute.xlu1 %1269  ;;  %1733 = vperm.xlu0 %4308, %v7635_v43   ;;  %3877 = vmatpush1.bf16.msra.mxu1 %v3876_v13  ;;  %v7649_v13 = vld [vmem:[#allocation26_spill] sm:$0xff] }
 0x230   :  { %3879 = vmatprep.subr.bf16.mxu1 %v3878_v53  ;;  %v3882_v31 = vpack.c.bf16 %v1411_v59, %v1410_v2  ;;  %v1413_v15 = vmul.f32 %v6537_v33, %v1270_v1  ;;  %v7651_v53 = vld [vmem:[#allocation10_spill] sm:$0xff]  ;;  %v7653_v59 = vld [vmem:[#allocation45_spill] sm:$0xff] }
 0x231   :  { %1537 = vperm.xlu1 %4309, %v7637_v25   ;;  %v1266_v49 = vpop.permute.xlu0 %1265  ;;  %v6567_v1 = vld [vmem:[%s7071_s0 + $0x140] sm:$0xff] }
 0x232   :  { %2803 = vmatmul.mubr.f32.vlgmr.msra.gmra.mrb[0].mxu1 %v7639_v40  ;;  %v1412_v16 = vmul.f32 %v6527_v37, %v1266_v49  ;;  %v7654_v25 = vld [vmem:[#allocation94_spill] sm:$0xff] }
 0x233   :  { %v1278_v60 = vpop.permute.xlu1 %1277  ;;  %1541 = vperm.xlu0 %4308, %v7640_v14   ;;  %2808 = vmatprep.mubr.f32.mxu1 %v7641_v7  ;;  %v1030_v49 = vmul.f32 %v6547_v24, %v7654_v25 }
 0x234   :  { %3881 = vmatpush1.bf16.msra.mxu1 %v3880_v17  ;;  %v3886_v12 = vpack.c.bf16 %v1413_v15, %v1412_v16  ;;  %v1415_v34 = vmul.f32 %v6557_v29, %v1278_v60  ;;  %v6577_v17 = vld [vmem:[%s7071_s0 + $0x148] sm:$0xff]  ;;  %v7656_v60 = vld [vmem:[#allocation106_spill] sm:$0xff]  ;;  %v6587_v15 = vld [vmem:[%s7071_s0 + $0x150] sm:$0xff] }
 0x235   :  { %1665 = vperm.xlu1 %4309, %v7643_v4   ;;  %3883 = vmatprep.subr.bf16.mxu1 %v3882_v31  ;;  %v1274_v63 = vpop.permute.xlu0 %1273  ;;  %v3892_v16 = vpack.c.bf16 %v1031_v44, %v1030_v49  ;;  %v1033_v14 = vmul.f32 %v6577_v17, %v7656_v60  ;;  %v6617_v49 = vld [vmem:[%s7071_s0 + $0x168] sm:$0xff]  ;;  %v7670_v60 = vld [vmem:[#allocation114_spill] sm:$0xff] }
 0x236   :  { %2809 = vmatmul.mubr.f32.gmra.mrb[2].mxu1 %v7645_v5  ;;  %v1414_v51 = vmul.f32 %v6547_v24, %v1274_v63  ;;  %7668 = vst [vmem:[#allocation60_spill] sm:$0xff] %v6617_v49 }
 0x237   :  { %v1286_v22 = vpop.permute.xlu1 %1285  ;;  %1669 = vperm.xlu0 %4308, %v7646_v0   ;;  %2814 = vmatprep.mubr.f32.mxu1 %v7647_v50  ;;  %v7661_v0 = vld [vmem:[#allocation40_spill] sm:$0xff] }
 0x238   :  { %3885 = vmatpush1.bf16.msra.mxu1 %v3884_v27  ;;  %v3890_v2 = vpack.c.bf16 %v1415_v34, %v1414_v51  ;;  %v1417_v46 = vmul.f32 %v6577_v17, %v1286_v22  ;;  %v7658_v27 = vld [vmem:[#allocation135_spill] sm:$0xff]  ;;  %v6597_v51 = vld [vmem:[%s7071_s0 + $0x158] sm:$0xff]  ;;  %v7662_v34 = vld [vmem:[#allocation110_spill] sm:$0xff] }
 0x239   :  { %1609 = vperm.xlu1 %4309, %v7649_v13   ;;  %3887 = vmatprep.subr.bf16.mxu1 %v3886_v12  ;;  %v1282_v28 = vpop.permute.xlu0 %1281  ;;  %v1032_v12 = vmul.f32 %v6567_v1, %v7660_v10  ;;  %v1035_v13 = vmul.f32 %v6597_v51, %v7662_v34  ;;  %v6637_v34 = vld [vmem:[%s7071_s0 + $0x178] sm:$0xff] }
 0x23a   :  { %2815 = vmatmul.mubr.f32.gmra.mrb[4].mxu1 %v7651_v53  ;;  %v1416_v43 = vmul.f32 %v6567_v1, %v1282_v28  ;;  %v7663_v28 = vld [vmem:[#allocation14_spill] sm:$0xff]  ;;  %7676 = vst [vmem:[#allocation54_spill] sm:$0xff] %v6637_v34 }
 0x23b   :  { %v1294_v21 = vpop.permute.xlu1 %1293  ;;  %1613 = vperm.xlu0 %4308, %v7652_v3   ;;  %2820 = vmatprep.mubr.f32.mxu1 %v7653_v59  ;;  %v3896_v11 = vpack.c.bf16 %v1033_v14, %v1032_v12  ;;  %v7667_v3 = vld [vmem:[#allocation99_spill] sm:$0xff]  ;;  %v1037_v14 = vmul.f32 %v6617_v49, %v7670_v60 }
 0x23c   :  { %3889 = vmatpush1.bf16.msra.mxu1 %v3888_v19  ;;  %v3894_v42 = vpack.c.bf16 %v1417_v46, %v1416_v43  ;;  %v1419_v22 = vmul.f32 %v6597_v51, %v1294_v21  ;;  %v7665_v43 = vld [vmem:[#allocation17_spill] sm:$0xff]  ;;  %v1034_v25 = vmul.f32 %v6587_v15, %v7667_v3 }
 0x23d   :  { %1737 = vperm.xlu1 %4309, %v7655_v8   ;;  %3891 = vmatprep.subr.bf16.mxu1 %v3890_v2  ;;  %v1290_v31 = vpop.permute.xlu0 %1289  ;;  %v7666_v21 = vld [vmem:[#allocation49_spill] sm:$0xff]  ;;  %v7669_v8 = vld [vmem:[#allocation108_spill] sm:$0xff] }
 0x23e   :  { %2821 = vmatmul.mubr.f32.gmra.mrb[6].mxu1 %v7657_v52  ;;  %v1418_v4 = vmul.f32 %v6587_v15, %v1290_v31  ;;  %v7715_v52 = vld [vmem:[#allocation31_spill] sm:$0xff] }
 0x23f   :  { %v1302_v63 = vpop.permute.xlu1 %1301  ;;  %1741 = vperm.xlu0 %4308, %v7658_v27   ;;  %2826 = vmatprep.mubr.f32.mxu1 %v7659_v47  ;;  %v6627_v27 = vld [vmem:[%s7071_s0 + $0x170] sm:$0xff] }
 0x240   :  { %3893 = vmatpush1.bf16.msra.mxu1 %v3892_v16  ;;  %v3898_v19 = vpack.c.bf16 %v1419_v22, %v1418_v4  ;;  %v1421_v46 = vmul.f32 %v6617_v49, %v1302_v63  ;;  %v3900_v16 = vpack.c.bf16 %v1035_v13, %v1034_v25  ;;  %7672 = vst [vmem:[#allocation75_spill] sm:$0xff] %v6627_v27  ;;  %v7673_v63 = vld [vmem:[#allocation105_spill] sm:$0xff] }
 0x241   :  { %1545 = vperm.xlu1 %4309, %v7661_v0   ;;  %3895 = vmatprep.subr.bf16.mxu1 %v3894_v42  ;;  %v1298_v45 = vpop.permute.xlu0 %1297  ;;  %v7671_v42 = vld [vmem:[#allocation16_spill] sm:$0xff]  ;;  %v7674_v22 = vld [vmem:[#allocation33_spill] sm:$0xff]  ;;  %v7675_v0 = vld [vmem:[#allocation103_spill] sm:$0xff] }
 0x242   :  { %2827 = vmatmul.mubr.f32.gmra.mrb[8].mxu1 %v7663_v28  ;;  %v1420_v44 = vmul.f32 %v6607_v6, %v1298_v45  ;;  %v1036_v45 = vmul.f32 %v6607_v6, %v7675_v0  ;;  %v7678_v25 = vld [vmem:[#allocation117_spill] sm:$0xff] }
 0x243   :  { %v1310_v2 = vpop.permute.xlu1 %1309  ;;  %1549 = vperm.xlu0 %4308, %v7665_v43   ;;  %2832 = vmatprep.mubr.f32.mxu1 %v7666_v21  ;;  %v7700_v21 = vld [vmem:[#allocation43_spill] sm:$0xff] }
 0x244   :  { %3897 = vmatpush1.bf16.msra.mxu1 %v3896_v11  ;;  %v3902_v4 = vpack.c.bf16 %v1421_v46, %v1420_v44  ;;  %v1423_v13 = vmul.f32 %v6637_v34, %v1310_v2  ;;  %v3904_v3 = vpack.c.bf16 %v1037_v14, %v1036_v45  ;;  %v1039_v46 = vmul.f32 %v6637_v34, %v7678_v25  ;;  %v7682_v14 = vld [vmem:[#allocation107_spill] sm:$0xff] }
 0x245   :  { %1673 = vperm.xlu1 %4309, %v7669_v8   ;;  %3899 = vmatprep.subr.bf16.mxu1 %v3898_v19  ;;  %v1306_v31 = vpop.permute.xlu0 %1305  ;;  %v7677_v19 = vld [vmem:[#allocation42_spill] sm:$0xff]  ;;  %v1038_v0 = vmul.f32 %v6627_v27, %v7682_v14  ;;  %v7683_v25 = vld [vmem:[#allocation119_spill] sm:$0xff]  ;;  %v7684_v14 = vld [vmem:[#allocation36_spill] sm:$0xff] }
 0x246   :  { %2833 = vmatmul.mubr.f32.gmra.mrb[10].mxu1 %v7671_v42  ;;  %v1422_v10 = vmul.f32 %v6627_v27, %v1306_v31  ;;  %v7679_v8 = vld [vmem:[#allocation18_spill] sm:$0xff]  ;;  %v7691_v42 = vld [vmem:[#allocation81_spill] sm:$0xff] }
 0x247   :  { %v1318_v12 = vpop.permute.xlu1 %1317  ;;  %1677 = vperm.xlu0 %4308, %v7673_v63   ;;  %2838 = vmatprep.mubr.f32.mxu1 %v7674_v22  ;;  %v2643_v11 = vpop.f32.mrb[0].mxu0  ;;  %v7680_v63 = vld [vmem:[#allocation32_spill] sm:$0xff] }
 0x248   :  { %3901 = vmatpush1.bf16.msra.mxu1 %v3900_v16  ;;  %v2645_v44 = vpop.f32.mrb[1].mxu0  ;;  %v3906_v31 = vpack.c.bf16 %v1423_v13, %v1422_v10  ;;  %3430 = vst [vmem:[#allocation3] sm:$0xff] %v2643_v11  ;;  %v6647_v16 = vld [vmem:[%s7071_s0 + $0x180] sm:$0xff]  ;;  %v6657_v10 = vld [vmem:[%s7071_s0 + $0x188] sm:$0xff] }
 0x249   :  { %1617 = vperm.xlu1 %4309, %v7677_v19   ;;  %3903 = vmatprep.subr.bf16.mxu1 %v3902_v4  ;;  %v1314_v43 = vpop.permute.xlu0 %1313  ;;  %v7681_v4 = vld [vmem:[#allocation53_spill] sm:$0xff]  ;;  %3431 = vst [vmem:[#allocation3 + $0x8] sm:$0xff] %v2645_v44  ;;  %v1425_v11 = vmul.f32 %v6657_v10, %v1318_v12 }
 0x24a   :  { %2839 = vmatmul.mubr.f32.gmra.mrb[12].mxu1 %v7679_v8  ;;  %v1424_v2 = vmul.f32 %v6647_v16, %v1314_v43  ;;  %v3908_v43 = vpack.c.bf16 %v1039_v46, %v1038_v0  ;;  %v7689_v8 = vld [vmem:[#allocation39_spill] sm:$0xff] }
 0x24b   :  { %v1326_v60 = vpop.permute.xlu1 %1325  ;;  %1621 = vperm.xlu0 %4308, %v7680_v63   ;;  %2844 = vmatprep.mubr.f32.mxu1 %v7681_v4  ;;  %v2649_v45 = vpop.f32.mrb[2].mxu0  ;;  %v1041_v63 = vmul.f32 %v6657_v10, %v7683_v25  ;;  %v7688_v4 = vld [vmem:[#allocation71_spill] sm:$0xff] }
 0x24c   :  { %3905 = vmatpush1.bf16.msra.mxu1 %v3904_v3  ;;  %v2651_v13 = vpop.f32.mrb[3].mxu0  ;;  %v3910_v44 = vpack.c.bf16 %v1425_v11, %v1424_v2  ;;  %3435 = vst [vmem:[#allocation3 + $0x28] sm:$0xff] %v2649_v45  ;;  %v6667_v3 = vld [vmem:[%s7071_s0 + $0x190] sm:$0xff]  ;;  %v4457_v2 = vld [vmem:[%s7071_s0 + $0x198] sm:$0xff] }
 0x24d   :  { %1745 = vperm.xlu1 %4309, %v6285_v61   ;;  %3907 = vmatprep.subr.bf16.mxu1 %v3906_v31  ;;  %v1322_v19 = vpop.permute.xlu0 %1321  ;;  %v7685_v61 = vld [vmem:[#allocation57_spill] sm:$0xff]  ;;  %v7686_v31 = vld [vmem:[#allocation111_spill] sm:$0xff]  ;;  %3436 = vst [vmem:[#allocation3 + $0x30] sm:$0xff] %v2651_v13 }
 0x24e   :  { %2845 = vmatmul.mubr.f32.gmra.mrb[14].mxu1 %v7684_v14  ;;  %v1426_v12 = vmul.f32 %v6667_v3, %v1322_v19  ;;  %v1040_v46 = vmul.f32 %v6647_v16, %v7686_v31  ;;  %v7687_v45 = vld [vmem:[#allocation121_spill] sm:$0xff]  ;;  %v1427_v14 = vmul.f32 %v4457_v2, %v1326_v60  ;;  %v7690_v31 = vld [vmem:[#allocation115_spill] sm:$0xff] }
 0x24f   :  { %1749 = vperm.xlu0 %4308, %v6300_v35   ;;  %2850 = vmatprep.mubr.f32.mxu1 %v7685_v61  ;;  %v2655_v25 = vpop.f32.mrb[4].mxu0  ;;  %v1043_v11 = vmul.f32 %v4457_v2, %v7687_v45  ;;  %v1042_v13 = vmul.f32 %v6667_v3, %v7690_v31  ;;  %v7692_v45 = vld [vmem:[#allocation20_spill] sm:$0xff] }
 0x250   :  { %v1578_v0 = vpop.permute.xlu1 %1577  ;;  %3909 = vmatpush1.bf16.msra.mxu1 %v3908_v43  ;;  %v2657_v19 = vpop.f32.mrb[5].mxu0  ;;  %v3912_v61 = vpack.c.bf16 %v1041_v63, %v1040_v46  ;;  %v3914_v22 = vpack.c.bf16 %v1427_v14, %v1426_v12  ;;  %3440 = vst [vmem:[#allocation3 + $0x50] sm:$0xff] %v2655_v25  ;;  %v7693_v46 = vld [vmem:[#allocation112_spill] sm:$0xff]  ;;  %v7695_v25 = vld [vmem:[#allocation61_spill] sm:$0xff] }
 0x251   :  { %1553 = vperm.xlu1 %4309, %v7688_v4   ;;  %3911 = vmatprep.subr.bf16.mxu1 %v3910_v44  ;;  %v1330_v35 = vpop.permute.xlu0 %1329  ;;  %v6683_v43 = vmul.f32 %v6380_v41, %v1578_v0  ;;  %3441 = vst [vmem:[#allocation3 + $0x58] sm:$0xff] %v2657_v19  ;;  %v3916_v44 = vpack.c.bf16 %v1043_v11, %v1042_v13  ;;  %v6694_v41 = vld [vmem:[%s7071_s0 + $0x1a8] sm:$0xff]  ;;  %v7696_v11 = vld [vmem:[#allocation109_spill] sm:$0xff]  ;;  %v7698_v13 = vld [vmem:[#allocation118_spill] sm:$0xff] }
 0x252   :  { %2851 = vmatmul.mubr.f32.gmra.mrb[16].mxu1 %v7689_v8  ;;  %v7697_v19 = vld [vmem:[#allocation23_spill] sm:$0xff] }
 0x253   :  { %1557 = vperm.xlu0 %4308, %v7691_v42   ;;  %2856 = vmatprep.mubr.f32.mxu1 %v7692_v45  ;;  %v2661_v4 = vpop.f32.mrb[6].mxu0  ;;  %v7694_v42 = vld [vmem:[#allocation123_spill] sm:$0xff] }
 0x254   :  { %v1582_v60 = vpop.permute.xlu1 %1581  ;;  %3913 = vmatpush1.bf16.msra.mxu1 %v3912_v61  ;;  %v2663_v31 = vpop.f32.mrb[7].mxu0  ;;  %v1045_v12 = vmul.f32 %v6694_v41, %v7694_v42  ;;  %v6701_v61 = vld [vmem:[%s7071_s0 + $0x1a0] sm:$0xff]  ;;  %3445 = vst [vmem:[#allocation3 + $0x78] sm:$0xff] %v2661_v4 }
 0x255   :  { %v6688_v63 = vmul.f32 %v6389_v32, %v1582_v60  ;;  %1681 = vperm.xlu1 %4309, %v7693_v46   ;;  %3915 = vmatprep.subr.bf16.mxu1 %v3914_v22  ;;  %v1334_v14 = vpop.permute.xlu0 %1333  ;;  %v1428_v32 = vmul.f32 %v6701_v61, %v1330_v35  ;;  %v1044_v60 = vmul.f32 %v6701_v61, %v7698_v13  ;;  %v7699_v35 = vld [vmem:[#allocation88_spill] sm:$0xff]  ;;  %v7701_v4 = vld [vmem:[#allocation50_spill] sm:$0xff] }
 0x256   :  { %v1429_v0 = vmul.f32 %v6694_v41, %v1334_v14  ;;  %2857 = vmatmul.mubr.f32.gmra.mrb[18].mxu1 %v7695_v25  ;;  %3446 = vst [vmem:[#allocation3 + $0x80] sm:$0xff] %v2663_v31 }
 0x257   :  { %1685 = vperm.xlu0 %4308, %v7696_v11   ;;  %2862 = vmatprep.mubr.f32.mxu1 %v7697_v19  ;;  %v2667_v45 = vpop.f32.mrb[8].mxu0  ;;  %v3920_v8 = vpack.c.bf16 %v1045_v12, %v1044_v60  ;;  %v7702_v11 = vld [vmem:[#allocation65_spill] sm:$0xff] }
 0x258   :  { %v3918_v46 = vpack.c.bf16 %v1429_v0, %v1428_v32  ;;  %v1706_v42 = vpop.permute.xlu1 %1705  ;;  %3917 = vmatpush1.bf16.msra.mxu1 %v3916_v44  ;;  %v2669_v14 = vpop.f32.mrb[9].mxu0  ;;  %3450 = vst [vmem:[#allocation3 + $0xa0] sm:$0xff] %v2667_v45  ;;  %v6725_v45 = vld [vmem:[%s7071_s0 + $0x1b8] sm:$0xff] }
 0x259   :  { %1625 = vperm.xlu1 %4309, %v7699_v35   ;;  %v1338_v25 = vpop.permute.xlu0 %1337  ;;  %3451 = vst [vmem:[#allocation3 + $0xa8] sm:$0xff] %v2669_v14  ;;  %v6717_v32 = vmul.f32 %v6667_v3, %v1706_v42  ;;  %v7703_v60 = vld [vmem:[#allocation125_spill] sm:$0xff]  ;;  %v7705_v35 = vld [vmem:[#allocation47_spill] sm:$0xff]  ;;  %v7706_v14 = vld [vmem:[#allocation120_spill] sm:$0xff] }
 0x25a   :  { %2863 = vmatmul.mubr.f32.gmra.mrb[20].mxu1 %v7700_v21  ;;  %3919 = vmatprep.subr.bf16.mxu1 %v3918_v46  ;;  %v1047_v46 = vmul.f32 %v6725_v45, %v7703_v60 }
 0x25b   :  { %1629 = vperm.xlu0 %4308, %v7701_v4   ;;  %2868 = vmatprep.mubr.f32.mxu1 %v7702_v11  ;;  %v2673_v31 = vpop.f32.mrb[10].mxu0 }
 0x25c   :  { %v1710_v13 = vpop.permute.xlu1 %1709  ;;  %3921 = vmatpush1.bf16.msra.mxu1 %v3920_v8  ;;  %v2675_v12 = vpop.f32.mrb[11].mxu0  ;;  %v6732_v8 = vld [vmem:[%s7071_s0 + $0x1b0] sm:$0xff]  ;;  %3455 = vst [vmem:[#allocation3 + $0xc8] sm:$0xff] %v2673_v31 }
 0x25d   :  { %v6719_v44 = vmul.f32 %v4457_v2, %v1710_v13  ;;  %1753 = vperm.xlu1 %4309, %v6315_v39   ;;  %v1342_v0 = vpop.permute.xlu0 %1341  ;;  %v1430_v3 = vmul.f32 %v6732_v8, %v1338_v25  ;;  %v7704_v39 = vld [vmem:[#allocation25_spill] sm:$0xff]  ;;  %v1046_v4 = vmul.f32 %v6732_v8, %v7706_v14  ;;  %3456 = vst [vmem:[#allocation3 + $0xd0] sm:$0xff] %v2675_v12  ;;  %v7708_v12 = vld [vmem:[#allocation28_spill] sm:$0xff]  ;;  %v7709_v14 = vld [vmem:[#allocation127_spill] sm:$0xff] }
 0x25e   :  { %v1431_v2 = vmul.f32 %v6725_v45, %v1342_v0  ;;  %2869 = vmatmul.mubr.f32.gmra.mrb[22].mxu1 %v7704_v39  ;;  %v4462_v0 = vld [vmem:[%s7072_s1 + $0x70] sm:$0xff]  ;;  %v7707_v39 = vld [vmem:[#allocation69_spill] sm:$0xff] }
 0x25f   :  { %1757 = vperm.xlu0 %4308, %v6330_v20   ;;  %2874 = vmatprep.mubr.f32.mxu1 %v7705_v35  ;;  %v2679_v25 = vpop.f32.mrb[12].mxu0  ;;  %v3924_v31 = vpack.c.bf16 %v1047_v46, %v1046_v4  ;;  %v4463_v20 = vld [vmem:[%s7072_s1 + $0x78] sm:$0xff]  ;;  %v6758_v46 = vld [vmem:[%s7071_s0 + $0x1c8] sm:$0xff] }
 0x260   :  { %v3922_v13 = vpack.c.bf16 %v1431_v2, %v1430_v3  ;;  %v6743_v60 = vpop.permute.xlu1 %1513  ;;  %v2681_v22 = vpop.f32.mrb[13].mxu0  ;;  %3460 = vst [vmem:[#allocation3 + $0xf0] sm:$0xff] %v2679_v25  ;;  %v1049_v4 = vmul.f32 %v6758_v46, %v7709_v14  ;;  %v7713_v14 = vld [vmem:[#allocation113_spill] sm:$0xff] }
 0x261   :  { %1561 = vperm.xlu1 %4309, %v4462_v0   ;;  %v1346_v42 = vpop.permute.xlu0 %1345  ;;  %3461 = vst [vmem:[#allocation3 + $0xf8] sm:$0xff] %v2681_v22  ;;  %v6766_v22 = vld [vmem:[%s7071_s0 + $0x1c0] sm:$0xff] }
 0x262   :  { %2875 = vmatmul.mubr.f32.gmra.mrb[24].mxu1 %v7707_v39  ;;  %3923 = vmatprep.subr.bf16.mxu1 %v3922_v13  ;;  %v7710_v13 = vld [vmem:[#allocation116_spill] sm:$0xff]  ;;  %v7712_v39 = vld [vmem:[#allocation122_spill] sm:$0xff] }
 0x263   :  { %1565 = vperm.xlu0 %4308, %v4463_v20   ;;  %2880 = vmatprep.mubr.f32.mxu1 %v7708_v12  ;;  %v2685_v2 = vpop.f32.mrb[14].mxu0  ;;  %v1432_v20 = vmul.f32 %v6766_v22, %v1346_v42  ;;  %v7711_v12 = vld [vmem:[#allocation51_spill] sm:$0xff]  ;;  %v1048_v35 = vmul.f32 %v6766_v22, %v7712_v39 }
 0x264   :  { %v6753_v3 = vpop.permute.xlu1 %1517  ;;  %3925 = vmatpush1.bf16.msra.mxu1 %v3924_v31  ;;  %v2687_v25 = vpop.f32.mrb[15].mxu0  ;;  %3465 = vst [vmem:[#allocation3 + $0x118] sm:$0xff] %v2685_v2 }
 0x265   :  { %1689 = vperm.xlu1 %4309, %v7710_v13   ;;  %v1350_v0 = vpop.permute.xlu0 %1349  ;;  %v7714_v13 = vld [vmem:[#allocation73_spill] sm:$0xff]  ;;  %3466 = vst [vmem:[#allocation3 + $0x120] sm:$0xff] %v2687_v25  ;;  %v3928_v28 = vpack.c.bf16 %v1049_v4, %v1048_v35 }
 0x266   :  { %v1433_v31 = vmul.f32 %v6758_v46, %v1350_v0  ;;  %2881 = vmatmul.mubr.f32.gmra.mrb[26].mxu1 %v7711_v12  ;;  %v7716_v0 = vld [vmem:[#allocation7_spill] sm:$0xff]  ;;  %v6784_v25 = vld [vmem:[%s7071_s0 + $0x1d8] sm:$0xff] }
 0x267   :  { %1693 = vperm.xlu0 %4308, %v7713_v14   ;;  %2886 = vmatprep.mubr.f32.mxu1 %v7714_v13  ;;  %v2691_v19 = vpop.f32.mrb[16].mxu0  ;;  %v7719_v14 = vld [vmem:[#allocation124_spill] sm:$0xff] }
 0x268   :  { %v3926_v11 = vpack.c.bf16 %v1433_v31, %v1432_v20  ;;  %v6775_v21 = vpop.permute.xlu1 %1641  ;;  %v2693_v47 = vpop.f32.mrb[17].mxu0  ;;  %3470 = vst [vmem:[#allocation3 + $0x140] sm:$0xff] %v2691_v19  ;;  %v7717_v20 = vld [vmem:[#allocation129_spill] sm:$0xff]  ;;  %v6791_v19 = vld [vmem:[%s7071_s0 + $0x1d0] sm:$0xff] }
 0x269   :  { %v1354_v42 = vpop.permute.xlu0 %1353  ;;  %3471 = vst [vmem:[#allocation3 + $0x148] sm:$0xff] %v2693_v47  ;;  %v1051_v35 = vmul.f32 %v6784_v25, %v7717_v20 }
 0x26a   :  { %2887 = vmatmul.mubr.f32.gmra.mrb[28].mxu1 %v7715_v52  ;;  %3927 = vmatprep.subr.bf16.mxu1 %v3926_v11  ;;  %v1434_v47 = vmul.f32 %v6791_v19, %v1354_v42  ;;  %v7718_v11 = vld [vmem:[#allocation55_spill] sm:$0xff]  ;;  %v7720_v52 = vld [vmem:[#allocation9_spill] sm:$0xff] }
 0x26b   :  { %2892 = vmatprep.mubr.f32.mxu1 %v7716_v0  ;;  %3929 = vmatpush1.bf16.msra.mxu1 %v3928_v28  ;;  %v2697_v2 = vpop.f32.mrb[18].mxu0  ;;  %v1050_v0 = vmul.f32 %v6791_v19, %v7719_v14 }
 0x26c   :  { %v6779_v39 = vpop.permute.xlu1 %1645  ;;  %v2699_v4 = vpop.f32.mrb[19].mxu0  ;;  %3475 = vst [vmem:[#allocation3 + $0x168] sm:$0xff] %v2697_v2  ;;  %v6806_v2 = vld [vmem:[%s7071_s0 + $0x1e8] sm:$0xff] }
 0x26d   :  { %v1358_v31 = vpop.permute.xlu0 %1357  ;;  %3476 = vst [vmem:[#allocation3 + $0x170] sm:$0xff] %v2699_v4  ;;  %v3932_v59 = vpack.c.bf16 %v1051_v35, %v1050_v0  ;;  %7721 = vst [vmem:[#allocation100_spill] sm:$0xff] %v6806_v2  ;;  %v7722_v4 = vld [vmem:[#allocation131_spill] sm:$0xff]  ;;  %v6813_v0 = vld [vmem:[%s7071_s0 + $0x1e0] sm:$0xff] }
 0x26e   :  { %v1435_v28 = vmul.f32 %v6784_v25, %v1358_v31  ;;  %2893 = vmatmul.mubr.f32.gmra.mrb[30].mxu1 %v7718_v11  ;;  %7723 = vst [vmem:[#allocation68_spill] sm:$0xff] %v6813_v0 }
 0x26f   :  { %2963 = vmatprep.mubr.f32.mxu1 %v7720_v52  ;;  %v2703_v12 = vpop.f32.mrb[20].mxu0 }
 0x270   :  { %v3930_v20 = vpack.c.bf16 %v1435_v28, %v1434_v47  ;;  %v6799_v13 = vpop.permute.xlu1 %1585  ;;  %v2705_v53 = vpop.f32.mrb[21].mxu0  ;;  %3480 = vst [vmem:[#allocation3 + $0x190] sm:$0xff] %v2703_v12  ;;  %v1053_v47 = vmul.f32 %v6806_v2, %v7722_v4  ;;  %v7724_v12 = vld [vmem:[#allocation126_spill] sm:$0xff] }
 0x271   :  { %v1362_v50 = vpop.permute.xlu0 %1361  ;;  %3481 = vst [vmem:[#allocation3 + $0x198] sm:$0xff] %v2705_v53  ;;  %v1052_v35 = vmul.f32 %v6813_v0, %v7724_v12  ;;  %v7727_v12 = vld [vmem:[#allocation128_spill] sm:$0xff] }
 0x272   :  { %3931 = vmatprep.subr.bf16.mxu1 %v3930_v20  ;;  %v1436_v53 = vmul.f32 %v6813_v0, %v1362_v50  ;;  %v7728_v0 = vld [vmem:[#allocation34_spill] sm:$0xff] }
 0x273   :  { %3933 = vmatpush1.bf16.msra.mxu1 %v3932_v59  ;;  %v2709_v31 = vpop.f32.mrb[22].mxu0  ;;  %v3936_v5 = vpack.c.bf16 %v1053_v47, %v1052_v35  ;;  %v6833_v47 = vld [vmem:[%s7071_s0 + $0x1f0] sm:$0xff] }
 0x274   :  { %v6801_v42 = vpop.permute.xlu1 %1589  ;;  %v2711_v28 = vpop.f32.mrb[23].mxu0  ;;  %3485 = vst [vmem:[#allocation3 + $0x1b8] sm:$0xff] %v2709_v31  ;;  %v7726_v31 = vld [vmem:[#allocation133_spill] sm:$0xff]  ;;  %v1054_v35 = vmul.f32 %v6833_v47, %v7727_v12 }
 0x275   :  { %v1366_v14 = vpop.permute.xlu0 %1365  ;;  %3486 = vst [vmem:[#allocation3 + $0x1c0] sm:$0xff] %v2711_v28  ;;  %v7731_v12 = vld [vmem:[#allocation37_spill] sm:$0xff] }
 0x276   :  { %v1437_v59 = vmul.f32 %v6806_v2, %v1366_v14  ;;  %v6826_v14 = vld [vmem:[%s7071_s0 + $0x1f8] sm:$0xff] }
 0x277   :  { %v2715_v4 = vpop.f32.mrb[24].mxu0  ;;  %7725 = vst [vmem:[#allocation21_spill] sm:$0xff] %v6826_v14  ;;  %v1055_v28 = vmul.f32 %v6826_v14, %v7726_v31 }
 0x278   :  { %v3934_v20 = vpack.c.bf16 %v1437_v59, %v1436_v53  ;;  %v6819_v11 = vpop.permute.xlu1 %1713  ;;  %v2717_v7 = vpop.f32.mrb[25].mxu0  ;;  %3490 = vst [vmem:[#allocation3 + $0x1e0] sm:$0xff] %v2715_v4 }
 0x279   :  { %v1370_v40 = vpop.permute.xlu0 %1369  ;;  %3491 = vst [vmem:[#allocation3 + $0x1e8] sm:$0xff] %v2717_v7  ;;  %v3940_v27 = vpack.c.bf16 %v1055_v28, %v1054_v35 }
 0x27a   :  { %3935 = vmatprep.subr.bf16.mxu1 %v3934_v20  ;;  %v1438_v7 = vmul.f32 %v6833_v47, %v1370_v40 }
 0x27b   :  { %3937 = vmatpush1.bf16.msra.mxu1 %v3936_v5  ;;  %v2721_v50 = vpop.f32.mrb[26].mxu0 }
 0x27c   :  { %v6821_v34 = vpop.permute.xlu1 %1717  ;;  %v2723_v53 = vpop.f32.mrb[27].mxu0  ;;  %3495 = vst [vmem:[#allocation3 + $0x208] sm:$0xff] %v2721_v50 }
 0x27d   :  { %v1374_v59 = vpop.permute.xlu0 %1373  ;;  %3496 = vst [vmem:[#allocation3 + $0x210] sm:$0xff] %v2723_v53 }
 0x27e   :  { %v1439_v5 = vmul.f32 %v6826_v14, %v1374_v59 }
 0x27f   :  { %v2727_v31 = vpop.f32.mrb[28].mxu0 }
 0x280   :  { %v3938_v20 = vpack.c.bf16 %v1439_v5, %v1438_v7  ;;  %v6839_v4 = vpop.permute.xlu1 %1525  ;;  %v2729_v49 = vpop.f32.mrb[29].mxu0  ;;  %3500 = vst [vmem:[#allocation3 + $0x230] sm:$0xff] %v2727_v31  ;;  %v7729_v7 = vld [vmem:[#allocation59_spill] sm:$0xff] }
 0x281   :  { %3501 = vst [vmem:[#allocation3 + $0x238] sm:$0xff] %v2729_v49  ;;  %v7730_v49 = vld [vmem:[#allocation13_spill] sm:$0xff]  ;;  %v7732_v31 = vld [vmem:[#allocation63_spill] sm:$0xff] }
 0x282   :  { %v1570_v6 = vpop.permute.xlu0 %1569  ;;  %3939 = vmatprep.subr.bf16.mxu1 %v3938_v20 }
 0x283   :  { %3941 = vmatpush1.bf16.msra.mxu1 %v3940_v27  ;;  %v2733_v40 = vpop.f32.mrb[30].mxu0  ;;  %v1776_v50 = vmul.f32 %v6363_v56, %v1570_v6  ;;  %v7733_v6 = vld [vmem:[#allocation79_spill] sm:$0xff] }
 0x284   :  { %v6841_v2 = vpop.permute.xlu1 %1649  ;;  %v2735_v59 = vpop.f32.mrb[31].mxu0  ;;  %3505 = vst [vmem:[#allocation3 + $0x258] sm:$0xff] %v2733_v40 }
 0x285   :  { %3506 = vst [vmem:[#allocation3 + $0x260] sm:$0xff] %v2735_v59 }
 0x286   :  { %v1574_v14 = vpop.permute.xlu0 %1573  ;;  %2964 = vmatmul.mubr.f32.vlgmr.msra.gmra.mrb[0].mxu1 %v7728_v0 }
 0x287   :  { %v1777_v53 = vmul.f32 %v6371_v9, %v1574_v14  ;;  %2969 = vmatprep.mubr.f32.mxu1 %v7729_v7 }
 0x288   :  { %v6847_v28 = vpop.permute.xlu1 %1653 }
 0x289   :  { %v3942_v5 = vpack.c.bf16 %v1777_v53, %v1776_v50  ;;  %v7734_v50 = vld [vmem:[#allocation67_spill] sm:$0xff]  ;;  %v7735_v53 = vld [vmem:[#allocation44_spill] sm:$0xff] }
 0x28a   :  { %v1698_v27 = vpop.permute.xlu0 %1697  ;;  %2970 = vmatmul.mubr.f32.gmra.mrb[2].mxu1 %v7730_v49  ;;  %v7736_v49 = vld [vmem:[#allocation83_spill] sm:$0xff] }
 0x28b   :  { %2975 = vmatprep.mubr.f32.mxu1 %v7731_v12  ;;  %3943 = vmatprep.subr.bf16.mxu0 %v3942_v5  ;;  %v1808_v56 = vmul.f32 %v6647_v16, %v1698_v27  ;;  %v4472_v16 = vld [vmem:[%s7071_s0] sm:$0xff]  ;;  %v4473_v27 = vld [vmem:[%s7071_s0 + $0x8] sm:$0xff] }
 0x28c   :  { %v1594_v35 = vpop.permute.xlu1 %1593 }
 0x28e   :  { %v1702_v20 = vpop.permute.xlu0 %1701  ;;  %2976 = vmatmul.mubr.f32.gmra.mrb[4].mxu1 %v7732_v31 }
 0x28f   :  { %v1809_v9 = vmul.f32 %v6657_v10, %v1702_v20  ;;  %2981 = vmatprep.mubr.f32.mxu1 %v7733_v6 }
 0x290   :  { %v1598_v14 = vpop.permute.xlu1 %1597 }
 0x291   :  { %v3974_v40 = vpack.c.bf16 %v1809_v9, %v1808_v56  ;;  %v7737_v56 = vld [vmem:[#allocation48_spill] sm:$0xff] }
 0x292   :  { %v1506_v59 = vpop.permute.xlu0 %1505  ;;  %2982 = vmatmul.mubr.f32.gmra.mrb[6].mxu1 %v7734_v50  ;;  %v1781_v50 = vmul.f32 %v6407_v55, %v6801_v42 }
 0x293   :  { %2987 = vmatprep.mubr.f32.mxu1 %v7735_v53  ;;  %3975 = vmatprep.subr.bf16.mxu1 %v3974_v40  ;;  %v1760_v10 = vmul.f32 %v4472_v16, %v1506_v59  ;;  %v4474_v40 = vld [vmem:[%s7071_s0 + $0x18] sm:$0xff]  ;;  %v7738_v59 = vld [vmem:[#allocation74_spill] sm:$0xff] }
 0x294   :  { %v6857_v12 = vpop.permute.xlu1 %1721  ;;  %v1763_v53 = vmul.f32 %v4474_v40, %v6753_v3  ;;  %v7741_v40 = vld [vmem:[#allocation52_spill] sm:$0xff] }
 0x296   :  { %v1510_v5 = vpop.permute.xlu0 %1509  ;;  %2988 = vmatmul.mubr.f32.gmra.mrb[8].mxu1 %v7736_v49 }
 0x297   :  { %v1761_v20 = vmul.f32 %v4473_v27, %v1510_v5  ;;  %2993 = vmatprep.mubr.f32.mxu1 %v7737_v56  ;;  %v4475_v5 = vld [vmem:[%s7071_s0 + $0x10] sm:$0xff]  ;;  %v7739_v27 = vld [vmem:[#allocation85_spill] sm:$0xff]  ;;  %v1780_v56 = vmul.f32 %v6398_v36, %v6799_v13  ;;  %v1795_v13 = vmul.f32 %v6517_v26, %v6779_v39  ;;  %v1782_v39 = vmul.f32 %v6416_v30, %v1594_v35  ;;  %v7746_v35 = vld [vmem:[#allocation78_spill] sm:$0xff] }
 0x298   :  { %v1726_v9 = vpop.permute.xlu1 %1725  ;;  %v1762_v16 = vmul.f32 %v4475_v5, %v6743_v60  ;;  %v7742_v5 = vld [vmem:[#allocation76_spill] sm:$0xff] }
 0x299   :  { %v3944_v49 = vpack.c.bf16 %v1761_v20, %v1760_v10  ;;  %v7740_v10 = vpack.c.bf16 %v6688_v63, %v6683_v43  ;;  %v3950_v42 = vpack.c.bf16 %v1781_v50, %v1780_v56  ;;  %v1783_v43 = vmul.f32 %v6425_v38, %v1598_v14  ;;  %v7743_v50 = vld [vmem:[#allocation86_spill] sm:$0xff]  ;;  %v7744_v26 = vld [vmem:[#allocation56_spill] sm:$0xff]  ;;  %v4478_v14 = vld [vmem:[%s7071_s0 + $0x38] sm:$0xff] }
 0x29a   :  { %v1634_v6 = vpop.permute.xlu0 %1633  ;;  %2994 = vmatmul.mubr.f32.gmra.mrb[10].mxu1 %v7738_v59  ;;  %v3948_v55 = vpack.c.bf16 %v1763_v53, %v1762_v16  ;;  %v1813_v53 = vmul.f32 %v6694_v41, %v6821_v34  ;;  %v1794_v38 = vmul.f32 %v6508_v57, %v6775_v21  ;;  %v7745_v41 = vpack.c.bf16 %v6719_v44, %v6717_v32 }
 0x29b   :  { %2999 = vmatprep.mubr.f32.mxu1 %v7739_v27  ;;  %3945 = vmatpush3.bf16.msra.mxu0 %v3944_v49  ;;  %v1792_v59 = vmul.f32 %v6491_v18, %v1634_v6  ;;  %v4476_v18 = vld [vmem:[%s7071_s0 + $0x28] sm:$0xff]  ;;  %v4477_v6 = vld [vmem:[%s7071_s0 + $0x20] sm:$0xff]  ;;  %v1797_v57 = vmul.f32 %v6537_v33, %v6847_v28  ;;  %v3954_v21 = vpack.c.bf16 %v1783_v43, %v1782_v39 }
 0x29c   :  { %v1530_v3 = vpop.permute.xlu1 %1529  ;;  %3947 = vmatprep.subr.bf16.mxu0 %v7740_v10  ;;  %v3980_v10 = vpack.c.bf16 %v1795_v13, %v1794_v38  ;;  %v1815_v32 = vmul.f32 %v6725_v45, %v1726_v9  ;;  %v1814_v33 = vmul.f32 %v6732_v8, %v6857_v12 }
 0x29e   :  { %v1638_v20 = vpop.permute.xlu0 %1637  ;;  %3000 = vmatmul.mubr.f32.gmra.mrb[12].mxu1 %v7741_v40 }
 0x29f   :  { %v1793_v60 = vmul.f32 %v6499_v62, %v1638_v20  ;;  %3005 = vmatprep.mubr.f32.mxu1 %v7742_v5  ;;  %3949 = vmatpush3.bf16.msra.mxu0 %v3948_v55  ;;  %v1765_v62 = vmul.f32 %v4476_v18, %v6839_v4  ;;  %v1812_v4 = vmul.f32 %v6701_v61, %v6819_v11  ;;  %v4479_v61 = vld [vmem:[%s7071_s0 + $0x30] sm:$0xff]  ;;  %v7747_v11 = vld [vmem:[#allocation87_spill] sm:$0xff] }
 0x2a0   :  { %v1534_v49 = vpop.permute.xlu1 %1533  ;;  %3951 = vmatprep.subr.bf16.mxu0 %v3950_v42  ;;  %v1766_v44 = vmul.f32 %v4479_v61, %v1530_v3  ;;  %v1796_v42 = vmul.f32 %v6527_v37, %v6841_v2  ;;  %v3986_v3 = vpack.c.bf16 %v1815_v32, %v1814_v33  ;;  %v7749_v37 = vld [vmem:[#allocation82_spill] sm:$0xff]  ;;  %v7758_v33 = vld [vmem:[#allocation92_spill] sm:$0xff] }
 0x2a1   :  { %v3976_v36 = vpack.c.bf16 %v1793_v60, %v1792_v59  ;;  %v1767_v59 = vmul.f32 %v4478_v14, %v1534_v49  ;;  %v3982_v55 = vpack.c.bf16 %v1813_v53, %v1812_v4  ;;  %v7748_v49 = vld [vmem:[#allocation80_spill] sm:$0xff]  ;;  %v7754_v14 = vld [vmem:[#allocation46_spill] sm:$0xff] }
 0x2a2   :  { %v1522_v63 = vpop.permute.xlu0 %1521  ;;  %3006 = vmatmul.mubr.f32.gmra.mrb[14].mxu1 %v7743_v50  ;;  %v3984_v45 = vpack.c.bf16 %v1797_v57, %v1796_v42 }
 0x2a3   :  { %v1764_v56 = vmul.f32 %v4477_v6, %v1522_v63  ;;  %3011 = vmatprep.mubr.f32.mxu1 %v7744_v26  ;;  %3977 = vmatpush3.bf16.msra.mxu1 %v3976_v36  ;;  %v3956_v28 = vpack.c.bf16 %v1767_v59, %v1766_v44  ;;  %v7757_v44 = vld [vmem:[#allocation66_spill] sm:$0xff] }
 0x2a4   :  { %v1658_v34 = vpop.permute.xlu1 %1657  ;;  %3979 = vmatprep.subr.bf16.mxu1 %v7745_v41 }
 0x2a5   :  { %v3952_v16 = vpack.c.bf16 %v1765_v62, %v1764_v56  ;;  %v1798_v2 = vmul.f32 %v6547_v24, %v1658_v34  ;;  %v7752_v24 = vld [vmem:[#allocation29_spill] sm:$0xff]  ;;  %v4480_v56 = vld [vmem:[%s7071_s0 + $0x40] sm:$0xff] }
 0x2a6   :  { %v1662_v30 = vpop.permute.xlu0 %1661  ;;  %3012 = vmatmul.mubr.f32.gmra.mrb[16].mxu1 %v7746_v35 }
 0x2a7   :  { %3017 = vmatprep.mubr.f32.mxu1 %v7747_v11  ;;  %3953 = vmatpush3.bf16.msra.mxu0 %v3952_v16  ;;  %v1799_v9 = vmul.f32 %v6557_v29, %v1662_v30  ;;  %v7750_v29 = vld [vmem:[#allocation72_spill] sm:$0xff] }
 0x2a8   :  { %v1602_v20 = vpop.permute.xlu1 %1601  ;;  %3981 = vmatpush3.bf16.msra.mxu1 %v3980_v10  ;;  %3955 = vmatprep.subr.bf16.mxu0 %v3954_v21  ;;  %v7755_v10 = vld [vmem:[#allocation58_spill] sm:$0xff] }
 0x2a9   :  { %3983 = vmatprep.subr.bf16.mxu1 %v3982_v55  ;;  %v1784_v36 = vmul.f32 %v6434_v54, %v1602_v20  ;;  %v3988_v12 = vpack.c.bf16 %v1799_v9, %v1798_v2  ;;  %v7751_v54 = vld [vmem:[#allocation22_spill] sm:$0xff]  ;;  %v7756_v55 = vld [vmem:[#allocation89_spill] sm:$0xff] }
 0x2aa   :  { %v1606_v60 = vpop.permute.xlu0 %1605  ;;  %3018 = vmatmul.mubr.f32.gmra.mrb[18].mxu1 %v7748_v49 }
 0x2ab   :  { %v1785_v13 = vmul.f32 %v6443_v23, %v1606_v60  ;;  %3023 = vmatprep.mubr.f32.mxu1 %v7749_v37  ;;  %3957 = vmatpush3.bf16.msra.mxu0 %v3956_v28 }
 0x2ac   :  { %v1730_v43 = vpop.permute.xlu1 %1729  ;;  %3985 = vmatpush3.bf16.msra.mxu1 %v3984_v45  ;;  %v7759_v45 = vld [vmem:[#allocation70_spill] sm:$0xff] }
 0x2ad   :  { %v3958_v8 = vpack.c.bf16 %v1785_v13, %v1784_v36  ;;  %3987 = vmatprep.subr.bf16.mxu1 %v3986_v3  ;;  %v1816_v53 = vmul.f32 %v6766_v22, %v1730_v43  ;;  %v4481_v22 = vld [vmem:[%s7071_s0 + $0x48] sm:$0xff]  ;;  %v4483_v13 = vld [vmem:[%s7071_s0 + $0x58] sm:$0xff] }
 0x2ae   :  { %v1734_v63 = vpop.permute.xlu0 %1733  ;;  %3024 = vmatmul.mubr.f32.gmra.mrb[20].mxu1 %v7750_v29  ;;  %v7760_v3 = vld [vmem:[#allocation95_spill] sm:$0xff] }
 0x2af   :  { %v1817_v18 = vmul.f32 %v6758_v46, %v1734_v63  ;;  %3029 = vmatprep.mubr.f32.mxu1 %v7751_v54  ;;  %3959 = vmatprep.subr.bf16.mxu0 %v3958_v8  ;;  %v7753_v46 = vld [vmem:[#allocation35_spill] sm:$0xff] }
 0x2b0   :  { %v1538_v23 = vpop.permute.xlu1 %1537  ;;  %3989 = vmatpush3.bf16.msra.mxu1 %v3988_v12 }
 0x2b1   :  { %v3990_v62 = vpack.c.bf16 %v1817_v18, %v1816_v53  ;;  %v1768_v38 = vmul.f32 %v4480_v56, %v1538_v23  ;;  %v4484_v23 = vld [vmem:[%s7071_s0 + $0xe0] sm:$0xff] }
 0x2b2   :  { %v1542_v6 = vpop.permute.xlu0 %1541  ;;  %3030 = vmatmul.mubr.f32.gmra.mrb[22].mxu1 %v7752_v24 }
 0x2b3   :  { %v1769_v39 = vmul.f32 %v4481_v22, %v1542_v6  ;;  %3035 = vmatprep.mubr.f32.mxu1 %v7753_v46  ;;  %3991 = vmatprep.subr.bf16.mxu1 %v3990_v62  ;;  %v7761_v22 = vld [vmem:[#allocation68_spill] sm:$0xff] }
 0x2b4   :  { %v1666_v34 = vpop.permute.xlu1 %1665 }
 0x2b5   :  { %v3960_v41 = vpack.c.bf16 %v1769_v39, %v1768_v38  ;;  %v1800_v59 = vmul.f32 %v6567_v1, %v1666_v34  ;;  %v7762_v39 = vld [vmem:[#allocation100_spill] sm:$0xff] }
 0x2b6   :  { %v1670_v4 = vpop.permute.xlu0 %1669  ;;  %3036 = vmatmul.mubr.f32.gmra.mrb[24].mxu1 %v7754_v14 }
 0x2b7   :  { %v1801_v16 = vmul.f32 %v6577_v17, %v1670_v4  ;;  %3041 = vmatprep.mubr.f32.mxu1 %v7755_v10  ;;  %3961 = vmatpush3.bf16.msra.mxu0 %v3960_v41 }
 0x2b8   :  { %v1610_v57 = vpop.permute.xlu1 %1609 }
 0x2b9   :  { %v3992_v21 = vpack.c.bf16 %v1801_v16, %v1800_v59  ;;  %v1786_v32 = vmul.f32 %v6452_v58, %v1610_v57  ;;  %v4486_v16 = vld [vmem:[%s7071_s0 + $0x60] sm:$0xff] }
 0x2ba   :  { %v1614_v30 = vpop.permute.xlu0 %1613  ;;  %3042 = vmatmul.mubr.f32.gmra.mrb[26].mxu1 %v7756_v55 }
 0x2bb   :  { %v1787_v61 = vmul.f32 %v6461_v48, %v1614_v30  ;;  %3047 = vmatprep.mubr.f32.mxu1 %v7757_v44  ;;  %3993 = vmatpush3.bf16.msra.mxu1 %v3992_v21  ;;  %v4482_v48 = vld [vmem:[%s7071_s0 + $0x50] sm:$0xff]  ;;  %v4487_v21 = vld [vmem:[%s7071_s0 + $0x68] sm:$0xff] }
 0x2bc   :  { %v1738_v42 = vpop.permute.xlu1 %1737 }
 0x2bd   :  { %v3962_v20 = vpack.c.bf16 %v1787_v61, %v1786_v32  ;;  %v1818_v17 = vmul.f32 %v6791_v19, %v1738_v42 }
 0x2be   :  { %v1742_v1 = vpop.permute.xlu0 %1741  ;;  %3048 = vmatmul.mubr.f32.gmra.mrb[28].mxu1 %v7758_v33 }
 0x2bf   :  { %v1819_v28 = vmul.f32 %v6784_v25, %v1742_v1  ;;  %3053 = vmatprep.mubr.f32.mxu1 %v7759_v45  ;;  %3963 = vmatprep.subr.bf16.mxu0 %v3962_v20  ;;  %v7763_v20 = vld [vmem:[#allocation11_spill] sm:$0xff] }
 0x2c0   :  { %v1546_v9 = vpop.permute.xlu1 %1545 }
 0x2c1   :  { %v3994_v60 = vpack.c.bf16 %v1819_v28, %v1818_v17  ;;  %v1770_v36 = vmul.f32 %v4482_v48, %v1546_v9  ;;  %v7764_v17 = vld [vmem:[#allocation60_spill] sm:$0xff] }
 0x2c2   :  { %v1550_v58 = vpop.permute.xlu0 %1549  ;;  %3054 = vmatmul.mubr.f32.gmra.mrb[30].mxu1 %v7760_v3  ;;  %v4488_v48 = vld [vmem:[%s7071_s0 + $0xf0] sm:$0xff] }
 0x2c3   :  { %v1771_v19 = vmul.f32 %v4483_v13, %v1550_v58  ;;  %3995 = vmatprep.subr.bf16.mxu1 %v3994_v60  ;;  %3269 = vmatprep.mubr.f32.mxu1 %v7720_v52  ;;  %v4485_v52 = vld [vmem:[%s7071_s0 + $0xe8] sm:$0xff]  ;;  %v4489_v13 = vld [vmem:[%s7071_s0 + $0xf8] sm:$0xff] }
 0x2c4   :  { %v1674_v25 = vpop.permute.xlu1 %1673 }
 0x2c5   :  { %v3964_v2 = vpack.c.bf16 %v1771_v19, %v1770_v36  ;;  %v1802_v8 = vmul.f32 %v6587_v15, %v1674_v25 }
 0x2c6   :  { %v1678_v43 = vpop.permute.xlu0 %1677 }
 0x2c7   :  { %v1803_v12 = vmul.f32 %v6597_v51, %v1678_v43  ;;  %3965 = vmatpush3.bf16.msra.mxu0 %v3964_v2 }
 0x2c8   :  { %v1618_v63 = vpop.permute.xlu1 %1617 }
 0x2c9   :  { %v3996_v53 = vpack.c.bf16 %v1803_v12, %v1802_v8  ;;  %v1788_v62 = vmul.f32 %v4484_v23, %v1618_v63  ;;  %v7765_v12 = vld [vmem:[#allocation21_spill] sm:$0xff] }
 0x2ca   :  { %v1622_v18 = vpop.permute.xlu0 %1621 }
 0x2cb   :  { %v1789_v6 = vmul.f32 %v4485_v52, %v1622_v18  ;;  %3997 = vmatpush3.bf16.msra.mxu1 %v3996_v53 }
 0x2cc   :  { %v1746_v56 = vpop.permute.xlu1 %1745 }
 0x2cd   :  { %v3966_v38 = vpack.c.bf16 %v1789_v6, %v1788_v62  ;;  %v1820_v51 = vmul.f32 %v7761_v22, %v1746_v56  ;;  %v4490_v62 = vld [vmem:[%s7071_s0 + $0x70] sm:$0xff]  ;;  %v4491_v6 = vld [vmem:[%s7071_s0 + $0x78] sm:$0xff]  ;;  %v7766_v22 = vld [vmem:[#allocation75_spill] sm:$0xff]  ;;  %s4520_s0 = smov [#allocation3]  }
 0x2ce   :  { %v1750_v15 = vpop.permute.xlu0 %1749  ;;  %s3515_s11 = sshll.u32 %s4520_s0, 4  ;;  %s3516_s11 = int_to_ptr.vmem [resolvable:$true] %s3515_s11 }
 0x2cf   :  { %v1821_v34 = vmul.f32 %v7762_v39, %v1750_v15  ;;  %3967 = vmatprep.subr.bf16.mxu0 %v3966_v38  ;;  %v7767_v39 = vld [vmem:[#allocation54_spill] sm:$0xff]  ;;  %s4492_s12 = scalar_lea.vmem %s3516_s11, 10240  ;;  %p4497_p1 = scmp.lt.s32.totalorder %s3516_s11, %s3516_s11 }
 0x2d0   :  { %v1554_v41 = vpop.permute.xlu1 %1553  ;;  %p4493_p0 = scmp.ne.s32.totalorder %s3516_s11, %s4492_s12  ;;  %p4498_p2 = scmp.lt.s32.totalorder %s4492_s12, %s4492_s12 }
 0x2d1   :  { %v3998_v4 = vpack.c.bf16 %v1821_v34, %v1820_v51  ;;  %v1772_v57 = vmul.f32 %v4486_v16, %v1554_v41  ;;  %v7770_v16 = vld [vmem:[#allocation8_spill] sm:$0xff] }
 0x2d2   :  { %v1558_v59 = vpop.permute.xlu0 %1557  ;;  %p4499_p3 = por %p4498_p2, %p4497_p1 }
 0x2d3   :  { %v1773_v30 = vmul.f32 %v4487_v21, %v1558_v59  ;;  %3999 = vmatprep.subr.bf16.mxu1 %v3998_v4  ;;  %v7768_v4 = vld [vmem:[#allocation6_spill] sm:$0xff]  ;;  %v7769_v59 = vld [vmem:[#allocation41_spill] sm:$0xff] }
 0x2d4   :  { %v1682_v32 = vpop.permute.xlu1 %1681  ;;  %v7772_v21 = vld [vmem:[#allocation10_spill] sm:$0xff]  ;;  %p4500_p4 = pnand %p4499_p3, %p4493_p0 }
 0x2d5   :  { %v3968_v61 = vpack.c.bf16 %v1773_v30, %v1772_v57  ;;  %v1804_v1 = vmul.f32 %v7763_v20, %v1682_v32  ;;  %v7771_v57 = vld [vmem:[#allocation27_spill] sm:$0xff]  ;;  %v7773_v30 = vld [vmem:[#allocation13_spill] sm:$0xff]  ;;  %v7777_v20 = vld [vmem:[#allocation30_spill] sm:$0xff] }
 0x2d6   :  { %v1686_v42 = vpop.permute.xlu0 %1685  ;;  %v7774_v32 = vld [vmem:[#allocation45_spill] sm:$0xff] }
 0x2d7   :  { %v1805_v28 = vmul.f32 %v7764_v17, %v1686_v42  ;;  %3969 = vmatpush3.bf16.msra.mxu0 %v3968_v61  ;;  %v7775_v61 = vld [vmem:[#allocation37_spill] sm:$0xff]  ;;  %v7776_v42 = vld [vmem:[#allocation12_spill] sm:$0xff]  ;;  %v7780_v17 = vld [vmem:[#allocation67_spill] sm:$0xff] }
 0x2d8   :  { %v1626_v9 = vpop.permute.xlu1 %1625 }
 0x2d9   :  { %v4000_v60 = vpack.c.bf16 %v1805_v28, %v1804_v1  ;;  %v1790_v36 = vmul.f32 %v4488_v48, %v1626_v9  ;;  %v7778_v1 = vld [vmem:[#allocation79_spill] sm:$0xff]  ;;  %v7782_v28 = vld [vmem:[#allocation44_spill] sm:$0xff] }
 0x2da   :  { %v1630_v58 = vpop.permute.xlu0 %1629  ;;  %v7783_v9 = vld [vmem:[#allocation16_spill] sm:$0xff] }
 0x2db   :  { %v1791_v19 = vmul.f32 %v4489_v13, %v1630_v58  ;;  %4001 = vmatpush3.bf16.msra.mxu1 %v4000_v60  ;;  %v7784_v60 = vld [vmem:[#allocation83_spill] sm:$0xff]  ;;  %v7785_v58 = vld [vmem:[#allocation33_spill] sm:$0xff]  ;;  %v7786_v48 = vld [vmem:[#allocation48_spill] sm:$0xff] }
 0x2dc   :  { %v1754_v25 = vpop.permute.xlu1 %1753  ;;  %v7789_v13 = vld [vmem:[#allocation53_spill] sm:$0xff] }
 0x2dd   :  { %v3970_v2 = vpack.c.bf16 %v1791_v19, %v1790_v36  ;;  %v1822_v8 = vmul.f32 %v6833_v47, %v1754_v25  ;;  %v7788_v36 = vld [vmem:[#allocation74_spill] sm:$0xff]  ;;  %v7790_v19 = vld [vmem:[#allocation36_spill] sm:$0xff]  ;;  %v7791_v25 = vld [vmem:[#allocation57_spill] sm:$0xff] }
 0x2de   :  { %v1758_v43 = vpop.permute.xlu0 %1757 }
 0x2df   :  { %v1823_v63 = vmul.f32 %v7765_v12, %v1758_v43  ;;  %3971 = vmatprep.subr.bf16.mxu0 %v3970_v2  ;;  %v7792_v2 = vld [vmem:[#allocation39_spill] sm:$0xff]  ;;  %v7793_v43 = vld [vmem:[#allocation20_spill] sm:$0xff] }
 0x2e0   :  { %v1562_v53 = vpop.permute.xlu1 %1561 }
 0x2e1   :  { %v4002_v18 = vpack.c.bf16 %v1823_v63, %v1822_v8  ;;  %v1774_v52 = vmul.f32 %v4490_v62, %v1562_v53  ;;  %v7794_v8 = vld [vmem:[#allocation61_spill] sm:$0xff] }
 0x2e2   :  { %v1566_v23 = vpop.permute.xlu0 %1565 }
 0x2e3   :  { %v1775_v56 = vmul.f32 %v4491_v6, %v1566_v23  ;;  %4003 = vmatprep.subr.bf16.mxu1 %v4002_v18 }
 0x2e4   :  { %v1690_v38 = vpop.permute.xlu1 %1689 }
 0x2e5   :  { %v3972_v15 = vpack.c.bf16 %v1775_v56, %v1774_v52  ;;  %v1806_v51 = vmul.f32 %v7766_v22, %v1690_v38 }
 0x2e6   :  { %v1694_v47 = vpop.permute.xlu0 %1693 }
 0x2e7   :  { %v1807_v34 = vmul.f32 %v7767_v39, %v1694_v47  ;;  %3973 = vmatpush3.bf16.msra.mxu0 %v3972_v15 }
 0x2e9   :  { %v4004_v41 = vpack.c.bf16 %v1807_v34, %v1806_v51 }
 0x2ea   :  { %3125 = vmatmul.mubr.f32.vlgmr.msra.gmra.mrb[32].mxu0 %v7768_v4 }
 0x2eb   :  { %3129 = vmatprep.mubr.f32.mxu0 %v7769_v59  ;;  %4005 = vmatpush3.bf16.msra.mxu1 %v4004_v41 }
 0x2ee   :  { %3130 = vmatmul.mubr.f32.gmra.mrb[34].mxu0 %v7770_v16  ;;  %3270 = vmatmul.mubr.f32.vlgmr.msra.gmra.mrb[32].mxu1 %v7728_v0  ;;  %v7779_v0 = vld [vmem:[#allocation14_spill] sm:$0xff] }
 0x2ef   :  { %3134 = vmatprep.mubr.f32.mxu0 %v7771_v57  ;;  %3274 = vmatprep.mubr.f32.mxu1 %v7729_v7  ;;  %v7781_v7 = vld [vmem:[#allocation49_spill] sm:$0xff] }
 0x2f2   :  { %3135 = vmatmul.mubr.f32.gmra.mrb[36].mxu0 %v7772_v21  ;;  %3275 = vmatmul.mubr.f32.gmra.mrb[34].mxu1 %v7773_v30 }
 0x2f3   :  { %3139 = vmatprep.mubr.f32.mxu0 %v7774_v32  ;;  %3279 = vmatprep.mubr.f32.mxu1 %v7775_v61 }
 0x2f6   :  { %3140 = vmatmul.mubr.f32.gmra.mrb[38].mxu0 %v7776_v42  ;;  %3280 = vmatmul.mubr.f32.gmra.mrb[36].mxu1 %v7732_v31  ;;  %v7787_v31 = vld [vmem:[#allocation18_spill] sm:$0xff] }
 0x2f7   :  { %3144 = vmatprep.mubr.f32.mxu0 %v7777_v20  ;;  %3284 = vmatprep.mubr.f32.mxu1 %v7778_v1 }
 0x2fa   :  { %3145 = vmatmul.mubr.f32.gmra.mrb[40].mxu0 %v7779_v0  ;;  %3285 = vmatmul.mubr.f32.gmra.mrb[38].mxu1 %v7780_v17 }
 0x2fb   :  { %3149 = vmatprep.mubr.f32.mxu0 %v7781_v7  ;;  %3289 = vmatprep.mubr.f32.mxu1 %v7782_v28 }
 0x2fe   :  { %3150 = vmatmul.mubr.f32.gmra.mrb[42].mxu0 %v7783_v9  ;;  %3290 = vmatmul.mubr.f32.gmra.mrb[40].mxu1 %v7784_v60 }
 0x2ff   :  { %3154 = vmatprep.mubr.f32.mxu0 %v7785_v58  ;;  %3294 = vmatprep.mubr.f32.mxu1 %v7786_v48 }
 0x302   :  { %3155 = vmatmul.mubr.f32.gmra.mrb[44].mxu0 %v7787_v31  ;;  %3295 = vmatmul.mubr.f32.gmra.mrb[42].mxu1 %v7788_v36 }
 0x303   :  { %3159 = vmatprep.mubr.f32.mxu0 %v7789_v13  ;;  %3299 = vmatprep.mubr.f32.mxu1 %v7739_v27  ;;  %v7795_v27 = vld [vmem:[#allocation23_spill] sm:$0xff] }
 0x306   :  { %3160 = vmatmul.mubr.f32.gmra.mrb[46].mxu0 %v7790_v19  ;;  %3300 = vmatmul.mubr.f32.gmra.mrb[44].mxu1 %v7741_v40  ;;  %v7796_v40 = vld [vmem:[#allocation43_spill] sm:$0xff] }
 0x307   :  { %3164 = vmatprep.mubr.f32.mxu0 %v7791_v25  ;;  %3304 = vmatprep.mubr.f32.mxu1 %v7742_v5  ;;  %v7797_v5 = vld [vmem:[#allocation65_spill] sm:$0xff] }
 0x30a   :  { %3165 = vmatmul.mubr.f32.gmra.mrb[48].mxu0 %v7792_v2  ;;  %3305 = vmatmul.mubr.f32.gmra.mrb[46].mxu1 %v7743_v50  ;;  %v7798_v50 = vld [vmem:[#allocation25_spill] sm:$0xff] }
 0x30b   :  { %3169 = vmatprep.mubr.f32.mxu0 %v7793_v43  ;;  %3309 = vmatprep.mubr.f32.mxu1 %v7744_v26  ;;  %v7799_v26 = vld [vmem:[#allocation47_spill] sm:$0xff] }
 0x30e   :  { %3170 = vmatmul.mubr.f32.gmra.mrb[50].mxu0 %v7794_v8  ;;  %3310 = vmatmul.mubr.f32.gmra.mrb[48].mxu1 %v7746_v35  ;;  %v7800_v35 = vld [vmem:[#allocation69_spill] sm:$0xff] }
 0x30f   :  { %3174 = vmatprep.mubr.f32.mxu0 %v7795_v27  ;;  %3314 = vmatprep.mubr.f32.mxu1 %v7747_v11  ;;  %v7801_v11 = vld [vmem:[#allocation28_spill] sm:$0xff] }
 0x312   :  { %3175 = vmatmul.mubr.f32.gmra.mrb[52].mxu0 %v7796_v40  ;;  %3315 = vmatmul.mubr.f32.gmra.mrb[50].mxu1 %v7748_v49  ;;  %v7802_v49 = vld [vmem:[#allocation51_spill] sm:$0xff] }
 0x313   :  { %3179 = vmatprep.mubr.f32.mxu0 %v7797_v5  ;;  %3319 = vmatprep.mubr.f32.mxu1 %v7749_v37  ;;  %v7803_v37 = vld [vmem:[#allocation73_spill] sm:$0xff] }
 0x316   :  { %3180 = vmatmul.mubr.f32.gmra.mrb[54].mxu0 %v7798_v50  ;;  %3320 = vmatmul.mubr.f32.gmra.mrb[52].mxu1 %v7750_v29  ;;  %v7804_v29 = vld [vmem:[#allocation31_spill] sm:$0xff] }
 0x317   :  { %3184 = vmatprep.mubr.f32.mxu0 %v7799_v26  ;;  %3324 = vmatprep.mubr.f32.mxu1 %v7751_v54  ;;  %v7805_v54 = vld [vmem:[#allocation7_spill] sm:$0xff] }
 0x31a   :  { %3185 = vmatmul.mubr.f32.gmra.mrb[56].mxu0 %v7800_v35  ;;  %3325 = vmatmul.mubr.f32.gmra.mrb[54].mxu1 %v7752_v24  ;;  %v7806_v24 = vld [vmem:[#allocation55_spill] sm:$0xff] }
 0x31b   :  { %3189 = vmatprep.mubr.f32.mxu0 %v7801_v11  ;;  %3329 = vmatprep.mubr.f32.mxu1 %v7753_v46 }
 0x31e   :  { %3190 = vmatmul.mubr.f32.gmra.mrb[58].mxu0 %v7802_v49  ;;  %3330 = vmatmul.mubr.f32.gmra.mrb[56].mxu1 %v7754_v14 }
 0x31f   :  { %3194 = vmatprep.mubr.f32.mxu0 %v7803_v37  ;;  %3334 = vmatprep.mubr.f32.mxu1 %v7755_v10 }
 0x322   :  { %3195 = vmatmul.mubr.f32.gmra.mrb[60].mxu0 %v7804_v29  ;;  %3335 = vmatmul.mubr.f32.gmra.mrb[58].mxu1 %v7756_v55 }
 0x323   :  { %3199 = vmatprep.mubr.f32.mxu0 %v7805_v54  ;;  %3339 = vmatprep.mubr.f32.mxu1 %v7757_v44 }
 0x326   :  { %3200 = vmatmul.mubr.f32.gmra.mrb[62].mxu0 %v7806_v24  ;;  %3340 = vmatmul.mubr.f32.gmra.mrb[60].mxu1 %v7758_v33 }
 0x327   :  { %3344 = vmatprep.mubr.f32.mxu1 %v7759_v45 }
 0x32a   :  { %3345 = vmatmul.mubr.f32.gmra.mrb[62].mxu1 %v7760_v3 }
 0x359   :  { %v2965_v46 = vpop.f32.mrb[0].mxu1 }
 0x35a   :  { %v2967_v14 = vpop.f32.mrb[1].mxu1  ;;  %3432 = vst [vmem:[#allocation3 + $0x10] sm:$0xff] %v2965_v46 }
 0x35b   :  { %3433 = vst [vmem:[#allocation3 + $0x18] sm:$0xff] %v2967_v14 }
 0x35d   :  { %v2971_v10 = vpop.f32.mrb[2].mxu1 }
 0x35e   :  { %v2973_v12 = vpop.f32.mrb[3].mxu1  ;;  %3437 = vst [vmem:[#allocation3 + $0x38] sm:$0xff] %v2971_v10 }
 0x35f   :  { %3438 = vst [vmem:[#allocation3 + $0x40] sm:$0xff] %v2973_v12 }
 0x361   :  { %v2977_v55 = vpop.f32.mrb[4].mxu1 }
 0x362   :  { %v2979_v63 = vpop.f32.mrb[5].mxu1  ;;  %3442 = vst [vmem:[#allocation3 + $0x60] sm:$0xff] %v2977_v55 }
 0x363   :  { %3443 = vst [vmem:[#allocation3 + $0x68] sm:$0xff] %v2979_v63 }
 0x365   :  { %v2983_v44 = vpop.f32.mrb[6].mxu1 }
 0x366   :  { %v2985_v53 = vpop.f32.mrb[7].mxu1  ;;  %3447 = vst [vmem:[#allocation3 + $0x88] sm:$0xff] %v2983_v44 }
 0x367   :  { %3448 = vst [vmem:[#allocation3 + $0x90] sm:$0xff] %v2985_v53 }
 0x369   :  { %v2989_v33 = vpop.f32.mrb[8].mxu1 }
 0x36a   :  { %v2991_v45 = vpop.f32.mrb[9].mxu1  ;;  %3452 = vst [vmem:[#allocation3 + $0xb0] sm:$0xff] %v2989_v33 }
 0x36b   :  { %3453 = vst [vmem:[#allocation3 + $0xb8] sm:$0xff] %v2991_v45 }
 0x36d   :  { %v2995_v3 = vpop.f32.mrb[10].mxu1 }
 0x36e   :  { %v2997_v18 = vpop.f32.mrb[11].mxu1  ;;  %3457 = vst [vmem:[#allocation3 + $0xd8] sm:$0xff] %v2995_v3 }
 0x36f   :  { %3458 = vst [vmem:[#allocation3 + $0xe0] sm:$0xff] %v2997_v18 }
 0x371   :  { %v3001_v23 = vpop.f32.mrb[12].mxu1 }
 0x372   :  { %v3003_v62 = vpop.f32.mrb[13].mxu1  ;;  %3462 = vst [vmem:[#allocation3 + $0x100] sm:$0xff] %v3001_v23 }
 0x373   :  { %3463 = vst [vmem:[#allocation3 + $0x108] sm:$0xff] %v3003_v62 }
 0x375   :  { %v3007_v52 = vpop.f32.mrb[14].mxu1 }
 0x376   :  { %v3009_v6 = vpop.f32.mrb[15].mxu1  ;;  %3467 = vst [vmem:[#allocation3 + $0x128] sm:$0xff] %v3007_v52 }
 0x377   :  { %3468 = vst [vmem:[#allocation3 + $0x130] sm:$0xff] %v3009_v6 }
 0x379   :  { %v3013_v56 = vpop.f32.mrb[16].mxu1 }
 0x37a   :  { %v3015_v38 = vpop.f32.mrb[17].mxu1  ;;  %3472 = vst [vmem:[#allocation3 + $0x150] sm:$0xff] %v3013_v56 }
 0x37b   :  { %3473 = vst [vmem:[#allocation3 + $0x158] sm:$0xff] %v3015_v38 }
 0x37d   :  { %v3019_v15 = vpop.f32.mrb[18].mxu1 }
 0x37e   :  { %v3021_v47 = vpop.f32.mrb[19].mxu1  ;;  %3477 = vst [vmem:[#allocation3 + $0x178] sm:$0xff] %v3019_v15 }
 0x37f   :  { %3478 = vst [vmem:[#allocation3 + $0x180] sm:$0xff] %v3021_v47 }
 0x381   :  { %v3025_v22 = vpop.f32.mrb[20].mxu1 }
 0x382   :  { %v3027_v51 = vpop.f32.mrb[21].mxu1  ;;  %3482 = vst [vmem:[#allocation3 + $0x1a0] sm:$0xff] %v3025_v22 }
 0x383   :  { %3483 = vst [vmem:[#allocation3 + $0x1a8] sm:$0xff] %v3027_v51 }
 0x385   :  { %v3031_v39 = vpop.f32.mrb[22].mxu1 }
 0x386   :  { %v3033_v34 = vpop.f32.mrb[23].mxu1  ;;  %3487 = vst [vmem:[#allocation3 + $0x1c8] sm:$0xff] %v3031_v39 }
 0x387   :  { %3488 = vst [vmem:[#allocation3 + $0x1d0] sm:$0xff] %v3033_v34 }
 0x389   :  { %v3037_v41 = vpop.f32.mrb[24].mxu1 }
 0x38a   :  { %v3039_v4 = vpop.f32.mrb[25].mxu1  ;;  %3492 = vst [vmem:[#allocation3 + $0x1f0] sm:$0xff] %v3037_v41 }
 0x38b   :  { %3493 = vst [vmem:[#allocation3 + $0x1f8] sm:$0xff] %v3039_v4 }
 0x38d   :  { %v3043_v59 = vpop.f32.mrb[26].mxu1 }
 0x38e   :  { %v3045_v16 = vpop.f32.mrb[27].mxu1  ;;  %3497 = vst [vmem:[#allocation3 + $0x218] sm:$0xff] %v3043_v59 }
 0x38f   :  { %3498 = vst [vmem:[#allocation3 + $0x220] sm:$0xff] %v3045_v16 }
 0x391   :  { %v3049_v57 = vpop.f32.mrb[28].mxu1 }
 0x392   :  { %v3051_v21 = vpop.f32.mrb[29].mxu1  ;;  %3502 = vst [vmem:[#allocation3 + $0x240] sm:$0xff] %v3049_v57 }
 0x393   :  { %3503 = vst [vmem:[#allocation3 + $0x248] sm:$0xff] %v3051_v21 }
 0x395   :  { %v3055_v30 = vpop.f32.mrb[30].mxu1 }
 0x396   :  { %v3057_v32 = vpop.f32.mrb[31].mxu1  ;;  %3507 = vst [vmem:[#allocation3 + $0x268] sm:$0xff] %v3055_v30 }
 0x397   :  { %3508 = vst [vmem:[#allocation3 + $0x270] sm:$0xff] %v3057_v32 }
 0x3bd   :  { %v3558_v61 = vpop.f32.mrb[32].mxu0 }
 0x3be   :  { %v3559_v42 = vpop.f32.mrb[33].mxu0 }
 0x3bf   :  { %v3560_v20 = vadd.f32 %v3559_v42, %v3558_v61 }
 0x3c1   :  { %v3561_v1 = vpop.f32.mrb[34].mxu0  ;;  %v3638_v0 = vpop.f32.mrb[32].mxu1 }
 0x3c2   :  { %v3562_v17 = vpop.f32.mrb[35].mxu0  ;;  %v3639_v7 = vpop.f32.mrb[33].mxu1 }
 0x3c3   :  { %v3563_v28 = vadd.f32 %v3562_v17, %v3561_v1  ;;  %v3640_v9 = vadd.f32 %v3639_v7, %v3638_v0 }
 0x3c5   :  { %v3272_v60 = vadd.f32 %v3640_v9, %v3560_v20  ;;  %v3564_v58 = vpop.f32.mrb[36].mxu0  ;;  %v3641_v48 = vpop.f32.mrb[34].mxu1 }
 0x3c6   :  { %v3565_v31 = vpop.f32.mrb[37].mxu0  ;;  %v3642_v36 = vpop.f32.mrb[35].mxu1 }
 0x3c7   :  { %v3566_v13 = vadd.f32 %v3565_v31, %v3564_v58  ;;  %v3643_v19 = vadd.f32 %v3642_v36, %v3641_v48  ;;  %3434 = vst [vmem:[#allocation3 + $0x20] sm:$0xff] %v3272_v60 }
 0x3c9   :  { %v3277_v25 = vadd.f32 %v3643_v19, %v3563_v28  ;;  %v3567_v2 = vpop.f32.mrb[38].mxu0  ;;  %v3644_v43 = vpop.f32.mrb[36].mxu1 }
 0x3ca   :  { %v3568_v8 = vpop.f32.mrb[39].mxu0  ;;  %v3645_v27 = vpop.f32.mrb[37].mxu1 }
 0x3cb   :  { %v3569_v40 = vadd.f32 %v3568_v8, %v3567_v2  ;;  %v3646_v5 = vadd.f32 %v3645_v27, %v3644_v43  ;;  %3439 = vst [vmem:[#allocation3 + $0x48] sm:$0xff] %v3277_v25 }
 0x3cd   :  { %v3282_v50 = vadd.f32 %v3646_v5, %v3566_v13  ;;  %v3570_v26 = vpop.f32.mrb[40].mxu0  ;;  %v3647_v35 = vpop.f32.mrb[38].mxu1 }
 0x3ce   :  { %v3571_v11 = vpop.f32.mrb[41].mxu0  ;;  %v3648_v49 = vpop.f32.mrb[39].mxu1 }
 0x3cf   :  { %v3572_v37 = vadd.f32 %v3571_v11, %v3570_v26  ;;  %v3649_v29 = vadd.f32 %v3648_v49, %v3647_v35  ;;  %3444 = vst [vmem:[#allocation3 + $0x70] sm:$0xff] %v3282_v50 }
 0x3d1   :  { %v3287_v54 = vadd.f32 %v3649_v29, %v3569_v40  ;;  %v3573_v24 = vpop.f32.mrb[42].mxu0  ;;  %v3650_v46 = vpop.f32.mrb[40].mxu1 }
 0x3d2   :  { %v3574_v14 = vpop.f32.mrb[43].mxu0  ;;  %v3651_v10 = vpop.f32.mrb[41].mxu1 }
 0x3d3   :  { %v3575_v12 = vadd.f32 %v3574_v14, %v3573_v24  ;;  %v3652_v55 = vadd.f32 %v3651_v10, %v3650_v46  ;;  %3449 = vst [vmem:[#allocation3 + $0x98] sm:$0xff] %v3287_v54 }
 0x3d5   :  { %v3292_v63 = vadd.f32 %v3652_v55, %v3572_v37  ;;  %v3576_v44 = vpop.f32.mrb[44].mxu0  ;;  %v3653_v53 = vpop.f32.mrb[42].mxu1 }
 0x3d6   :  { %v3577_v33 = vpop.f32.mrb[45].mxu0  ;;  %v3654_v45 = vpop.f32.mrb[43].mxu1 }
 0x3d7   :  { %v3578_v3 = vadd.f32 %v3577_v33, %v3576_v44  ;;  %v3655_v18 = vadd.f32 %v3654_v45, %v3653_v53  ;;  %3454 = vst [vmem:[#allocation3 + $0xc0] sm:$0xff] %v3292_v63 }
 0x3d9   :  { %v3297_v23 = vadd.f32 %v3655_v18, %v3575_v12  ;;  %v3579_v62 = vpop.f32.mrb[46].mxu0  ;;  %v3656_v52 = vpop.f32.mrb[44].mxu1 }
 0x3da   :  { %v3580_v6 = vpop.f32.mrb[47].mxu0  ;;  %v3657_v56 = vpop.f32.mrb[45].mxu1 }
 0x3db   :  { %v3581_v38 = vadd.f32 %v3580_v6, %v3579_v62  ;;  %v3658_v15 = vadd.f32 %v3657_v56, %v3656_v52  ;;  %3459 = vst [vmem:[#allocation3 + $0xe8] sm:$0xff] %v3297_v23 }
 0x3dd   :  { %v3302_v47 = vadd.f32 %v3658_v15, %v3578_v3  ;;  %v3582_v22 = vpop.f32.mrb[48].mxu0  ;;  %v3659_v51 = vpop.f32.mrb[46].mxu1 }
 0x3de   :  { %v3583_v39 = vpop.f32.mrb[49].mxu0  ;;  %v3660_v34 = vpop.f32.mrb[47].mxu1 }
 0x3df   :  { %v3584_v41 = vadd.f32 %v3583_v39, %v3582_v22  ;;  %v3661_v4 = vadd.f32 %v3660_v34, %v3659_v51  ;;  %3464 = vst [vmem:[#allocation3 + $0x110] sm:$0xff] %v3302_v47 }
 0x3e1   :  { %v3307_v59 = vadd.f32 %v3661_v4, %v3581_v38  ;;  %v3585_v16 = vpop.f32.mrb[50].mxu0  ;;  %v3662_v57 = vpop.f32.mrb[48].mxu1 }
 0x3e2   :  { %v3586_v21 = vpop.f32.mrb[51].mxu0  ;;  %v3663_v30 = vpop.f32.mrb[49].mxu1 }
 0x3e3   :  { %v3587_v32 = vadd.f32 %v3586_v21, %v3585_v16  ;;  %v3664_v61 = vadd.f32 %v3663_v30, %v3662_v57  ;;  %3469 = vst [vmem:[#allocation3 + $0x138] sm:$0xff] %v3307_v59 }
 0x3e5   :  { %v3312_v42 = vadd.f32 %v3664_v61, %v3584_v41  ;;  %v3588_v20 = vpop.f32.mrb[52].mxu0  ;;  %v3665_v1 = vpop.f32.mrb[50].mxu1 }
 0x3e6   :  { %v3589_v0 = vpop.f32.mrb[53].mxu0  ;;  %v3666_v17 = vpop.f32.mrb[51].mxu1 }
 0x3e7   :  { %v3590_v7 = vadd.f32 %v3589_v0, %v3588_v20  ;;  %v3667_v28 = vadd.f32 %v3666_v17, %v3665_v1  ;;  %3474 = vst [vmem:[#allocation3 + $0x160] sm:$0xff] %v3312_v42 }
 0x3e9   :  { %v3317_v9 = vadd.f32 %v3667_v28, %v3587_v32  ;;  %v3591_v60 = vpop.f32.mrb[54].mxu0  ;;  %v3668_v58 = vpop.f32.mrb[52].mxu1 }
 0x3ea   :  { %v3592_v48 = vpop.f32.mrb[55].mxu0  ;;  %v3669_v31 = vpop.f32.mrb[53].mxu1 }
 0x3eb   :  { %v3593_v36 = vadd.f32 %v3592_v48, %v3591_v60  ;;  %v3670_v13 = vadd.f32 %v3669_v31, %v3668_v58  ;;  %3479 = vst [vmem:[#allocation3 + $0x188] sm:$0xff] %v3317_v9 }
 0x3ed   :  { %v3322_v19 = vadd.f32 %v3670_v13, %v3590_v7  ;;  %v3594_v25 = vpop.f32.mrb[56].mxu0  ;;  %v3671_v2 = vpop.f32.mrb[54].mxu1 }
 0x3ee   :  { %v3595_v43 = vpop.f32.mrb[57].mxu0  ;;  %v3672_v8 = vpop.f32.mrb[55].mxu1 }
 0x3ef   :  { %v3596_v27 = vadd.f32 %v3595_v43, %v3594_v25  ;;  %v3673_v40 = vadd.f32 %v3672_v8, %v3671_v2  ;;  %3484 = vst [vmem:[#allocation3 + $0x1b0] sm:$0xff] %v3322_v19 }
 0x3f1   :  { %v3327_v5 = vadd.f32 %v3673_v40, %v3593_v36  ;;  %v3597_v50 = vpop.f32.mrb[58].mxu0  ;;  %v3674_v26 = vpop.f32.mrb[56].mxu1 }
 0x3f2   :  { %v3598_v35 = vpop.f32.mrb[59].mxu0  ;;  %v3675_v11 = vpop.f32.mrb[57].mxu1 }
 0x3f3   :  { %v3599_v49 = vadd.f32 %v3598_v35, %v3597_v50  ;;  %v3676_v37 = vadd.f32 %v3675_v11, %v3674_v26  ;;  %3489 = vst [vmem:[#allocation3 + $0x1d8] sm:$0xff] %v3327_v5 }
 0x3f5   :  { %v3332_v29 = vadd.f32 %v3676_v37, %v3596_v27  ;;  %v3600_v54 = vpop.f32.mrb[60].mxu0  ;;  %v3677_v24 = vpop.f32.mrb[58].mxu1 }
 0x3f6   :  { %v3601_v46 = vpop.f32.mrb[61].mxu0  ;;  %v3678_v14 = vpop.f32.mrb[59].mxu1 }
 0x3f7   :  { %v3602_v10 = vadd.f32 %v3601_v46, %v3600_v54  ;;  %v3679_v12 = vadd.f32 %v3678_v14, %v3677_v24  ;;  %3494 = vst [vmem:[#allocation3 + $0x200] sm:$0xff] %v3332_v29 }
 0x3f9   :  { %v3337_v55 = vadd.f32 %v3679_v12, %v3599_v49  ;;  %v3603_v63 = vpop.f32.mrb[62].mxu0  ;;  %v3680_v44 = vpop.f32.mrb[60].mxu1 }
 0x3fa   :  { %v3604_v53 = vpop.f32.mrb[63].mxu0  ;;  %v3681_v33 = vpop.f32.mrb[61].mxu1 }
 0x3fb   :  { %v3605_v45 = vadd.f32 %v3604_v53, %v3603_v63  ;;  %v3682_v3 = vadd.f32 %v3681_v33, %v3680_v44  ;;  %3499 = vst [vmem:[#allocation3 + $0x228] sm:$0xff] %v3337_v55 }
 0x3fd   :  { %v3342_v18 = vadd.f32 %v3682_v3, %v3602_v10  ;;  %v3683_v23 = vpop.f32.mrb[62].mxu1 }
 0x3fe   :  { %v3684_v62 = vpop.f32.mrb[63].mxu1 }
 0x3ff   :  { %v3685_v52 = vadd.f32 %v3684_v62, %v3683_v23  ;;  %3504 = vst [vmem:[#allocation3 + $0x250] sm:$0xff] %v3342_v18 }
 0x401   :  { %v3347_v6 = vadd.f32 %v3685_v52, %v3605_v45 }
 0x403   :  { %3509 = vst [vmem:[#allocation3 + $0x278] sm:$0xff] %v3347_v6 }
 0x404   :  { %4503 = shalt.err (!%p4500_p4)
}
 0x405   :  { %s4504_s1 = scalar_lea.hbm %s7073_s2, 10240 }
 0x406   :  { %p4505_p5 = scmp.ne.s32.totalorder %s7073_s2, %s4504_s1  ;;  %p4508_p6 = scmp.lt.u32.totalorder %s4504_s1, %s7073_s2 }
 0x408   :  { %p4510_p7 = pnand %p4508_p6, %p4505_p5 }
 0x40a   :  { %4513 = shalt.err (!%p4510_p7)
}
 0x40b   :  { %s4521_s19 = smov 640   ;;  %s4522_s20 = smov 40  }
 0x40c   :  { %3521 = dma.vmem_to_hbm [thread:$0]  %s3516_s11, 10240, %s7073_s2, [#allocation4], %s4521_s19, %s4521_s19, %s4522_s20  }
 0x40d   :  { %4514 = dma.done.wait [#allocation4], 10240  }
 0x40e   :  { %4515 = vsyncadd [#allocation4], 4294957056 }
 0x40f   :  { %3525 = vsyncpa [#allocation4], 1 }

</bundles_post_ra>
